<compile_context>
chip_gen: v6e
topology: v6e:2x2x1
jax: 0.10.0
libtpu: 0.0.40
codegen_flags: <defaults>
</compile_context>

<pallas_src>
import functools

import jax
import jax.numpy as jnp
from jax.experimental import pallas as pl
from jax.experimental.pallas import tpu as pltpu  # noqa: F401  (TPU backend)

NEG_INF = -1e9
OUT_PAD = 128  # lane-dense padding for the classifier output

# ----------------------------- small synthetic config -----------------------
CFG = dict(
    vocab=100, max_pos=64,
    # "Electra" (lan model): hidden = lan_hidden_size
    lan_hidden=32, electra_layers=2, electra_heads=4, electra_ffn=64,
    # "Bart": d_model, 2 encoder / 1 decoder layers (scaled-down 4/2)
    d_model=32, bart_enc_layers=2, bart_dec_layers=1, bart_heads=4, bart_ffn=128,
    # fusion TransformerEncoderLayer over concat dim (32 + 32 = 64)
    fusion_heads=4, fusion_ffn=128,
    num_labels=5,
    pad_id=0, decoder_start_id=2,
)

# ----------------------------- Pallas kernels --------------------------------


def _attn_block_kernel(xq_ref, xkv_ref, bias_ref,
                       wq_ref, bq_ref, wk_ref, bk_ref, wv_ref, bv_ref,
                       wo_ref, bo_ref, g_ref, b_ref, o_ref,
                       *, n_heads, eps):
    """LayerNorm(x_q + OutProj(MultiHeadAttention(x_q, x_kv))) in one kernel."""
    f32 = jnp.float32
    bf16 = jnp.bfloat16

    xq = xq_ref[...]                               # [Mq, Hq]  f32
    xkv = xkv_ref[...]                             # [Mk, Hk]  f32

    # fused Q/K/V projections: bf16 operands into the MXU, f32 accumulation
    q = jnp.dot(xq.astype(bf16), wq_ref[...], preferred_element_type=f32) + bq_ref[...]
    k = jnp.dot(xkv.astype(bf16), wk_ref[...], preferred_element_type=f32) + bk_ref[...]
    v = jnp.dot(xkv.astype(bf16), wv_ref[...], preferred_element_type=f32) + bv_ref[...]

    H = q.shape[-1]
    Dh = H // n_heads
    scale = 1.0 / (float(Dh) ** 0.5)

    # additive bias over the flattened [Mq, Mk] score matrix
    # (batch-block-diagonal + optional causal + key padding), shared by heads
    bias = bias_ref[...]                           # [Mq, Mk] f32
    wo = wo_ref[...]                               # [H, H]   f32

    # per-head softmax(QK^T)V, folded straight into the output projection:
    #   concat_h(ctx_h) @ Wo == sum_h ctx_h @ Wo[h*Dh:(h+1)*Dh, :]
    acc = None
    for h in range(n_heads):
        lo = h * Dh
        qh = (q[:, lo:lo + Dh] * scale).astype(bf16)     # [Mq, Dh]
        kh = k[:, lo:lo + Dh].astype(bf16)               # [Mk, Dh]
        vh = v[:, lo:lo + Dh].astype(bf16)               # [Mk, Dh]
        s = jax.lax.dot_general(qh, kh, (((1,), (1,)), ((), ())),
                                preferred_element_type=f32) + bias
        s = s - jnp.max(s, axis=-1, keepdims=True)
        p = jnp.exp(s)
        p = p * pl.reciprocal(jnp.sum(p, axis=-1, keepdims=True), approx=True)
        ctx_h = jnp.dot(p.astype(bf16), vh, preferred_element_type=f32)   # [Mq, Dh]
        part = jnp.dot(ctx_h, wo[lo:lo + Dh, :], preferred_element_type=f32)
        acc = part if acc is None else acc + part

    # residual + LayerNorm epilogue (all f32)
    y = xq + acc + bo_ref[...]
    mu = jnp.mean(y, axis=-1, keepdims=True)
    var = jnp.mean(jnp.square(y - mu), axis=-1, keepdims=True)
    o_ref[...] = (y - mu) * jax.lax.rsqrt(var + eps) * g_ref[...] + b_ref[...]


def _ffn_block_kernel(x_ref, w1_ref, b1_ref, w2_ref, b2_ref, g_ref, b_ref,
                      o_ref, *, eps):
    """LayerNorm(x + W2(GELU(W1 x))) in one kernel."""
    f32 = jnp.float32
    bf16 = jnp.bfloat16
    x = x_ref[...]                                  # [M, H] f32
    h = jnp.dot(x.astype(bf16), w1_ref[...], preferred_element_type=f32) + b1_ref[...]
    # TODO(synk): exact erf-GELU (HF / torch default) approximated with the
    # tanh form inside the fused kernel (erf lowering is not guaranteed in Mosaic).
    c = 0.7978845608028654  # sqrt(2/pi)
    h = 0.5 * h * (1.0 + jnp.tanh(c * (h + 0.044715 * h * h * h)))
    h = jnp.dot(h.astype(bf16), w2_ref[...], preferred_element_type=f32) + b2_ref[...]
    y = x + h
    mu = jnp.mean(y, axis=-1, keepdims=True)
    var = jnp.mean(jnp.square(y - mu), axis=-1, keepdims=True)
    o_ref[...] = (y - mu) * jax.lax.rsqrt(var + eps) * g_ref[...] + b_ref[...]


def _layernorm_kernel(x_ref, g_ref, b_ref, o_ref, *, eps):
    x = x_ref[...]
    mu = jnp.mean(x, axis=-1, keepdims=True)
    var = jnp.mean(jnp.square(x - mu), axis=-1, keepdims=True)
    o_ref[...] = (x - mu) * jax.lax.rsqrt(var + eps) * g_ref[...] + b_ref[...]


def _out_linear_kernel(x_ref, w_ref, b_ref, o_ref):
    o_ref[...] = (
        jnp.dot(x_ref[...].astype(jnp.bfloat16), w_ref[...],
                preferred_element_type=jnp.float32)
        + b_ref[...]
    )


# ----------------------------- kernel wrappers --------------------------------
# No grid / in_specs: each operand is a single whole-array VMEM block (all
# activations are <=16x128 and all weights <=128x128 -> a few KB of VMEM).


def attn_block(xq2, xkv2, bias, p, *, n_heads, eps):
    Mq = xq2.shape[0]
    H = p["wo"].shape[0]
    kern = functools.partial(_attn_block_kernel, n_heads=n_heads, eps=float(eps))
    return pl.pallas_call(
        kern,
        out_shape=jax.ShapeDtypeStruct((Mq, H), jnp.float32),
    )(xq2, xkv2, bias,
      p["wq"], p["bq"], p["wk"], p["bk"], p["wv"], p["bv"],
      p["wo"], p["bo"], p["ln_g"], p["ln_b"])


def ffn_block(x2, p, *, eps):
    M, H = x2.shape
    kern = functools.partial(_ffn_block_kernel, eps=float(eps))
    return pl.pallas_call(
        kern,
        out_shape=jax.ShapeDtypeStruct((M, H), jnp.float32),
    )(x2, p["w1"], p["b1"], p["w2"], p["b2"], p["ln_g"], p["ln_b"])


def layer_norm(x2, g, b, eps):
    M, H = x2.shape
    return pl.pallas_call(
        functools.partial(_layernorm_kernel, eps=float(eps)),
        out_shape=jax.ShapeDtypeStruct((M, H), jnp.float32),
    )(x2.astype(jnp.float32), g, b)


def out_linear(x2, w, b):
    M = x2.shape[0]
    N = w.shape[1]
    return pl.pallas_call(
        _out_linear_kernel,
        out_shape=jax.ShapeDtypeStruct((M, N), jnp.float32),
    )(x2, w, b)


# ----------------------------- attention bias (plain-JAX, tiny) --------------


def attention_bias(batch_blocks, seq, key_mask=None, causal=False):
    """Additive bias [AB*seq, AB*seq] for the flattened dense score matrix.

    Rows/cols are ordered block-major (row = block * seq + pos).  Disallows
    cross-block pairs, optionally applies a causal mask inside each block and
    adds the key-padding mask.  This single small tile is shared by all heads
    (it replaces the old per-(batch*head) broadcast bias).
    """
    M = batch_blocks * seq
    idx = jnp.arange(M)
    blk = idx // seq
    allowed = blk[:, None] == blk[None, :]
    if causal:
        pos = idx % seq
        allowed = allowed & (pos[:, None] >= pos[None, :])
    bias = jnp.where(allowed, 0.0, NEG_INF).astype(jnp.float32)
    if key_mask is not None:  # key_mask: [AB, seq], 1 = keep
        bias = bias + ((1.0 - key_mask.astype(jnp.float32)) * NEG_INF).reshape(1, M)
    return bias


def shift_tokens_right(ids, decoder_start_id):
    start = jnp.full((ids.shape[0], 1), decoder_start_id, dtype=ids.dtype)
    return jnp.concatenate([start, ids[:, :-1]], axis=1)


# ----------------------------- Electra (encode_layer) ------------------------


def electra_model(ids, mask, P):
    B, S = ids.shape
    H = CFG["lan_hidden"]
    pos = jnp.arange(S)
    emb = P["word_emb"][ids] + P["pos_emb"][pos][None] + P["type_emb"][0][None, None, :]
    x = layer_norm(emb.reshape(B * S, H), P["emb_ln_g"], P["emb_ln_b"], 1e-12)
    bias = attention_bias(B, S, key_mask=mask)
    for lp in P["layers"]:
        x = attn_block(x, x, bias, lp["attn"],
                       n_heads=CFG["electra_heads"], eps=1e-12)
        x = ffn_block(x, lp["ffn"], eps=1e-12)
    return x  # last_hidden_state as [B*S, lan_hidden]


# ----------------------------- Bart (decode_layer) ---------------------------


def bart_model(ids, mask, P):
    B, S = ids.shape
    D = CFG["d_model"]
    nh = CFG["bart_heads"]
    pos = jnp.arange(S) + 2  # BartLearnedPositionalEmbedding offset = 2

    pad_bias = attention_bias(B, S, key_mask=mask)
    causal_bias = attention_bias(B, S, causal=True)

    # encoder
    x = P["shared_emb"][ids] + P["enc_pos_emb"][pos][None]
    x = layer_norm(x.reshape(B * S, D), P["enc_emb_ln_g"], P["enc_emb_ln_b"], 1e-5)
    for lp in P["enc_layers"]:
        x = attn_block(x, x, pad_bias, lp["self_attn"], n_heads=nh, eps=1e-5)
        x = ffn_block(x, lp["ffn"], eps=1e-5)
    enc = x

    # decoder (decoder_input_ids = shift_right(input_ids), causal self-attn)
    dec_ids = shift_tokens_right(ids, CFG["decoder_start_id"])
    y = P["shared_emb"][dec_ids] + P["dec_pos_emb"][pos][None]
    y = layer_norm(y.reshape(B * S, D), P["dec_emb_ln_g"], P["dec_emb_ln_b"], 1e-5)
    for lp in P["dec_layers"]:
        y = attn_block(y, y, causal_bias, lp["self_attn"], n_heads=nh, eps=1e-5)
        y = attn_block(y, enc, pad_bias, lp["cross_attn"], n_heads=nh, eps=1e-5)
        y = ffn_block(y, lp["ffn"], eps=1e-5)
    return y  # BartModel()[0] == decoder last_hidden_state as [B*S, d_model]


# ----------------------------- full forward ----------------------------------


def parallel_endecoder_forward(params, xs, x_masks):
    B, S = xs.shape
    enc2 = electra_model(xs, x_masks, params["electra"])   # [B*S, lan_hidden]
    dec2 = bart_model(xs, x_masks, params["bart"])         # [B*S, d_model]
    h = jnp.concatenate([enc2, dec2], axis=-1)             # [B*S, E]
    E = h.shape[-1]

    # fusion nn.TransformerEncoderLayer: PyTorch default batch_first=False and
    # the module feeds [B, S, E], so attention mixes across the *batch* axis at
    # each sequence position.  Reproduced faithfully via an (S, B) re-layout.
    hf = h.reshape(B, S, E).transpose(1, 0, 2).reshape(S * B, E)
    fbias = attention_bias(S, B)                            # block-diag over positions
    Pf = params["fusion"]
    hf = attn_block(hf, hf, fbias, Pf["attn"],
                    n_heads=CFG["fusion_heads"], eps=1e-5)
    hf = ffn_block(hf, Pf["ffn"], eps=1e-5)
    h = hf.reshape(S, B, E).transpose(1, 0, 2).reshape(B * S, E)

    # dropout_layer: eval mode -> identity
    ys = out_linear(h, params["out_w"], params["out_b"])   # [B*S, 128] lane-dense
    ys = ys[:, :CFG["num_labels"]]
    return ys.reshape(B, S, CFG["num_labels"])


# ----------------------------- deterministic param init ----------------------
# TODO(synk): ElectraModel.from_pretrained weight loading replaced by
# deterministic random init (synthetic kernel, no checkpoints).


def _make_param_gen(seed=0, scale=0.02):
    base = jax.random.PRNGKey(seed)
    counter = [0]

    def pg(shape):
        counter[0] += 1
        k = jax.random.fold_in(base, counter[0])
        return (scale * jax.random.normal(k, shape)).astype(jnp.float32)

    return pg


def _init_attn(pg, d_q, d_kv, d_model):
    bf = jnp.bfloat16
    f32 = jnp.float32
    return dict(
        wq=pg((d_q, d_model)).astype(bf),  bq=pg((1, d_model)),
        wk=pg((d_kv, d_model)).astype(bf), bk=pg((1, d_model)),
        wv=pg((d_kv, d_model)).astype(bf), bv=pg((1, d_model)),
        # wo stays f32: its row-blocks are sliced per head inside the kernel
        wo=pg((d_model, d_model)),         bo=pg((1, d_model)),
        ln_g=jnp.ones((1, d_model), f32),  ln_b=jnp.zeros((1, d_model), f32),
    )


def _init_ffn(pg, d_model, d_ffn):
    bf = jnp.bfloat16
    f32 = jnp.float32
    return dict(
        w1=pg((d_model, d_ffn)).astype(bf), b1=pg((1, d_ffn)),
        w2=pg((d_ffn, d_model)).astype(bf), b2=pg((1, d_model)),
        ln_g=jnp.ones((1, d_model), f32),   ln_b=jnp.zeros((1, d_model), f32),
    )


def init_params():
    pg = _make_param_gen(0)
    H, D = CFG["lan_hidden"], CFG["d_model"]
    E = H + D
    f32 = jnp.float32
    ones2 = lambda n: jnp.ones((1, n), f32)
    zeros2 = lambda n: jnp.zeros((1, n), f32)

    electra = dict(
        word_emb=pg((CFG["vocab"], H)),
        pos_emb=pg((CFG["max_pos"], H)),
        type_emb=pg((2, H)),
        emb_ln_g=ones2(H), emb_ln_b=zeros2(H),
        layers=[dict(attn=_init_attn(pg, H, H, H),
                     ffn=_init_ffn(pg, H, CFG["electra_ffn"]))
                for _ in range(CFG["electra_layers"])],
    )

    bart = dict(
        shared_emb=pg((CFG["vocab"], D)),
        enc_pos_emb=pg((CFG["max_pos"] + 2, D)),
        dec_pos_emb=pg((CFG["max_pos"] + 2, D)),
        enc_emb_ln_g=ones2(D), enc_emb_ln_b=zeros2(D),
        dec_emb_ln_g=ones2(D), dec_emb_ln_b=zeros2(D),
        enc_layers=[dict(self_attn=_init_attn(pg, D, D, D),
                         ffn=_init_ffn(pg, D, CFG["bart_ffn"]))
                    for _ in range(CFG["bart_enc_layers"])],
        dec_layers=[dict(self_attn=_init_attn(pg, D, D, D),
                         cross_attn=_init_attn(pg, D, D, D),
                         ffn=_init_ffn(pg, D, CFG["bart_ffn"]))
                    for _ in range(CFG["bart_dec_layers"])],
    )

    fusion = dict(attn=_init_attn(pg, E, E, E),
                  ffn=_init_ffn(pg, E, CFG["fusion_ffn"]))

    # classifier head, zero-padded to a lane-dense (multiple of 128) output
    nl = CFG["num_labels"]
    ow = pg((E, nl))
    ob = pg((1, nl))
    out_w = jnp.zeros((E, OUT_PAD), f32).at[:, :nl].set(ow).astype(jnp.bfloat16)
    out_b = jnp.zeros((1, OUT_PAD), f32).at[:, :nl].set(ob)

    return dict(electra=electra, bart=bart, fusion=fusion,
                out_w=out_w, out_b=out_b)


# ----------------------------- main -------------------------------------------

if __name__ == "__main__":
    B, S = 2, 8
    key = jax.random.PRNGKey(0)
    xs = jax.random.randint(key, (B, S), 4, CFG["vocab"], dtype=jnp.int32)
    # second example has 2 padding positions at the end
    x_masks = jnp.array(
        [[1.0] * S, [1.0] * (S - 2) + [0.0, 0.0]], dtype=jnp.float32
    )

    params = init_params()
    fwd = jax.jit(parallel_endecoder_forward)
    ys = jax.block_until_ready(fwd(params, xs, x_masks))

    assert ys.shape == (B, S, CFG["num_labels"]), ys.shape
    assert bool(jnp.all(jnp.isfinite(ys)))
    print("KERNEL_OK")
</pallas_src>

<mosaic_0001>
module attributes {stable_mosaic.version = 11 : i64} {
  func.func @_layernorm_kernel(%arg0: memref<16x32xf32, #tpu.memory_space<vmem>>, %arg1: memref<1x32xf32, #tpu.memory_space<vmem>>, %arg2: memref<1x32xf32, #tpu.memory_space<vmem>>, %arg3: memref<16x32xf32, #tpu.memory_space<vmem>>) attributes {dimension_semantics = [], scalar_prefetch = 0 : i64, scratch_operands = 0 : i64, tpu.core_type = #tpu.core_type<tc>} {
    %c0 = arith.constant 0 : index
    %c0_0 = arith.constant 0 : index
    %0 = vector.load %arg0[%c0, %c0_0] : memref<16x32xf32, #tpu.memory_space<vmem>>, vector<16x32xf32>
    %cst = arith.constant dense<0.000000e+00> : vector<16xf32>
    %1 = vector.multi_reduction <add>, %0, %cst [1] : vector<16x32xf32> to vector<16xf32>
    %2 = vector.shape_cast %1 : vector<16xf32> to vector<16x1xf32>
    %cst_1 = arith.constant 3.200000e+01 : f32
    %3 = vector.broadcast %cst_1 : f32 to vector<16x1xf32>
    %4 = arith.divf %2, %3 : vector<16x1xf32>
    %5 = vector.broadcast %4 : vector<16x1xf32> to vector<16x32xf32>
    %6 = arith.subf %0, %5 : vector<16x32xf32>
    %7 = arith.mulf %6, %6 : vector<16x32xf32>
    %cst_2 = arith.constant dense<0.000000e+00> : vector<16xf32>
    %8 = vector.multi_reduction <add>, %7, %cst_2 [1] : vector<16x32xf32> to vector<16xf32>
    %9 = vector.shape_cast %8 : vector<16xf32> to vector<16x1xf32>
    %cst_3 = arith.constant 3.200000e+01 : f32
    %10 = vector.broadcast %cst_3 : f32 to vector<16x1xf32>
    %11 = arith.divf %9, %10 : vector<16x1xf32>
    %12 = vector.broadcast %4 : vector<16x1xf32> to vector<16x32xf32>
    %13 = arith.subf %0, %12 : vector<16x32xf32>
    %cst_4 = arith.constant 9.99999974E-6 : f32
    %14 = vector.broadcast %cst_4 : f32 to vector<16x1xf32>
    %15 = arith.addf %11, %14 : vector<16x1xf32>
    %16 = math.rsqrt %15 : vector<16x1xf32>
    %17 = vector.broadcast %16 : vector<16x1xf32> to vector<16x32xf32>
    %18 = arith.mulf %13, %17 : vector<16x32xf32>
    %c0_5 = arith.constant 0 : index
    %c0_6 = arith.constant 0 : index
    %19 = vector.load %arg1[%c0_5, %c0_6] : memref<1x32xf32, #tpu.memory_space<vmem>>, vector<1x32xf32>
    %20 = vector.broadcast %19 : vector<1x32xf32> to vector<16x32xf32>
    %21 = arith.mulf %18, %20 : vector<16x32xf32>
    %c0_7 = arith.constant 0 : index
    %c0_8 = arith.constant 0 : index
    %22 = vector.load %arg2[%c0_7, %c0_8] : memref<1x32xf32, #tpu.memory_space<vmem>>, vector<1x32xf32>
    %23 = vector.broadcast %22 : vector<1x32xf32> to vector<16x32xf32>
    %24 = arith.addf %21, %23 : vector<16x32xf32>
    %c0_9 = arith.constant 0 : index
    %c0_10 = arith.constant 0 : index
    %25 = vector.load %arg3[%c0_9, %c0_10] : memref<16x32xf32, #tpu.memory_space<vmem>>, vector<16x32xf32>
    tpu.vector_store %arg3[%c0_9, %c0_10], %24 {strides = array<i32>} : memref<16x32xf32, #tpu.memory_space<vmem>>, vector<16x32xf32>,
    return
  }
}

module attributes {stable_mosaic.version = 11 : i64} {
  func.func @_attn_block_kernel(%arg0: memref<16x32xf32, #tpu.memory_space<vmem>>, %arg1: memref<16x32xf32, #tpu.memory_space<vmem>>, %arg2: memref<16x16xf32, #tpu.memory_space<vmem>>, %arg3: memref<32x32xbf16, #tpu.memory_space<vmem>>, %arg4: memref<1x32xf32, #tpu.memory_space<vmem>>, %arg5: memref<32x32xbf16, #tpu.memory_space<vmem>>, %arg6: memref<1x32xf32, #tpu.memory_space<vmem>>, %arg7: memref<32x32xbf16, #tpu.memory_space<vmem>>, %arg8: memref<1x32xf32, #tpu.memory_space<vmem>>, %arg9: memref<32x32xf32, #tpu.memory_space<vmem>>, %arg10: memref<1x32xf32, #tpu.memory_space<vmem>>, %arg11: memref<1x32xf32, #tpu.memory_space<vmem>>, %arg12: memref<1x32xf32, #tpu.memory_space<vmem>>, %arg13: memref<16x32xf32, #tpu.memory_space<vmem>>) attributes {dimension_semantics = [], scalar_prefetch = 0 : i64, scratch_operands = 0 : i64, tpu.core_type = #tpu.core_type<tc>} {
    %c0 = arith.constant 0 : index
    %c0_0 = arith.constant 0 : index
    %0 = vector.load %arg0[%c0, %c0_0] : memref<16x32xf32, #tpu.memory_space<vmem>>, vector<16x32xf32>
    %c0_1 = arith.constant 0 : index
    %c0_2 = arith.constant 0 : index
    %1 = vector.load %arg1[%c0_1, %c0_2] : memref<16x32xf32, #tpu.memory_space<vmem>>, vector<16x32xf32>
    %2 = arith.truncf %0 : vector<16x32xf32> to vector<16x32xbf16>
    %c0_3 = arith.constant 0 : index
    %c0_4 = arith.constant 0 : index
    %3 = vector.load %arg3[%c0_3, %c0_4] : memref<32x32xbf16, #tpu.memory_space<vmem>>, vector<32x32xbf16>
    %cst = arith.constant dense<0.000000e+00> : vector<16x32xf32>
    %4 = tpu.matmul %2, %3, %cst {dimension_numbers = #tpu.dot_dimension_numbers<[1], [0], [0], [1], [0, 0, 1, 1], [], []>} : vector<16x32xbf16>, vector<32x32xbf16>, vector<16x32xf32> -> vector<16x32xf32>
    %c0_5 = arith.constant 0 : index
    %c0_6 = arith.constant 0 : index
    %5 = vector.load %arg4[%c0_5, %c0_6] : memref<1x32xf32, #tpu.memory_space<vmem>>, vector<1x32xf32>
    %6 = vector.broadcast %5 : vector<1x32xf32> to vector<16x32xf32>
    %7 = arith.addf %4, %6 : vector<16x32xf32>
    %8 = arith.truncf %1 : vector<16x32xf32> to vector<16x32xbf16>
    %c0_7 = arith.constant 0 : index
    %c0_8 = arith.constant 0 : index
    %9 = vector.load %arg5[%c0_7, %c0_8] : memref<32x32xbf16, #tpu.memory_space<vmem>>, vector<32x32xbf16>
    %cst_9 = arith.constant dense<0.000000e+00> : vector<16x32xf32>
    %10 = tpu.matmul %8, %9, %cst_9 {dimension_numbers = #tpu.dot_dimension_numbers<[1], [0], [0], [1], [0, 0, 1, 1], [], []>} : vector<16x32xbf16>, vector<32x32xbf16>, vector<16x32xf32> -> vector<16x32xf32>
    %c0_10 = arith.constant 0 : index
    %c0_11 = arith.constant 0 : index
    %11 = vector.load %arg6[%c0_10, %c0_11] : memref<1x32xf32, #tpu.memory_space<vmem>>, vector<1x32xf32>
    %12 = vector.broadcast %11 : vector<1x32xf32> to vector<16x32xf32>
    %13 = arith.addf %10, %12 : vector<16x32xf32>
    %14 = arith.truncf %1 : vector<16x32xf32> to vector<16x32xbf16>
    %c0_12 = arith.constant 0 : index
    %c0_13 = arith.constant 0 : index
    %15 = vector.load %arg7[%c0_12, %c0_13] : memref<32x32xbf16, #tpu.memory_space<vmem>>, vector<32x32xbf16>
    %cst_14 = arith.constant dense<0.000000e+00> : vector<16x32xf32>
    %16 = tpu.matmul %14, %15, %cst_14 {dimension_numbers = #tpu.dot_dimension_numbers<[1], [0], [0], [1], [0, 0, 1, 1], [], []>} : vector<16x32xbf16>, vector<32x32xbf16>, vector<16x32xf32> -> vector<16x32xf32>
    %c0_15 = arith.constant 0 : index
    %c0_16 = arith.constant 0 : index
    %17 = vector.load %arg8[%c0_15, %c0_16] : memref<1x32xf32, #tpu.memory_space<vmem>>, vector<1x32xf32>
    %18 = vector.broadcast %17 : vector<1x32xf32> to vector<16x32xf32>
    %19 = arith.addf %16, %18 : vector<16x32xf32>
    %c0_17 = arith.constant 0 : index
    %c0_18 = arith.constant 0 : index
    %20 = vector.load %arg2[%c0_17, %c0_18] : memref<16x16xf32, #tpu.memory_space<vmem>>, vector<16x16xf32>
    %c0_19 = arith.constant 0 : index
    %c0_20 = arith.constant 0 : index
    %21 = vector.load %arg9[%c0_19, %c0_20] : memref<32x32xf32, #tpu.memory_space<vmem>>, vector<32x32xf32>
    %22 = vector.extract_strided_slice %7 {offsets = [0, 0], sizes = [16, 8], strides = [1, 1]} : vector<16x32xf32> to vector<16x8xf32>
    %cst_21 = arith.constant 0.353553385 : f32
    %23 = vector.broadcast %cst_21 : f32 to vector<16x8xf32>
    %24 = arith.mulf %22, %23 : vector<16x8xf32>
    %25 = arith.truncf %24 : vector<16x8xf32> to vector<16x8xbf16>
    %26 = vector.extract_strided_slice %13 {offsets = [0, 0], sizes = [16, 8], strides = [1, 1]} : vector<16x32xf32> to vector<16x8xf32>
    %27 = arith.truncf %26 : vector<16x8xf32> to vector<16x8xbf16>
    %28 = vector.extract_strided_slice %19 {offsets = [0, 0], sizes = [16, 8], strides = [1, 1]} : vector<16x32xf32> to vector<16x8xf32>
    %29 = arith.truncf %28 : vector<16x8xf32> to vector<16x8xbf16>
    %cst_22 = arith.constant dense<0.000000e+00> : vector<16x16xf32>
    %30 = tpu.matmul %25, %27, %cst_22 {dimension_numbers = #tpu.dot_dimension_numbers<[1], [1], [0], [0], [0, 0, 1, 0], [], []>} : vector<16x8xbf16>, vector<16x8xbf16>, vector<16x16xf32> -> vector<16x16xf32>
    %31 = arith.addf %30, %20 : vector<16x16xf32>
    %cst_23 = arith.constant dense<0xFF800000> : vector<16xf32>
    %32 = vector.multi_reduction <maximumf>, %31, %cst_23 [1] : vector<16x16xf32> to vector<16xf32>
    %33 = vector.shape_cast %32 : vector<16xf32> to vector<16x1xf32>
    %34 = vector.broadcast %33 : vector<16x1xf32> to vector<16x16xf32>
    %35 = arith.subf %31, %34 : vector<16x16xf32>
    %36 = math.exp %35 : vector<16x16xf32>
    %cst_24 = arith.constant dense<0.000000e+00> : vector<16xf32>
    %37 = vector.multi_reduction <add>, %36, %cst_24 [1] : vector<16x16xf32> to vector<16xf32>
    %38 = vector.shape_cast %37 : vector<16xf32> to vector<16x1xf32>
    %39 = tpu.reciprocal %38 {approx = true} : vector<16x1xf32> -> vector<16x1xf32>
    %40 = vector.broadcast %39 : vector<16x1xf32> to vector<16x16xf32>
    %41 = arith.mulf %36, %40 : vector<16x16xf32>
    %42 = arith.truncf %41 : vector<16x16xf32> to vector<16x16xbf16>
    %cst_25 = arith.constant dense<0.000000e+00> : vector<16x8xf32>
    %43 = tpu.matmul %42, %29, %cst_25 {dimension_numbers = #tpu.dot_dimension_numbers<[1], [0], [0], [1], [0, 0, 1, 1], [], []>} : vector<16x16xbf16>, vector<16x8xbf16>, vector<16x8xf32> -> vector<16x8xf32>
    %44 = vector.extract_strided_slice %21 {offsets = [0, 0], sizes = [8, 32], strides = [1, 1]} : vector<32x32xf32> to vector<8x32xf32>
    %cst_26 = arith.constant dense<0.000000e+00> : vector<16x32xf32>
    %45 = tpu.matmul %43, %44, %cst_26 {dimension_numbers = #tpu.dot_dimension_numbers<[1], [0], [0], [1], [0, 0, 1, 1], [], []>} : vector<16x8xf32>, vector<8x32xf32>, vector<16x32xf32> -> vector<16x32xf32>
    %46 = vector.extract_strided_slice %7 {offsets = [0, 8], sizes = [16, 8], strides = [1, 1]} : vector<16x32xf32> to vector<16x8xf32>
    %cst_27 = arith.constant 0.353553385 : f32
    %47 = vector.broadcast %cst_27 : f32 to vector<16x8xf32>
    %48 = arith.mulf %46, %47 : vector<16x8xf32>
    %49 = arith.truncf %48 : vector<16x8xf32> to vector<16x8xbf16>
    %50 = vector.extract_strided_slice %13 {offsets = [0, 8], sizes = [16, 8], strides = [1, 1]} : vector<16x32xf32> to vector<16x8xf32>
    %51 = arith.truncf %50 : vector<16x8xf32> to vector<16x8xbf16>
    %52 = vector.extract_strided_slice %19 {offsets = [0, 8], sizes = [16, 8], strides = [1, 1]} : vector<16x32xf32> to vector<16x8xf32>
    %53 = arith.truncf %52 : vector<16x8xf32> to vector<16x8xbf16>
    %cst_28 = arith.constant dense<0.000000e+00> : vector<16x16xf32>
    %54 = tpu.matmul %49, %51, %cst_28 {dimension_numbers = #tpu.dot_dimension_numbers<[1], [1], [0], [0], [0, 0, 1, 0], [], []>} : vector<16x8xbf16>, vector<16x8xbf16>, vector<16x16xf32> -> vector<16x16xf32>
    %55 = arith.addf %54, %20 : vector<16x16xf32>
    %cst_29 = arith.constant dense<0xFF800000> : vector<16xf32>
    %56 = vector.multi_reduction <maximumf>, %55, %cst_29 [1] : vector<16x16xf32> to vector<16xf32>
    %57 = vector.shape_cast %56 : vector<16xf32> to vector<16x1xf32>
    %58 = vector.broadcast %57 : vector<16x1xf32> to vector<16x16xf32>
    %59 = arith.subf %55, %58 : vector<16x16xf32>
    %60 = math.exp %59 : vector<16x16xf32>
    %cst_30 = arith.constant dense<0.000000e+00> : vector<16xf32>
    %61 = vector.multi_reduction <add>, %60, %cst_30 [1] : vector<16x16xf32> to vector<16xf32>
    %62 = vector.shape_cast %61 : vector<16xf32> to vector<16x1xf32>
    %63 = tpu.reciprocal %62 {approx = true} : vector<16x1xf32> -> vector<16x1xf32>
    %64 = vector.broadcast %63 : vector<16x1xf32> to vector<16x16xf32>
    %65 = arith.mulf %60, %64 : vector<16x16xf32>
    %66 = arith.truncf %65 : vector<16x16xf32> to vector<16x16xbf16>
    %cst_31 = arith.constant dense<0.000000e+00> : vector<16x8xf32>
    %67 = tpu.matmul %66, %53, %cst_31 {dimension_numbers = #tpu.dot_dimension_numbers<[1], [0], [0], [1], [0, 0, 1, 1], [], []>} : vector<16x16xbf16>, vector<16x8xbf16>, vector<16x8xf32> -> vector<16x8xf32>
    %68 = vector.extract_strided_slice %21 {offsets = [8, 0], sizes = [8, 32], strides = [1, 1]} : vector<32x32xf32> to vector<8x32xf32>
    %cst_32 = arith.constant dense<0.000000e+00> : vector<16x32xf32>
    %69 = tpu.matmul %67, %68, %cst_32 {dimension_numbers = #tpu.dot_dimension_numbers<[1], [0], [0], [1], [0, 0, 1, 1], [], []>} : vector<16x8xf32>, vector<8x32xf32>, vector<16x32xf32> -> vector<16x32xf32>
    %70 = arith.addf %45, %69 : vector<16x32xf32>
    %71 = vector.extract_strided_slice %7 {offsets = [0, 16], sizes = [16, 8], strides = [1, 1]} : vector<16x32xf32> to vector<16x8xf32>
    %cst_33 = arith.constant 0.353553385 : f32
    %72 = vector.broadcast %cst_33 : f32 to vector<16x8xf32>
    %73 = arith.mulf %71, %72 : vector<16x8xf32>
    %74 = arith.truncf %73 : vector<16x8xf32> to vector<16x8xbf16>
    %75 = vector.extract_strided_slice %13 {offsets = [0, 16], sizes = [16, 8], strides = [1, 1]} : vector<16x32xf32> to vector<16x8xf32>
    %76 = arith.truncf %75 : vector<16x8xf32> to vector<16x8xbf16>
    %77 = vector.extract_strided_slice %19 {offsets = [0, 16], sizes = [16, 8], strides = [1, 1]} : vector<16x32xf32> to vector<16x8xf32>
    %78 = arith.truncf %77 : vector<16x8xf32> to vector<16x8xbf16>
    %cst_34 = arith.constant dense<0.000000e+00> : vector<16x16xf32>
    %79 = tpu.matmul %74, %76, %cst_34 {dimension_numbers = #tpu.dot_dimension_numbers<[1], [1], [0], [0], [0, 0, 1, 0], [], []>} : vector<16x8xbf16>, vector<16x8xbf16>, vector<16x16xf32> -> vector<16x16xf32>
    %80 = arith.addf %79, %20 : vector<16x16xf32>
    %cst_35 = arith.constant dense<0xFF800000> : vector<16xf32>
    %81 = vector.multi_reduction <maximumf>, %80, %cst_35 [1] : vector<16x16xf32> to vector<16xf32>
    %82 = vector.shape_cast %81 : vector<16xf32> to vector<16x1xf32>
    %83 = vector.broadcast %82 : vector<16x1xf32> to vector<16x16xf32>
    %84 = arith.subf %80, %83 : vector<16x16xf32>
    %85 = math.exp %84 : vector<16x16xf32>
    %cst_36 = arith.constant dense<0.000000e+00> : vector<16xf32>
    %86 = vector.multi_reduction <add>, %85, %cst_36 [1] : vector<16x16xf32> to vector<16xf32>
    %87 = vector.shape_cast %86 : vector<16xf32> to vector<16x1xf32>
    %88 = tpu.reciprocal %87 {approx = true} : vector<16x1xf32> -> vector<16x1xf32>
    %89 = vector.broadcast %88 : vector<16x1xf32> to vector<16x16xf32>
    %90 = arith.mulf %85, %89 : vector<16x16xf32>
    %91 = arith.truncf %90 : vector<16x16xf32> to vector<16x16xbf16>
    %cst_37 = arith.constant dense<0.000000e+00> : vector<16x8xf32>
    %92 = tpu.matmul %91, %78, %cst_37 {dimension_numbers = #tpu.dot_dimension_numbers<[1], [0], [0], [1], [0, 0, 1, 1], [], []>} : vector<16x16xbf16>, vector<16x8xbf16>, vector<16x8xf32> -> vector<16x8xf32>
    %93 = vector.extract_strided_slice %21 {offsets = [16, 0], sizes = [8, 32], strides = [1, 1]} : vector<32x32xf32> to vector<8x32xf32>
    %cst_38 = arith.constant dense<0.000000e+00> : vector<16x32xf32>
    %94 = tpu.matmul %92, %93, %cst_38 {dimension_numbers = #tpu.dot_dimension_numbers<[1], [0], [0], [1], [0, 0, 1, 1], [], []>} : vector<16x8xf32>, vector<8x32xf32>, vector<16x32xf32> -> vector<16x32xf32>
    %95 = arith.addf %70, %94 : vector<16x32xf32>
    %96 = vector.extract_strided_slice %7 {offsets = [0, 24], sizes = [16, 8], strides = [1, 1]} : vector<16x32xf32> to vector<16x8xf32>
    %cst_39 = arith.constant 0.353553385 : f32
    %97 = vector.broadcast %cst_39 : f32 to vector<16x8xf32>
    %98 = arith.mulf %96, %97 : vector<16x8xf32>
    %99 = arith.truncf %98 : vector<16x8xf32> to vector<16x8xbf16>
    %100 = vector.extract_strided_slice %13 {offsets = [0, 24], sizes = [16, 8], strides = [1, 1]} : vector<16x32xf32> to vector<16x8xf32>
    %101 = arith.truncf %100 : vector<16x8xf32> to vector<16x8xbf16>
    %102 = vector.extract_strided_slice %19 {offsets = [0, 24], sizes = [16, 8], strides = [1, 1]} : vector<16x32xf32> to vector<16x8xf32>
    %103 = arith.truncf %102 : vector<16x8xf32> to vector<16x8xbf16>
    %cst_40 = arith.constant dense<0.000000e+00> : vector<16x16xf32>
    %104 = tpu.matmul %99, %101, %cst_40 {dimension_numbers = #tpu.dot_dimension_numbers<[1], [1], [0], [0], [0, 0, 1, 0], [], []>} : vector<16x8xbf16>, vector<16x8xbf16>, vector<16x16xf32> -> vector<16x16xf32>
    %105 = arith.addf %104, %20 : vector<16x16xf32>
    %cst_41 = arith.constant dense<0xFF800000> : vector<16xf32>
    %106 = vector.multi_reduction <maximumf>, %105, %cst_41 [1] : vector<16x16xf32> to vector<16xf32>
    %107 = vector.shape_cast %106 : vector<16xf32> to vector<16x1xf32>
    %108 = vector.broadcast %107 : vector<16x1xf32> to vector<16x16xf32>
    %109 = arith.subf %105, %108 : vector<16x16xf32>
    %110 = math.exp %109 : vector<16x16xf32>
    %cst_42 = arith.constant dense<0.000000e+00> : vector<16xf32>
    %111 = vector.multi_reduction <add>, %110, %cst_42 [1] : vector<16x16xf32> to vector<16xf32>
    %112 = vector.shape_cast %111 : vector<16xf32> to vector<16x1xf32>
    %113 = tpu.reciprocal %112 {approx = true} : vector<16x1xf32> -> vector<16x1xf32>
    %114 = vector.broadcast %113 : vector<16x1xf32> to vector<16x16xf32>
    %115 = arith.mulf %110, %114 : vector<16x16xf32>
    %116 = arith.truncf %115 : vector<16x16xf32> to vector<16x16xbf16>
    %cst_43 = arith.constant dense<0.000000e+00> : vector<16x8xf32>
    %117 = tpu.matmul %116, %103, %cst_43 {dimension_numbers = #tpu.dot_dimension_numbers<[1], [0], [0], [1], [0, 0, 1, 1], [], []>} : vector<16x16xbf16>, vector<16x8xbf16>, vector<16x8xf32> -> vector<16x8xf32>
    %118 = vector.extract_strided_slice %21 {offsets = [24, 0], sizes = [8, 32], strides = [1, 1]} : vector<32x32xf32> to vector<8x32xf32>
    %cst_44 = arith.constant dense<0.000000e+00> : vector<16x32xf32>
    %119 = tpu.matmul %117, %118, %cst_44 {dimension_numbers = #tpu.dot_dimension_numbers<[1], [0], [0], [1], [0, 0, 1, 1], [], []>} : vector<16x8xf32>, vector<8x32xf32>, vector<16x32xf32> -> vector<16x32xf32>
    %120 = arith.addf %95, %119 : vector<16x32xf32>
    %121 = arith.addf %0, %120 : vector<16x32xf32>
    %c0_45 = arith.constant 0 : index
    %c0_46 = arith.constant 0 : index
    %122 = vector.load %arg10[%c0_45, %c0_46] : memref<1x32xf32, #tpu.memory_space<vmem>>, vector<1x32xf32>
    %123 = vector.broadcast %122 : vector<1x32xf32> to vector<16x32xf32>
    %124 = arith.addf %121, %123 : vector<16x32xf32>
    %cst_47 = arith.constant dense<0.000000e+00> : vector<16xf32>
    %125 = vector.multi_reduction <add>, %124, %cst_47 [1] : vector<16x32xf32> to vector<16xf32>
    %126 = vector.shape_cast %125 : vector<16xf32> to vector<16x1xf32>
    %cst_48 = arith.constant 3.200000e+01 : f32
    %127 = vector.broadcast %cst_48 : f32 to vector<16x1xf32>
    %128 = arith.divf %126, %127 : vector<16x1xf32>
    %129 = vector.broadcast %128 : vector<16x1xf32> to vector<16x32xf32>
    %130 = arith.subf %124, %129 : vector<16x32xf32>
    %131 = arith.mulf %130, %130 : vector<16x32xf32>
    %cst_49 = arith.constant dense<0.000000e+00> : vector<16xf32>
    %132 = vector.multi_reduction <add>, %131, %cst_49 [1] : vector<16x32xf32> to vector<16xf32>
    %133 = vector.shape_cast %132 : vector<16xf32> to vector<16x1xf32>
    %cst_50 = arith.constant 3.200000e+01 : f32
    %134 = vector.broadcast %cst_50 : f32 to vector<16x1xf32>
    %135 = arith.divf %133, %134 : vector<16x1xf32>
    %136 = vector.broadcast %128 : vector<16x1xf32> to vector<16x32xf32>
    %137 = arith.subf %124, %136 : vector<16x32xf32>
    %cst_51 = arith.constant 9.99999974E-6 : f32
    %138 = vector.broadcast %cst_51 : f32 to vector<16x1xf32>
    %139 = arith.addf %135, %138 : vector<16x1xf32>
    %140 = math.rsqrt %139 : vector<16x1xf32>
    %141 = vector.broadcast %140 : vector<16x1xf32> to vector<16x32xf32>
    %142 = arith.mulf %137, %141 : vector<16x32xf32>
    %c0_52 = arith.constant 0 : index
    %c0_53 = arith.constant 0 : index
    %143 = vector.load %arg11[%c0_52, %c0_53] : memref<1x32xf32, #tpu.memory_space<vmem>>, vector<1x32xf32>
    %144 = vector.broadcast %143 : vector<1x32xf32> to vector<16x32xf32>
    %145 = arith.mulf %142, %144 : vector<16x32xf32>
    %c0_54 = arith.constant 0 : index
    %c0_55 = arith.constant 0 : index
    %146 = vector.load %arg12[%c0_54, %c0_55] : memref<1x32xf32, #tpu.memory_space<vmem>>, vector<1x32xf32>
    %147 = vector.broadcast %146 : vector<1x32xf32> to vector<16x32xf32>
    %148 = arith.addf %145, %147 : vector<16x32xf32>
    %c0_56 = arith.constant 0 : index
    %c0_57 = arith.constant 0 : index
    %149 = vector.load %arg13[%c0_56, %c0_57] : memref<16x32xf32, #tpu.memory_space<vmem>>, vector<16x32xf32>
    tpu.vector_store %arg13[%c0_56, %c0_57], %148 {strides = array<i32>} : memref<16x32xf32, #tpu.memory_space<vmem>>, vector<16x32xf32>,
    return
  }
}

module attributes {stable_mosaic.version = 11 : i64} {
  func.func @_ffn_block_kernel(%arg0: memref<16x32xf32, #tpu.memory_space<vmem>>, %arg1: memref<32x128xbf16, #tpu.memory_space<vmem>>, %arg2: memref<1x128xf32, #tpu.memory_space<vmem>>, %arg3: memref<128x32xbf16, #tpu.memory_space<vmem>>, %arg4: memref<1x32xf32, #tpu.memory_space<vmem>>, %arg5: memref<1x32xf32, #tpu.memory_space<vmem>>, %arg6: memref<1x32xf32, #tpu.memory_space<vmem>>, %arg7: memref<16x32xf32, #tpu.memory_space<vmem>>) attributes {dimension_semantics = [], scalar_prefetch = 0 : i64, scratch_operands = 0 : i64, tpu.core_type = #tpu.core_type<tc>} {
    %c0 = arith.constant 0 : index
    %c0_0 = arith.constant 0 : index
    %0 = vector.load %arg0[%c0, %c0_0] : memref<16x32xf32, #tpu.memory_space<vmem>>, vector<16x32xf32>
    %1 = arith.truncf %0 : vector<16x32xf32> to vector<16x32xbf16>
    %c0_1 = arith.constant 0 : index
    %c0_2 = arith.constant 0 : index
    %2 = vector.load %arg1[%c0_1, %c0_2] : memref<32x128xbf16, #tpu.memory_space<vmem>>, vector<32x128xbf16>
    %cst = arith.constant dense<0.000000e+00> : vector<16x128xf32>
    %3 = tpu.matmul %1, %2, %cst {dimension_numbers = #tpu.dot_dimension_numbers<[1], [0], [0], [1], [0, 0, 1, 1], [], []>} : vector<16x32xbf16>, vector<32x128xbf16>, vector<16x128xf32> -> vector<16x128xf32>
    %c0_3 = arith.constant 0 : index
    %c0_4 = arith.constant 0 : index
    %4 = vector.load %arg2[%c0_3, %c0_4] : memref<1x128xf32, #tpu.memory_space<vmem>>, vector<1x128xf32>
    %5 = vector.broadcast %4 : vector<1x128xf32> to vector<16x128xf32>
    %6 = arith.addf %3, %5 : vector<16x128xf32>
    %cst_5 = arith.constant 5.000000e-01 : f32
    %7 = vector.broadcast %cst_5 : f32 to vector<16x128xf32>
    %8 = arith.mulf %7, %6 : vector<16x128xf32>
    %cst_6 = arith.constant 4.471500e-02 : f32
    %9 = vector.broadcast %cst_6 : f32 to vector<16x128xf32>
    %10 = arith.mulf %9, %6 : vector<16x128xf32>
    %11 = arith.mulf %10, %6 : vector<16x128xf32>
    %12 = arith.mulf %11, %6 : vector<16x128xf32>
    %13 = arith.addf %6, %12 : vector<16x128xf32>
    %cst_7 = arith.constant 0.797884583 : f32
    %14 = vector.broadcast %cst_7 : f32 to vector<16x128xf32>
    %15 = arith.mulf %14, %13 : vector<16x128xf32>
    %16 = math.tanh %15 : vector<16x128xf32>
    %cst_8 = arith.constant 1.000000e+00 : f32
    %17 = vector.broadcast %cst_8 : f32 to vector<16x128xf32>
    %18 = arith.addf %17, %16 : vector<16x128xf32>
    %19 = arith.mulf %8, %18 : vector<16x128xf32>
    %20 = arith.truncf %19 : vector<16x128xf32> to vector<16x128xbf16>
    %c0_9 = arith.constant 0 : index
    %c0_10 = arith.constant 0 : index
    %21 = vector.load %arg3[%c0_9, %c0_10] : memref<128x32xbf16, #tpu.memory_space<vmem>>, vector<128x32xbf16>
    %cst_11 = arith.constant dense<0.000000e+00> : vector<16x32xf32>
    %22 = tpu.matmul %20, %21, %cst_11 {dimension_numbers = #tpu.dot_dimension_numbers<[1], [0], [0], [1], [0, 0, 1, 1], [], []>} : vector<16x128xbf16>, vector<128x32xbf16>, vector<16x32xf32> -> vector<16x32xf32>
    %c0_12 = arith.constant 0 : index
    %c0_13 = arith.constant 0 : index
    %23 = vector.load %arg4[%c0_12, %c0_13] : memref<1x32xf32, #tpu.memory_space<vmem>>, vector<1x32xf32>
    %24 = vector.broadcast %23 : vector<1x32xf32> to vector<16x32xf32>
    %25 = arith.addf %22, %24 : vector<16x32xf32>
    %26 = arith.addf %0, %25 : vector<16x32xf32>
    %cst_14 = arith.constant dense<0.000000e+00> : vector<16xf32>
    %27 = vector.multi_reduction <add>, %26, %cst_14 [1] : vector<16x32xf32> to vector<16xf32>
    %28 = vector.shape_cast %27 : vector<16xf32> to vector<16x1xf32>
    %cst_15 = arith.constant 3.200000e+01 : f32
    %29 = vector.broadcast %cst_15 : f32 to vector<16x1xf32>
    %30 = arith.divf %28, %29 : vector<16x1xf32>
    %31 = vector.broadcast %30 : vector<16x1xf32> to vector<16x32xf32>
    %32 = arith.subf %26, %31 : vector<16x32xf32>
    %33 = arith.mulf %32, %32 : vector<16x32xf32>
    %cst_16 = arith.constant dense<0.000000e+00> : vector<16xf32>
    %34 = vector.multi_reduction <add>, %33, %cst_16 [1] : vector<16x32xf32> to vector<16xf32>
    %35 = vector.shape_cast %34 : vector<16xf32> to vector<16x1xf32>
    %cst_17 = arith.constant 3.200000e+01 : f32
    %36 = vector.broadcast %cst_17 : f32 to vector<16x1xf32>
    %37 = arith.divf %35, %36 : vector<16x1xf32>
    %38 = vector.broadcast %30 : vector<16x1xf32> to vector<16x32xf32>
    %39 = arith.subf %26, %38 : vector<16x32xf32>
    %cst_18 = arith.constant 9.99999974E-6 : f32
    %40 = vector.broadcast %cst_18 : f32 to vector<16x1xf32>
    %41 = arith.addf %37, %40 : vector<16x1xf32>
    %42 = math.rsqrt %41 : vector<16x1xf32>
    %43 = vector.broadcast %42 : vector<16x1xf32> to vector<16x32xf32>
    %44 = arith.mulf %39, %43 : vector<16x32xf32>
    %c0_19 = arith.constant 0 : index
    %c0_20 = arith.constant 0 : index
    %45 = vector.load %arg5[%c0_19, %c0_20] : memref<1x32xf32, #tpu.memory_space<vmem>>, vector<1x32xf32>
    %46 = vector.broadcast %45 : vector<1x32xf32> to vector<16x32xf32>
    %47 = arith.mulf %44, %46 : vector<16x32xf32>
    %c0_21 = arith.constant 0 : index
    %c0_22 = arith.constant 0 : index
    %48 = vector.load %arg6[%c0_21, %c0_22] : memref<1x32xf32, #tpu.memory_space<vmem>>, vector<1x32xf32>
    %49 = vector.broadcast %48 : vector<1x32xf32> to vector<16x32xf32>
    %50 = arith.addf %47, %49 : vector<16x32xf32>
    %c0_23 = arith.constant 0 : index
    %c0_24 = arith.constant 0 : index
    %51 = vector.load %arg7[%c0_23, %c0_24] : memref<16x32xf32, #tpu.memory_space<vmem>>, vector<16x32xf32>
    tpu.vector_store %arg7[%c0_23, %c0_24], %50 {strides = array<i32>} : memref<16x32xf32, #tpu.memory_space<vmem>>, vector<16x32xf32>,
    return
  }
}

module attributes {stable_mosaic.version = 11 : i64} {
  func.func @_layernorm_kernel(%arg0: memref<16x32xf32, #tpu.memory_space<vmem>>, %arg1: memref<1x32xf32, #tpu.memory_space<vmem>>, %arg2: memref<1x32xf32, #tpu.memory_space<vmem>>, %arg3: memref<16x32xf32, #tpu.memory_space<vmem>>) attributes {dimension_semantics = [], scalar_prefetch = 0 : i64, scratch_operands = 0 : i64, tpu.core_type = #tpu.core_type<tc>} {
    %c0 = arith.constant 0 : index
    %c0_0 = arith.constant 0 : index
    %0 = vector.load %arg0[%c0, %c0_0] : memref<16x32xf32, #tpu.memory_space<vmem>>, vector<16x32xf32>
    %cst = arith.constant dense<0.000000e+00> : vector<16xf32>
    %1 = vector.multi_reduction <add>, %0, %cst [1] : vector<16x32xf32> to vector<16xf32>
    %2 = vector.shape_cast %1 : vector<16xf32> to vector<16x1xf32>
    %cst_1 = arith.constant 3.200000e+01 : f32
    %3 = vector.broadcast %cst_1 : f32 to vector<16x1xf32>
    %4 = arith.divf %2, %3 : vector<16x1xf32>
    %5 = vector.broadcast %4 : vector<16x1xf32> to vector<16x32xf32>
    %6 = arith.subf %0, %5 : vector<16x32xf32>
    %7 = arith.mulf %6, %6 : vector<16x32xf32>
    %cst_2 = arith.constant dense<0.000000e+00> : vector<16xf32>
    %8 = vector.multi_reduction <add>, %7, %cst_2 [1] : vector<16x32xf32> to vector<16xf32>
    %9 = vector.shape_cast %8 : vector<16xf32> to vector<16x1xf32>
    %cst_3 = arith.constant 3.200000e+01 : f32
    %10 = vector.broadcast %cst_3 : f32 to vector<16x1xf32>
    %11 = arith.divf %9, %10 : vector<16x1xf32>
    %12 = vector.broadcast %4 : vector<16x1xf32> to vector<16x32xf32>
    %13 = arith.subf %0, %12 : vector<16x32xf32>
    %cst_4 = arith.constant 9.99999996E-13 : f32
    %14 = vector.broadcast %cst_4 : f32 to vector<16x1xf32>
    %15 = arith.addf %11, %14 : vector<16x1xf32>
    %16 = math.rsqrt %15 : vector<16x1xf32>
    %17 = vector.broadcast %16 : vector<16x1xf32> to vector<16x32xf32>
    %18 = arith.mulf %13, %17 : vector<16x32xf32>
    %c0_5 = arith.constant 0 : index
    %c0_6 = arith.constant 0 : index
    %19 = vector.load %arg1[%c0_5, %c0_6] : memref<1x32xf32, #tpu.memory_space<vmem>>, vector<1x32xf32>
    %20 = vector.broadcast %19 : vector<1x32xf32> to vector<16x32xf32>
    %21 = arith.mulf %18, %20 : vector<16x32xf32>
    %c0_7 = arith.constant 0 : index
    %c0_8 = arith.constant 0 : index
    %22 = vector.load %arg2[%c0_7, %c0_8] : memref<1x32xf32, #tpu.memory_space<vmem>>, vector<1x32xf32>
    %23 = vector.broadcast %22 : vector<1x32xf32> to vector<16x32xf32>
    %24 = arith.addf %21, %23 : vector<16x32xf32>
    %c0_9 = arith.constant 0 : index
    %c0_10 = arith.constant 0 : index
    %25 = vector.load %arg3[%c0_9, %c0_10] : memref<16x32xf32, #tpu.memory_space<vmem>>, vector<16x32xf32>
    tpu.vector_store %arg3[%c0_9, %c0_10], %24 {strides = array<i32>} : memref<16x32xf32, #tpu.memory_space<vmem>>, vector<16x32xf32>,
    return
  }
}

module attributes {stable_mosaic.version = 11 : i64} {
  func.func @_attn_block_kernel(%arg0: memref<16x32xf32, #tpu.memory_space<vmem>>, %arg1: memref<16x32xf32, #tpu.memory_space<vmem>>, %arg2: memref<16x16xf32, #tpu.memory_space<vmem>>, %arg3: memref<32x32xbf16, #tpu.memory_space<vmem>>, %arg4: memref<1x32xf32, #tpu.memory_space<vmem>>, %arg5: memref<32x32xbf16, #tpu.memory_space<vmem>>, %arg6: memref<1x32xf32, #tpu.memory_space<vmem>>, %arg7: memref<32x32xbf16, #tpu.memory_space<vmem>>, %arg8: memref<1x32xf32, #tpu.memory_space<vmem>>, %arg9: memref<32x32xf32, #tpu.memory_space<vmem>>, %arg10: memref<1x32xf32, #tpu.memory_space<vmem>>, %arg11: memref<1x32xf32, #tpu.memory_space<vmem>>, %arg12: memref<1x32xf32, #tpu.memory_space<vmem>>, %arg13: memref<16x32xf32, #tpu.memory_space<vmem>>) attributes {dimension_semantics = [], scalar_prefetch = 0 : i64, scratch_operands = 0 : i64, tpu.core_type = #tpu.core_type<tc>} {
    %c0 = arith.constant 0 : index
    %c0_0 = arith.constant 0 : index
    %0 = vector.load %arg0[%c0, %c0_0] : memref<16x32xf32, #tpu.memory_space<vmem>>, vector<16x32xf32>
    %c0_1 = arith.constant 0 : index
    %c0_2 = arith.constant 0 : index
    %1 = vector.load %arg1[%c0_1, %c0_2] : memref<16x32xf32, #tpu.memory_space<vmem>>, vector<16x32xf32>
    %2 = arith.truncf %0 : vector<16x32xf32> to vector<16x32xbf16>
    %c0_3 = arith.constant 0 : index
    %c0_4 = arith.constant 0 : index
    %3 = vector.load %arg3[%c0_3, %c0_4] : memref<32x32xbf16, #tpu.memory_space<vmem>>, vector<32x32xbf16>
    %cst = arith.constant dense<0.000000e+00> : vector<16x32xf32>
    %4 = tpu.matmul %2, %3, %cst {dimension_numbers = #tpu.dot_dimension_numbers<[1], [0], [0], [1], [0, 0, 1, 1], [], []>} : vector<16x32xbf16>, vector<32x32xbf16>, vector<16x32xf32> -> vector<16x32xf32>
    %c0_5 = arith.constant 0 : index
    %c0_6 = arith.constant 0 : index
    %5 = vector.load %arg4[%c0_5, %c0_6] : memref<1x32xf32, #tpu.memory_space<vmem>>, vector<1x32xf32>
    %6 = vector.broadcast %5 : vector<1x32xf32> to vector<16x32xf32>
    %7 = arith.addf %4, %6 : vector<16x32xf32>
    %8 = arith.truncf %1 : vector<16x32xf32> to vector<16x32xbf16>
    %c0_7 = arith.constant 0 : index
    %c0_8 = arith.constant 0 : index
    %9 = vector.load %arg5[%c0_7, %c0_8] : memref<32x32xbf16, #tpu.memory_space<vmem>>, vector<32x32xbf16>
    %cst_9 = arith.constant dense<0.000000e+00> : vector<16x32xf32>
    %10 = tpu.matmul %8, %9, %cst_9 {dimension_numbers = #tpu.dot_dimension_numbers<[1], [0], [0], [1], [0, 0, 1, 1], [], []>} : vector<16x32xbf16>, vector<32x32xbf16>, vector<16x32xf32> -> vector<16x32xf32>
    %c0_10 = arith.constant 0 : index
    %c0_11 = arith.constant 0 : index
    %11 = vector.load %arg6[%c0_10, %c0_11] : memref<1x32xf32, #tpu.memory_space<vmem>>, vector<1x32xf32>
    %12 = vector.broadcast %11 : vector<1x32xf32> to vector<16x32xf32>
    %13 = arith.addf %10, %12 : vector<16x32xf32>
    %14 = arith.truncf %1 : vector<16x32xf32> to vector<16x32xbf16>
    %c0_12 = arith.constant 0 : index
    %c0_13 = arith.constant 0 : index
    %15 = vector.load %arg7[%c0_12, %c0_13] : memref<32x32xbf16, #tpu.memory_space<vmem>>, vector<32x32xbf16>
    %cst_14 = arith.constant dense<0.000000e+00> : vector<16x32xf32>
    %16 = tpu.matmul %14, %15, %cst_14 {dimension_numbers = #tpu.dot_dimension_numbers<[1], [0], [0], [1], [0, 0, 1, 1], [], []>} : vector<16x32xbf16>, vector<32x32xbf16>, vector<16x32xf32> -> vector<16x32xf32>
    %c0_15 = arith.constant 0 : index
    %c0_16 = arith.constant 0 : index
    %17 = vector.load %arg8[%c0_15, %c0_16] : memref<1x32xf32, #tpu.memory_space<vmem>>, vector<1x32xf32>
    %18 = vector.broadcast %17 : vector<1x32xf32> to vector<16x32xf32>
    %19 = arith.addf %16, %18 : vector<16x32xf32>
    %c0_17 = arith.constant 0 : index
    %c0_18 = arith.constant 0 : index
    %20 = vector.load %arg2[%c0_17, %c0_18] : memref<16x16xf32, #tpu.memory_space<vmem>>, vector<16x16xf32>
    %c0_19 = arith.constant 0 : index
    %c0_20 = arith.constant 0 : index
    %21 = vector.load %arg9[%c0_19, %c0_20] : memref<32x32xf32, #tpu.memory_space<vmem>>, vector<32x32xf32>
    %22 = vector.extract_strided_slice %7 {offsets = [0, 0], sizes = [16, 8], strides = [1, 1]} : vector<16x32xf32> to vector<16x8xf32>
    %cst_21 = arith.constant 0.353553385 : f32
    %23 = vector.broadcast %cst_21 : f32 to vector<16x8xf32>
    %24 = arith.mulf %22, %23 : vector<16x8xf32>
    %25 = arith.truncf %24 : vector<16x8xf32> to vector<16x8xbf16>
    %26 = vector.extract_strided_slice %13 {offsets = [0, 0], sizes = [16, 8], strides = [1, 1]} : vector<16x32xf32> to vector<16x8xf32>
    %27 = arith.truncf %26 : vector<16x8xf32> to vector<16x8xbf16>
    %28 = vector.extract_strided_slice %19 {offsets = [0, 0], sizes = [16, 8], strides = [1, 1]} : vector<16x32xf32> to vector<16x8xf32>
    %29 = arith.truncf %28 : vector<16x8xf32> to vector<16x8xbf16>
    %cst_22 = arith.constant dense<0.000000e+00> : vector<16x16xf32>
    %30 = tpu.matmul %25, %27, %cst_22 {dimension_numbers = #tpu.dot_dimension_numbers<[1], [1], [0], [0], [0, 0, 1, 0], [], []>} : vector<16x8xbf16>, vector<16x8xbf16>, vector<16x16xf32> -> vector<16x16xf32>
    %31 = arith.addf %30, %20 : vector<16x16xf32>
    %cst_23 = arith.constant dense<0xFF800000> : vector<16xf32>
    %32 = vector.multi_reduction <maximumf>, %31, %cst_23 [1] : vector<16x16xf32> to vector<16xf32>
    %33 = vector.shape_cast %32 : vector<16xf32> to vector<16x1xf32>
    %34 = vector.broadcast %33 : vector<16x1xf32> to vector<16x16xf32>
    %35 = arith.subf %31, %34 : vector<16x16xf32>
    %36 = math.exp %35 : vector<16x16xf32>
    %cst_24 = arith.constant dense<0.000000e+00> : vector<16xf32>
    %37 = vector.multi_reduction <add>, %36, %cst_24 [1] : vector<16x16xf32> to vector<16xf32>
    %38 = vector.shape_cast %37 : vector<16xf32> to vector<16x1xf32>
    %39 = tpu.reciprocal %38 {approx = true} : vector<16x1xf32> -> vector<16x1xf32>
    %40 = vector.broadcast %39 : vector<16x1xf32> to vector<16x16xf32>
    %41 = arith.mulf %36, %40 : vector<16x16xf32>
    %42 = arith.truncf %41 : vector<16x16xf32> to vector<16x16xbf16>
    %cst_25 = arith.constant dense<0.000000e+00> : vector<16x8xf32>
    %43 = tpu.matmul %42, %29, %cst_25 {dimension_numbers = #tpu.dot_dimension_numbers<[1], [0], [0], [1], [0, 0, 1, 1], [], []>} : vector<16x16xbf16>, vector<16x8xbf16>, vector<16x8xf32> -> vector<16x8xf32>
    %44 = vector.extract_strided_slice %21 {offsets = [0, 0], sizes = [8, 32], strides = [1, 1]} : vector<32x32xf32> to vector<8x32xf32>
    %cst_26 = arith.constant dense<0.000000e+00> : vector<16x32xf32>
    %45 = tpu.matmul %43, %44, %cst_26 {dimension_numbers = #tpu.dot_dimension_numbers<[1], [0], [0], [1], [0, 0, 1, 1], [], []>} : vector<16x8xf32>, vector<8x32xf32>, vector<16x32xf32> -> vector<16x32xf32>
    %46 = vector.extract_strided_slice %7 {offsets = [0, 8], sizes = [16, 8], strides = [1, 1]} : vector<16x32xf32> to vector<16x8xf32>
    %cst_27 = arith.constant 0.353553385 : f32
    %47 = vector.broadcast %cst_27 : f32 to vector<16x8xf32>
    %48 = arith.mulf %46, %47 : vector<16x8xf32>
    %49 = arith.truncf %48 : vector<16x8xf32> to vector<16x8xbf16>
    %50 = vector.extract_strided_slice %13 {offsets = [0, 8], sizes = [16, 8], strides = [1, 1]} : vector<16x32xf32> to vector<16x8xf32>
    %51 = arith.truncf %50 : vector<16x8xf32> to vector<16x8xbf16>
    %52 = vector.extract_strided_slice %19 {offsets = [0, 8], sizes = [16, 8], strides = [1, 1]} : vector<16x32xf32> to vector<16x8xf32>
    %53 = arith.truncf %52 : vector<16x8xf32> to vector<16x8xbf16>
    %cst_28 = arith.constant dense<0.000000e+00> : vector<16x16xf32>
    %54 = tpu.matmul %49, %51, %cst_28 {dimension_numbers = #tpu.dot_dimension_numbers<[1], [1], [0], [0], [0, 0, 1, 0], [], []>} : vector<16x8xbf16>, vector<16x8xbf16>, vector<16x16xf32> -> vector<16x16xf32>
    %55 = arith.addf %54, %20 : vector<16x16xf32>
    %cst_29 = arith.constant dense<0xFF800000> : vector<16xf32>
    %56 = vector.multi_reduction <maximumf>, %55, %cst_29 [1] : vector<16x16xf32> to vector<16xf32>
    %57 = vector.shape_cast %56 : vector<16xf32> to vector<16x1xf32>
    %58 = vector.broadcast %57 : vector<16x1xf32> to vector<16x16xf32>
    %59 = arith.subf %55, %58 : vector<16x16xf32>
    %60 = math.exp %59 : vector<16x16xf32>
    %cst_30 = arith.constant dense<0.000000e+00> : vector<16xf32>
    %61 = vector.multi_reduction <add>, %60, %cst_30 [1] : vector<16x16xf32> to vector<16xf32>
    %62 = vector.shape_cast %61 : vector<16xf32> to vector<16x1xf32>
    %63 = tpu.reciprocal %62 {approx = true} : vector<16x1xf32> -> vector<16x1xf32>
    %64 = vector.broadcast %63 : vector<16x1xf32> to vector<16x16xf32>
    %65 = arith.mulf %60, %64 : vector<16x16xf32>
    %66 = arith.truncf %65 : vector<16x16xf32> to vector<16x16xbf16>
    %cst_31 = arith.constant dense<0.000000e+00> : vector<16x8xf32>
    %67 = tpu.matmul %66, %53, %cst_31 {dimension_numbers = #tpu.dot_dimension_numbers<[1], [0], [0], [1], [0, 0, 1, 1], [], []>} : vector<16x16xbf16>, vector<16x8xbf16>, vector<16x8xf32> -> vector<16x8xf32>
    %68 = vector.extract_strided_slice %21 {offsets = [8, 0], sizes = [8, 32], strides = [1, 1]} : vector<32x32xf32> to vector<8x32xf32>
    %cst_32 = arith.constant dense<0.000000e+00> : vector<16x32xf32>
    %69 = tpu.matmul %67, %68, %cst_32 {dimension_numbers = #tpu.dot_dimension_numbers<[1], [0], [0], [1], [0, 0, 1, 1], [], []>} : vector<16x8xf32>, vector<8x32xf32>, vector<16x32xf32> -> vector<16x32xf32>
    %70 = arith.addf %45, %69 : vector<16x32xf32>
    %71 = vector.extract_strided_slice %7 {offsets = [0, 16], sizes = [16, 8], strides = [1, 1]} : vector<16x32xf32> to vector<16x8xf32>
    %cst_33 = arith.constant 0.353553385 : f32
    %72 = vector.broadcast %cst_33 : f32 to vector<16x8xf32>
    %73 = arith.mulf %71, %72 : vector<16x8xf32>
    %74 = arith.truncf %73 : vector<16x8xf32> to vector<16x8xbf16>
    %75 = vector.extract_strided_slice %13 {offsets = [0, 16], sizes = [16, 8], strides = [1, 1]} : vector<16x32xf32> to vector<16x8xf32>
    %76 = arith.truncf %75 : vector<16x8xf32> to vector<16x8xbf16>
    %77 = vector.extract_strided_slice %19 {offsets = [0, 16], sizes = [16, 8], strides = [1, 1]} : vector<16x32xf32> to vector<16x8xf32>
    %78 = arith.truncf %77 : vector<16x8xf32> to vector<16x8xbf16>
    %cst_34 = arith.constant dense<0.000000e+00> : vector<16x16xf32>
    %79 = tpu.matmul %74, %76, %cst_34 {dimension_numbers = #tpu.dot_dimension_numbers<[1], [1], [0], [0], [0, 0, 1, 0], [], []>} : vector<16x8xbf16>, vector<16x8xbf16>, vector<16x16xf32> -> vector<16x16xf32>
    %80 = arith.addf %79, %20 : vector<16x16xf32>
    %cst_35 = arith.constant dense<0xFF800000> : vector<16xf32>
    %81 = vector.multi_reduction <maximumf>, %80, %cst_35 [1] : vector<16x16xf32> to vector<16xf32>
    %82 = vector.shape_cast %81 : vector<16xf32> to vector<16x1xf32>
    %83 = vector.broadcast %82 : vector<16x1xf32> to vector<16x16xf32>
    %84 = arith.subf %80, %83 : vector<16x16xf32>
    %85 = math.exp %84 : vector<16x16xf32>
    %cst_36 = arith.constant dense<0.000000e+00> : vector<16xf32>
    %86 = vector.multi_reduction <add>, %85, %cst_36 [1] : vector<16x16xf32> to vector<16xf32>
    %87 = vector.shape_cast %86 : vector<16xf32> to vector<16x1xf32>
    %88 = tpu.reciprocal %87 {approx = true} : vector<16x1xf32> -> vector<16x1xf32>
    %89 = vector.broadcast %88 : vector<16x1xf32> to vector<16x16xf32>
    %90 = arith.mulf %85, %89 : vector<16x16xf32>
    %91 = arith.truncf %90 : vector<16x16xf32> to vector<16x16xbf16>
    %cst_37 = arith.constant dense<0.000000e+00> : vector<16x8xf32>
    %92 = tpu.matmul %91, %78, %cst_37 {dimension_numbers = #tpu.dot_dimension_numbers<[1], [0], [0], [1], [0, 0, 1, 1], [], []>} : vector<16x16xbf16>, vector<16x8xbf16>, vector<16x8xf32> -> vector<16x8xf32>
    %93 = vector.extract_strided_slice %21 {offsets = [16, 0], sizes = [8, 32], strides = [1, 1]} : vector<32x32xf32> to vector<8x32xf32>
    %cst_38 = arith.constant dense<0.000000e+00> : vector<16x32xf32>
    %94 = tpu.matmul %92, %93, %cst_38 {dimension_numbers = #tpu.dot_dimension_numbers<[1], [0], [0], [1], [0, 0, 1, 1], [], []>} : vector<16x8xf32>, vector<8x32xf32>, vector<16x32xf32> -> vector<16x32xf32>
    %95 = arith.addf %70, %94 : vector<16x32xf32>
    %96 = vector.extract_strided_slice %7 {offsets = [0, 24], sizes = [16, 8], strides = [1, 1]} : vector<16x32xf32> to vector<16x8xf32>
    %cst_39 = arith.constant 0.353553385 : f32
    %97 = vector.broadcast %cst_39 : f32 to vector<16x8xf32>
    %98 = arith.mulf %96, %97 : vector<16x8xf32>
    %99 = arith.truncf %98 : vector<16x8xf32> to vector<16x8xbf16>
    %100 = vector.extract_strided_slice %13 {offsets = [0, 24], sizes = [16, 8], strides = [1, 1]} : vector<16x32xf32> to vector<16x8xf32>
    %101 = arith.truncf %100 : vector<16x8xf32> to vector<16x8xbf16>
    %102 = vector.extract_strided_slice %19 {offsets = [0, 24], sizes = [16, 8], strides = [1, 1]} : vector<16x32xf32> to vector<16x8xf32>
    %103 = arith.truncf %102 : vector<16x8xf32> to vector<16x8xbf16>
    %cst_40 = arith.constant dense<0.000000e+00> : vector<16x16xf32>
    %104 = tpu.matmul %99, %101, %cst_40 {dimension_numbers = #tpu.dot_dimension_numbers<[1], [1], [0], [0], [0, 0, 1, 0], [], []>} : vector<16x8xbf16>, vector<16x8xbf16>, vector<16x16xf32> -> vector<16x16xf32>
    %105 = arith.addf %104, %20 : vector<16x16xf32>
    %cst_41 = arith.constant dense<0xFF800000> : vector<16xf32>
    %106 = vector.multi_reduction <maximumf>, %105, %cst_41 [1] : vector<16x16xf32> to vector<16xf32>
    %107 = vector.shape_cast %106 : vector<16xf32> to vector<16x1xf32>
    %108 = vector.broadcast %107 : vector<16x1xf32> to vector<16x16xf32>
    %109 = arith.subf %105, %108 : vector<16x16xf32>
    %110 = math.exp %109 : vector<16x16xf32>
    %cst_42 = arith.constant dense<0.000000e+00> : vector<16xf32>
    %111 = vector.multi_reduction <add>, %110, %cst_42 [1] : vector<16x16xf32> to vector<16xf32>
    %112 = vector.shape_cast %111 : vector<16xf32> to vector<16x1xf32>
    %113 = tpu.reciprocal %112 {approx = true} : vector<16x1xf32> -> vector<16x1xf32>
    %114 = vector.broadcast %113 : vector<16x1xf32> to vector<16x16xf32>
    %115 = arith.mulf %110, %114 : vector<16x16xf32>
    %116 = arith.truncf %115 : vector<16x16xf32> to vector<16x16xbf16>
    %cst_43 = arith.constant dense<0.000000e+00> : vector<16x8xf32>
    %117 = tpu.matmul %116, %103, %cst_43 {dimension_numbers = #tpu.dot_dimension_numbers<[1], [0], [0], [1], [0, 0, 1, 1], [], []>} : vector<16x16xbf16>, vector<16x8xbf16>, vector<16x8xf32> -> vector<16x8xf32>
    %118 = vector.extract_strided_slice %21 {offsets = [24, 0], sizes = [8, 32], strides = [1, 1]} : vector<32x32xf32> to vector<8x32xf32>
    %cst_44 = arith.constant dense<0.000000e+00> : vector<16x32xf32>
    %119 = tpu.matmul %117, %118, %cst_44 {dimension_numbers = #tpu.dot_dimension_numbers<[1], [0], [0], [1], [0, 0, 1, 1], [], []>} : vector<16x8xf32>, vector<8x32xf32>, vector<16x32xf32> -> vector<16x32xf32>
    %120 = arith.addf %95, %119 : vector<16x32xf32>
    %121 = arith.addf %0, %120 : vector<16x32xf32>
    %c0_45 = arith.constant 0 : index
    %c0_46 = arith.constant 0 : index
    %122 = vector.load %arg10[%c0_45, %c0_46] : memref<1x32xf32, #tpu.memory_space<vmem>>, vector<1x32xf32>
    %123 = vector.broadcast %122 : vector<1x32xf32> to vector<16x32xf32>
    %124 = arith.addf %121, %123 : vector<16x32xf32>
    %cst_47 = arith.constant dense<0.000000e+00> : vector<16xf32>
    %125 = vector.multi_reduction <add>, %124, %cst_47 [1] : vector<16x32xf32> to vector<16xf32>
    %126 = vector.shape_cast %125 : vector<16xf32> to vector<16x1xf32>
    %cst_48 = arith.constant 3.200000e+01 : f32
    %127 = vector.broadcast %cst_48 : f32 to vector<16x1xf32>
    %128 = arith.divf %126, %127 : vector<16x1xf32>
    %129 = vector.broadcast %128 : vector<16x1xf32> to vector<16x32xf32>
    %130 = arith.subf %124, %129 : vector<16x32xf32>
    %131 = arith.mulf %130, %130 : vector<16x32xf32>
    %cst_49 = arith.constant dense<0.000000e+00> : vector<16xf32>
    %132 = vector.multi_reduction <add>, %131, %cst_49 [1] : vector<16x32xf32> to vector<16xf32>
    %133 = vector.shape_cast %132 : vector<16xf32> to vector<16x1xf32>
    %cst_50 = arith.constant 3.200000e+01 : f32
    %134 = vector.broadcast %cst_50 : f32 to vector<16x1xf32>
    %135 = arith.divf %133, %134 : vector<16x1xf32>
    %136 = vector.broadcast %128 : vector<16x1xf32> to vector<16x32xf32>
    %137 = arith.subf %124, %136 : vector<16x32xf32>
    %cst_51 = arith.constant 9.99999996E-13 : f32
    %138 = vector.broadcast %cst_51 : f32 to vector<16x1xf32>
    %139 = arith.addf %135, %138 : vector<16x1xf32>
    %140 = math.rsqrt %139 : vector<16x1xf32>
    %141 = vector.broadcast %140 : vector<16x1xf32> to vector<16x32xf32>
    %142 = arith.mulf %137, %141 : vector<16x32xf32>
    %c0_52 = arith.constant 0 : index
    %c0_53 = arith.constant 0 : index
    %143 = vector.load %arg11[%c0_52, %c0_53] : memref<1x32xf32, #tpu.memory_space<vmem>>, vector<1x32xf32>
    %144 = vector.broadcast %143 : vector<1x32xf32> to vector<16x32xf32>
    %145 = arith.mulf %142, %144 : vector<16x32xf32>
    %c0_54 = arith.constant 0 : index
    %c0_55 = arith.constant 0 : index
    %146 = vector.load %arg12[%c0_54, %c0_55] : memref<1x32xf32, #tpu.memory_space<vmem>>, vector<1x32xf32>
    %147 = vector.broadcast %146 : vector<1x32xf32> to vector<16x32xf32>
    %148 = arith.addf %145, %147 : vector<16x32xf32>
    %c0_56 = arith.constant 0 : index
    %c0_57 = arith.constant 0 : index
    %149 = vector.load %arg13[%c0_56, %c0_57] : memref<16x32xf32, #tpu.memory_space<vmem>>, vector<16x32xf32>
    tpu.vector_store %arg13[%c0_56, %c0_57], %148 {strides = array<i32>} : memref<16x32xf32, #tpu.memory_space<vmem>>, vector<16x32xf32>,
    return
  }
}

module attributes {stable_mosaic.version = 11 : i64} {
  func.func @_ffn_block_kernel(%arg0: memref<16x32xf32, #tpu.memory_space<vmem>>, %arg1: memref<32x64xbf16, #tpu.memory_space<vmem>>, %arg2: memref<1x64xf32, #tpu.memory_space<vmem>>, %arg3: memref<64x32xbf16, #tpu.memory_space<vmem>>, %arg4: memref<1x32xf32, #tpu.memory_space<vmem>>, %arg5: memref<1x32xf32, #tpu.memory_space<vmem>>, %arg6: memref<1x32xf32, #tpu.memory_space<vmem>>, %arg7: memref<16x32xf32, #tpu.memory_space<vmem>>) attributes {dimension_semantics = [], scalar_prefetch = 0 : i64, scratch_operands = 0 : i64, tpu.core_type = #tpu.core_type<tc>} {
    %c0 = arith.constant 0 : index
    %c0_0 = arith.constant 0 : index
    %0 = vector.load %arg0[%c0, %c0_0] : memref<16x32xf32, #tpu.memory_space<vmem>>, vector<16x32xf32>
    %1 = arith.truncf %0 : vector<16x32xf32> to vector<16x32xbf16>
    %c0_1 = arith.constant 0 : index
    %c0_2 = arith.constant 0 : index
    %2 = vector.load %arg1[%c0_1, %c0_2] : memref<32x64xbf16, #tpu.memory_space<vmem>>, vector<32x64xbf16>
    %cst = arith.constant dense<0.000000e+00> : vector<16x64xf32>
    %3 = tpu.matmul %1, %2, %cst {dimension_numbers = #tpu.dot_dimension_numbers<[1], [0], [0], [1], [0, 0, 1, 1], [], []>} : vector<16x32xbf16>, vector<32x64xbf16>, vector<16x64xf32> -> vector<16x64xf32>
    %c0_3 = arith.constant 0 : index
    %c0_4 = arith.constant 0 : index
    %4 = vector.load %arg2[%c0_3, %c0_4] : memref<1x64xf32, #tpu.memory_space<vmem>>, vector<1x64xf32>
    %5 = vector.broadcast %4 : vector<1x64xf32> to vector<16x64xf32>
    %6 = arith.addf %3, %5 : vector<16x64xf32>
    %cst_5 = arith.constant 5.000000e-01 : f32
    %7 = vector.broadcast %cst_5 : f32 to vector<16x64xf32>
    %8 = arith.mulf %7, %6 : vector<16x64xf32>
    %cst_6 = arith.constant 4.471500e-02 : f32
    %9 = vector.broadcast %cst_6 : f32 to vector<16x64xf32>
    %10 = arith.mulf %9, %6 : vector<16x64xf32>
    %11 = arith.mulf %10, %6 : vector<16x64xf32>
    %12 = arith.mulf %11, %6 : vector<16x64xf32>
    %13 = arith.addf %6, %12 : vector<16x64xf32>
    %cst_7 = arith.constant 0.797884583 : f32
    %14 = vector.broadcast %cst_7 : f32 to vector<16x64xf32>
    %15 = arith.mulf %14, %13 : vector<16x64xf32>
    %16 = math.tanh %15 : vector<16x64xf32>
    %cst_8 = arith.constant 1.000000e+00 : f32
    %17 = vector.broadcast %cst_8 : f32 to vector<16x64xf32>
    %18 = arith.addf %17, %16 : vector<16x64xf32>
    %19 = arith.mulf %8, %18 : vector<16x64xf32>
    %20 = arith.truncf %19 : vector<16x64xf32> to vector<16x64xbf16>
    %c0_9 = arith.constant 0 : index
    %c0_10 = arith.constant 0 : index
    %21 = vector.load %arg3[%c0_9, %c0_10] : memref<64x32xbf16, #tpu.memory_space<vmem>>, vector<64x32xbf16>
    %cst_11 = arith.constant dense<0.000000e+00> : vector<16x32xf32>
    %22 = tpu.matmul %20, %21, %cst_11 {dimension_numbers = #tpu.dot_dimension_numbers<[1], [0], [0], [1], [0, 0, 1, 1], [], []>} : vector<16x64xbf16>, vector<64x32xbf16>, vector<16x32xf32> -> vector<16x32xf32>
    %c0_12 = arith.constant 0 : index
    %c0_13 = arith.constant 0 : index
    %23 = vector.load %arg4[%c0_12, %c0_13] : memref<1x32xf32, #tpu.memory_space<vmem>>, vector<1x32xf32>
    %24 = vector.broadcast %23 : vector<1x32xf32> to vector<16x32xf32>
    %25 = arith.addf %22, %24 : vector<16x32xf32>
    %26 = arith.addf %0, %25 : vector<16x32xf32>
    %cst_14 = arith.constant dense<0.000000e+00> : vector<16xf32>
    %27 = vector.multi_reduction <add>, %26, %cst_14 [1] : vector<16x32xf32> to vector<16xf32>
    %28 = vector.shape_cast %27 : vector<16xf32> to vector<16x1xf32>
    %cst_15 = arith.constant 3.200000e+01 : f32
    %29 = vector.broadcast %cst_15 : f32 to vector<16x1xf32>
    %30 = arith.divf %28, %29 : vector<16x1xf32>
    %31 = vector.broadcast %30 : vector<16x1xf32> to vector<16x32xf32>
    %32 = arith.subf %26, %31 : vector<16x32xf32>
    %33 = arith.mulf %32, %32 : vector<16x32xf32>
    %cst_16 = arith.constant dense<0.000000e+00> : vector<16xf32>
    %34 = vector.multi_reduction <add>, %33, %cst_16 [1] : vector<16x32xf32> to vector<16xf32>
    %35 = vector.shape_cast %34 : vector<16xf32> to vector<16x1xf32>
    %cst_17 = arith.constant 3.200000e+01 : f32
    %36 = vector.broadcast %cst_17 : f32 to vector<16x1xf32>
    %37 = arith.divf %35, %36 : vector<16x1xf32>
    %38 = vector.broadcast %30 : vector<16x1xf32> to vector<16x32xf32>
    %39 = arith.subf %26, %38 : vector<16x32xf32>
    %cst_18 = arith.constant 9.99999996E-13 : f32
    %40 = vector.broadcast %cst_18 : f32 to vector<16x1xf32>
    %41 = arith.addf %37, %40 : vector<16x1xf32>
    %42 = math.rsqrt %41 : vector<16x1xf32>
    %43 = vector.broadcast %42 : vector<16x1xf32> to vector<16x32xf32>
    %44 = arith.mulf %39, %43 : vector<16x32xf32>
    %c0_19 = arith.constant 0 : index
    %c0_20 = arith.constant 0 : index
    %45 = vector.load %arg5[%c0_19, %c0_20] : memref<1x32xf32, #tpu.memory_space<vmem>>, vector<1x32xf32>
    %46 = vector.broadcast %45 : vector<1x32xf32> to vector<16x32xf32>
    %47 = arith.mulf %44, %46 : vector<16x32xf32>
    %c0_21 = arith.constant 0 : index
    %c0_22 = arith.constant 0 : index
    %48 = vector.load %arg6[%c0_21, %c0_22] : memref<1x32xf32, #tpu.memory_space<vmem>>, vector<1x32xf32>
    %49 = vector.broadcast %48 : vector<1x32xf32> to vector<16x32xf32>
    %50 = arith.addf %47, %49 : vector<16x32xf32>
    %c0_23 = arith.constant 0 : index
    %c0_24 = arith.constant 0 : index
    %51 = vector.load %arg7[%c0_23, %c0_24] : memref<16x32xf32, #tpu.memory_space<vmem>>, vector<16x32xf32>
    tpu.vector_store %arg7[%c0_23, %c0_24], %50 {strides = array<i32>} : memref<16x32xf32, #tpu.memory_space<vmem>>, vector<16x32xf32>,
    return
  }
}

module attributes {stable_mosaic.version = 11 : i64} {
  func.func @_attn_block_kernel(%arg0: memref<16x64xf32, #tpu.memory_space<vmem>>, %arg1: memref<16x64xf32, #tpu.memory_space<vmem>>, %arg2: memref<16x16xf32, #tpu.memory_space<vmem>>, %arg3: memref<64x64xbf16, #tpu.memory_space<vmem>>, %arg4: memref<1x64xf32, #tpu.memory_space<vmem>>, %arg5: memref<64x64xbf16, #tpu.memory_space<vmem>>, %arg6: memref<1x64xf32, #tpu.memory_space<vmem>>, %arg7: memref<64x64xbf16, #tpu.memory_space<vmem>>, %arg8: memref<1x64xf32, #tpu.memory_space<vmem>>, %arg9: memref<64x64xf32, #tpu.memory_space<vmem>>, %arg10: memref<1x64xf32, #tpu.memory_space<vmem>>, %arg11: memref<1x64xf32, #tpu.memory_space<vmem>>, %arg12: memref<1x64xf32, #tpu.memory_space<vmem>>, %arg13: memref<16x64xf32, #tpu.memory_space<vmem>>) attributes {dimension_semantics = [], scalar_prefetch = 0 : i64, scratch_operands = 0 : i64, tpu.core_type = #tpu.core_type<tc>} {
    %c0 = arith.constant 0 : index
    %c0_0 = arith.constant 0 : index
    %0 = vector.load %arg0[%c0, %c0_0] : memref<16x64xf32, #tpu.memory_space<vmem>>, vector<16x64xf32>
    %c0_1 = arith.constant 0 : index
    %c0_2 = arith.constant 0 : index
    %1 = vector.load %arg1[%c0_1, %c0_2] : memref<16x64xf32, #tpu.memory_space<vmem>>, vector<16x64xf32>
    %2 = arith.truncf %0 : vector<16x64xf32> to vector<16x64xbf16>
    %c0_3 = arith.constant 0 : index
    %c0_4 = arith.constant 0 : index
    %3 = vector.load %arg3[%c0_3, %c0_4] : memref<64x64xbf16, #tpu.memory_space<vmem>>, vector<64x64xbf16>
    %cst = arith.constant dense<0.000000e+00> : vector<16x64xf32>
    %4 = tpu.matmul %2, %3, %cst {dimension_numbers = #tpu.dot_dimension_numbers<[1], [0], [0], [1], [0, 0, 1, 1], [], []>} : vector<16x64xbf16>, vector<64x64xbf16>, vector<16x64xf32> -> vector<16x64xf32>
    %c0_5 = arith.constant 0 : index
    %c0_6 = arith.constant 0 : index
    %5 = vector.load %arg4[%c0_5, %c0_6] : memref<1x64xf32, #tpu.memory_space<vmem>>, vector<1x64xf32>
    %6 = vector.broadcast %5 : vector<1x64xf32> to vector<16x64xf32>
    %7 = arith.addf %4, %6 : vector<16x64xf32>
    %8 = arith.truncf %1 : vector<16x64xf32> to vector<16x64xbf16>
    %c0_7 = arith.constant 0 : index
    %c0_8 = arith.constant 0 : index
    %9 = vector.load %arg5[%c0_7, %c0_8] : memref<64x64xbf16, #tpu.memory_space<vmem>>, vector<64x64xbf16>
    %cst_9 = arith.constant dense<0.000000e+00> : vector<16x64xf32>
    %10 = tpu.matmul %8, %9, %cst_9 {dimension_numbers = #tpu.dot_dimension_numbers<[1], [0], [0], [1], [0, 0, 1, 1], [], []>} : vector<16x64xbf16>, vector<64x64xbf16>, vector<16x64xf32> -> vector<16x64xf32>
    %c0_10 = arith.constant 0 : index
    %c0_11 = arith.constant 0 : index
    %11 = vector.load %arg6[%c0_10, %c0_11] : memref<1x64xf32, #tpu.memory_space<vmem>>, vector<1x64xf32>
    %12 = vector.broadcast %11 : vector<1x64xf32> to vector<16x64xf32>
    %13 = arith.addf %10, %12 : vector<16x64xf32>
    %14 = arith.truncf %1 : vector<16x64xf32> to vector<16x64xbf16>
    %c0_12 = arith.constant 0 : index
    %c0_13 = arith.constant 0 : index
    %15 = vector.load %arg7[%c0_12, %c0_13] : memref<64x64xbf16, #tpu.memory_space<vmem>>, vector<64x64xbf16>
    %cst_14 = arith.constant dense<0.000000e+00> : vector<16x64xf32>
    %16 = tpu.matmul %14, %15, %cst_14 {dimension_numbers = #tpu.dot_dimension_numbers<[1], [0], [0], [1], [0, 0, 1, 1], [], []>} : vector<16x64xbf16>, vector<64x64xbf16>, vector<16x64xf32> -> vector<16x64xf32>
    %c0_15 = arith.constant 0 : index
    %c0_16 = arith.constant 0 : index
    %17 = vector.load %arg8[%c0_15, %c0_16] : memref<1x64xf32, #tpu.memory_space<vmem>>, vector<1x64xf32>
    %18 = vector.broadcast %17 : vector<1x64xf32> to vector<16x64xf32>
    %19 = arith.addf %16, %18 : vector<16x64xf32>
    %c0_17 = arith.constant 0 : index
    %c0_18 = arith.constant 0 : index
    %20 = vector.load %arg2[%c0_17, %c0_18] : memref<16x16xf32, #tpu.memory_space<vmem>>, vector<16x16xf32>
    %c0_19 = arith.constant 0 : index
    %c0_20 = arith.constant 0 : index
    %21 = vector.load %arg9[%c0_19, %c0_20] : memref<64x64xf32, #tpu.memory_space<vmem>>, vector<64x64xf32>
    %22 = vector.extract_strided_slice %7 {offsets = [0, 0], sizes = [16, 16], strides = [1, 1]} : vector<16x64xf32> to vector<16x16xf32>
    %cst_21 = arith.constant 2.500000e-01 : f32
    %23 = vector.broadcast %cst_21 : f32 to vector<16x16xf32>
    %24 = arith.mulf %22, %23 : vector<16x16xf32>
    %25 = arith.truncf %24 : vector<16x16xf32> to vector<16x16xbf16>
    %26 = vector.extract_strided_slice %13 {offsets = [0, 0], sizes = [16, 16], strides = [1, 1]} : vector<16x64xf32> to vector<16x16xf32>
    %27 = arith.truncf %26 : vector<16x16xf32> to vector<16x16xbf16>
    %28 = vector.extract_strided_slice %19 {offsets = [0, 0], sizes = [16, 16], strides = [1, 1]} : vector<16x64xf32> to vector<16x16xf32>
    %29 = arith.truncf %28 : vector<16x16xf32> to vector<16x16xbf16>
    %cst_22 = arith.constant dense<0.000000e+00> : vector<16x16xf32>
    %30 = tpu.matmul %25, %27, %cst_22 {dimension_numbers = #tpu.dot_dimension_numbers<[1], [1], [0], [0], [0, 0, 1, 0], [], []>} : vector<16x16xbf16>, vector<16x16xbf16>, vector<16x16xf32> -> vector<16x16xf32>
    %31 = arith.addf %30, %20 : vector<16x16xf32>
    %cst_23 = arith.constant dense<0xFF800000> : vector<16xf32>
    %32 = vector.multi_reduction <maximumf>, %31, %cst_23 [1] : vector<16x16xf32> to vector<16xf32>
    %33 = vector.shape_cast %32 : vector<16xf32> to vector<16x1xf32>
    %34 = vector.broadcast %33 : vector<16x1xf32> to vector<16x16xf32>
    %35 = arith.subf %31, %34 : vector<16x16xf32>
    %36 = math.exp %35 : vector<16x16xf32>
    %cst_24 = arith.constant dense<0.000000e+00> : vector<16xf32>
    %37 = vector.multi_reduction <add>, %36, %cst_24 [1] : vector<16x16xf32> to vector<16xf32>
    %38 = vector.shape_cast %37 : vector<16xf32> to vector<16x1xf32>
    %39 = tpu.reciprocal %38 {approx = true} : vector<16x1xf32> -> vector<16x1xf32>
    %40 = vector.broadcast %39 : vector<16x1xf32> to vector<16x16xf32>
    %41 = arith.mulf %36, %40 : vector<16x16xf32>
    %42 = arith.truncf %41 : vector<16x16xf32> to vector<16x16xbf16>
    %cst_25 = arith.constant dense<0.000000e+00> : vector<16x16xf32>
    %43 = tpu.matmul %42, %29, %cst_25 {dimension_numbers = #tpu.dot_dimension_numbers<[1], [0], [0], [1], [0, 0, 1, 1], [], []>} : vector<16x16xbf16>, vector<16x16xbf16>, vector<16x16xf32> -> vector<16x16xf32>
    %44 = vector.extract_strided_slice %21 {offsets = [0, 0], sizes = [16, 64], strides = [1, 1]} : vector<64x64xf32> to vector<16x64xf32>
    %cst_26 = arith.constant dense<0.000000e+00> : vector<16x64xf32>
    %45 = tpu.matmul %43, %44, %cst_26 {dimension_numbers = #tpu.dot_dimension_numbers<[1], [0], [0], [1], [0, 0, 1, 1], [], []>} : vector<16x16xf32>, vector<16x64xf32>, vector<16x64xf32> -> vector<16x64xf32>
    %46 = vector.extract_strided_slice %7 {offsets = [0, 16], sizes = [16, 16], strides = [1, 1]} : vector<16x64xf32> to vector<16x16xf32>
    %cst_27 = arith.constant 2.500000e-01 : f32
    %47 = vector.broadcast %cst_27 : f32 to vector<16x16xf32>
    %48 = arith.mulf %46, %47 : vector<16x16xf32>
    %49 = arith.truncf %48 : vector<16x16xf32> to vector<16x16xbf16>
    %50 = vector.extract_strided_slice %13 {offsets = [0, 16], sizes = [16, 16], strides = [1, 1]} : vector<16x64xf32> to vector<16x16xf32>
    %51 = arith.truncf %50 : vector<16x16xf32> to vector<16x16xbf16>
    %52 = vector.extract_strided_slice %19 {offsets = [0, 16], sizes = [16, 16], strides = [1, 1]} : vector<16x64xf32> to vector<16x16xf32>
    %53 = arith.truncf %52 : vector<16x16xf32> to vector<16x16xbf16>
    %cst_28 = arith.constant dense<0.000000e+00> : vector<16x16xf32>
    %54 = tpu.matmul %49, %51, %cst_28 {dimension_numbers = #tpu.dot_dimension_numbers<[1], [1], [0], [0], [0, 0, 1, 0], [], []>} : vector<16x16xbf16>, vector<16x16xbf16>, vector<16x16xf32> -> vector<16x16xf32>
    %55 = arith.addf %54, %20 : vector<16x16xf32>
    %cst_29 = arith.constant dense<0xFF800000> : vector<16xf32>
    %56 = vector.multi_reduction <maximumf>, %55, %cst_29 [1] : vector<16x16xf32> to vector<16xf32>
    %57 = vector.shape_cast %56 : vector<16xf32> to vector<16x1xf32>
    %58 = vector.broadcast %57 : vector<16x1xf32> to vector<16x16xf32>
    %59 = arith.subf %55, %58 : vector<16x16xf32>
    %60 = math.exp %59 : vector<16x16xf32>
    %cst_30 = arith.constant dense<0.000000e+00> : vector<16xf32>
    %61 = vector.multi_reduction <add>, %60, %cst_30 [1] : vector<16x16xf32> to vector<16xf32>
    %62 = vector.shape_cast %61 : vector<16xf32> to vector<16x1xf32>
    %63 = tpu.reciprocal %62 {approx = true} : vector<16x1xf32> -> vector<16x1xf32>
    %64 = vector.broadcast %63 : vector<16x1xf32> to vector<16x16xf32>
    %65 = arith.mulf %60, %64 : vector<16x16xf32>
    %66 = arith.truncf %65 : vector<16x16xf32> to vector<16x16xbf16>
    %cst_31 = arith.constant dense<0.000000e+00> : vector<16x16xf32>
    %67 = tpu.matmul %66, %53, %cst_31 {dimension_numbers = #tpu.dot_dimension_numbers<[1], [0], [0], [1], [0, 0, 1, 1], [], []>} : vector<16x16xbf16>, vector<16x16xbf16>, vector<16x16xf32> -> vector<16x16xf32>
    %68 = vector.extract_strided_slice %21 {offsets = [16, 0], sizes = [16, 64], strides = [1, 1]} : vector<64x64xf32> to vector<16x64xf32>
    %cst_32 = arith.constant dense<0.000000e+00> : vector<16x64xf32>
    %69 = tpu.matmul %67, %68, %cst_32 {dimension_numbers = #tpu.dot_dimension_numbers<[1], [0], [0], [1], [0, 0, 1, 1], [], []>} : vector<16x16xf32>, vector<16x64xf32>, vector<16x64xf32> -> vector<16x64xf32>
    %70 = arith.addf %45, %69 : vector<16x64xf32>
    %71 = vector.extract_strided_slice %7 {offsets = [0, 32], sizes = [16, 16], strides = [1, 1]} : vector<16x64xf32> to vector<16x16xf32>
    %cst_33 = arith.constant 2.500000e-01 : f32
    %72 = vector.broadcast %cst_33 : f32 to vector<16x16xf32>
    %73 = arith.mulf %71, %72 : vector<16x16xf32>
    %74 = arith.truncf %73 : vector<16x16xf32> to vector<16x16xbf16>
    %75 = vector.extract_strided_slice %13 {offsets = [0, 32], sizes = [16, 16], strides = [1, 1]} : vector<16x64xf32> to vector<16x16xf32>
    %76 = arith.truncf %75 : vector<16x16xf32> to vector<16x16xbf16>
    %77 = vector.extract_strided_slice %19 {offsets = [0, 32], sizes = [16, 16], strides = [1, 1]} : vector<16x64xf32> to vector<16x16xf32>
    %78 = arith.truncf %77 : vector<16x16xf32> to vector<16x16xbf16>
    %cst_34 = arith.constant dense<0.000000e+00> : vector<16x16xf32>
    %79 = tpu.matmul %74, %76, %cst_34 {dimension_numbers = #tpu.dot_dimension_numbers<[1], [1], [0], [0], [0, 0, 1, 0], [], []>} : vector<16x16xbf16>, vector<16x16xbf16>, vector<16x16xf32> -> vector<16x16xf32>
    %80 = arith.addf %79, %20 : vector<16x16xf32>
    %cst_35 = arith.constant dense<0xFF800000> : vector<16xf32>
    %81 = vector.multi_reduction <maximumf>, %80, %cst_35 [1] : vector<16x16xf32> to vector<16xf32>
    %82 = vector.shape_cast %81 : vector<16xf32> to vector<16x1xf32>
    %83 = vector.broadcast %82 : vector<16x1xf32> to vector<16x16xf32>
    %84 = arith.subf %80, %83 : vector<16x16xf32>
    %85 = math.exp %84 : vector<16x16xf32>
    %cst_36 = arith.constant dense<0.000000e+00> : vector<16xf32>
    %86 = vector.multi_reduction <add>, %85, %cst_36 [1] : vector<16x16xf32> to vector<16xf32>
    %87 = vector.shape_cast %86 : vector<16xf32> to vector<16x1xf32>
    %88 = tpu.reciprocal %87 {approx = true} : vector<16x1xf32> -> vector<16x1xf32>
    %89 = vector.broadcast %88 : vector<16x1xf32> to vector<16x16xf32>
    %90 = arith.mulf %85, %89 : vector<16x16xf32>
    %91 = arith.truncf %90 : vector<16x16xf32> to vector<16x16xbf16>
    %cst_37 = arith.constant dense<0.000000e+00> : vector<16x16xf32>
    %92 = tpu.matmul %91, %78, %cst_37 {dimension_numbers = #tpu.dot_dimension_numbers<[1], [0], [0], [1], [0, 0, 1, 1], [], []>} : vector<16x16xbf16>, vector<16x16xbf16>, vector<16x16xf32> -> vector<16x16xf32>
    %93 = vector.extract_strided_slice %21 {offsets = [32, 0], sizes = [16, 64], strides = [1, 1]} : vector<64x64xf32> to vector<16x64xf32>
    %cst_38 = arith.constant dense<0.000000e+00> : vector<16x64xf32>
    %94 = tpu.matmul %92, %93, %cst_38 {dimension_numbers = #tpu.dot_dimension_numbers<[1], [0], [0], [1], [0, 0, 1, 1], [], []>} : vector<16x16xf32>, vector<16x64xf32>, vector<16x64xf32> -> vector<16x64xf32>
    %95 = arith.addf %70, %94 : vector<16x64xf32>
    %96 = vector.extract_strided_slice %7 {offsets = [0, 48], sizes = [16, 16], strides = [1, 1]} : vector<16x64xf32> to vector<16x16xf32>
    %cst_39 = arith.constant 2.500000e-01 : f32
    %97 = vector.broadcast %cst_39 : f32 to vector<16x16xf32>
    %98 = arith.mulf %96, %97 : vector<16x16xf32>
    %99 = arith.truncf %98 : vector<16x16xf32> to vector<16x16xbf16>
    %100 = vector.extract_strided_slice %13 {offsets = [0, 48], sizes = [16, 16], strides = [1, 1]} : vector<16x64xf32> to vector<16x16xf32>
    %101 = arith.truncf %100 : vector<16x16xf32> to vector<16x16xbf16>
    %102 = vector.extract_strided_slice %19 {offsets = [0, 48], sizes = [16, 16], strides = [1, 1]} : vector<16x64xf32> to vector<16x16xf32>
    %103 = arith.truncf %102 : vector<16x16xf32> to vector<16x16xbf16>
    %cst_40 = arith.constant dense<0.000000e+00> : vector<16x16xf32>
    %104 = tpu.matmul %99, %101, %cst_40 {dimension_numbers = #tpu.dot_dimension_numbers<[1], [1], [0], [0], [0, 0, 1, 0], [], []>} : vector<16x16xbf16>, vector<16x16xbf16>, vector<16x16xf32> -> vector<16x16xf32>
    %105 = arith.addf %104, %20 : vector<16x16xf32>
    %cst_41 = arith.constant dense<0xFF800000> : vector<16xf32>
    %106 = vector.multi_reduction <maximumf>, %105, %cst_41 [1] : vector<16x16xf32> to vector<16xf32>
    %107 = vector.shape_cast %106 : vector<16xf32> to vector<16x1xf32>
    %108 = vector.broadcast %107 : vector<16x1xf32> to vector<16x16xf32>
    %109 = arith.subf %105, %108 : vector<16x16xf32>
    %110 = math.exp %109 : vector<16x16xf32>
    %cst_42 = arith.constant dense<0.000000e+00> : vector<16xf32>
    %111 = vector.multi_reduction <add>, %110, %cst_42 [1] : vector<16x16xf32> to vector<16xf32>
    %112 = vector.shape_cast %111 : vector<16xf32> to vector<16x1xf32>
    %113 = tpu.reciprocal %112 {approx = true} : vector<16x1xf32> -> vector<16x1xf32>
    %114 = vector.broadcast %113 : vector<16x1xf32> to vector<16x16xf32>
    %115 = arith.mulf %110, %114 : vector<16x16xf32>
    %116 = arith.truncf %115 : vector<16x16xf32> to vector<16x16xbf16>
    %cst_43 = arith.constant dense<0.000000e+00> : vector<16x16xf32>
    %117 = tpu.matmul %116, %103, %cst_43 {dimension_numbers = #tpu.dot_dimension_numbers<[1], [0], [0], [1], [0, 0, 1, 1], [], []>} : vector<16x16xbf16>, vector<16x16xbf16>, vector<16x16xf32> -> vector<16x16xf32>
    %118 = vector.extract_strided_slice %21 {offsets = [48, 0], sizes = [16, 64], strides = [1, 1]} : vector<64x64xf32> to vector<16x64xf32>
    %cst_44 = arith.constant dense<0.000000e+00> : vector<16x64xf32>
    %119 = tpu.matmul %117, %118, %cst_44 {dimension_numbers = #tpu.dot_dimension_numbers<[1], [0], [0], [1], [0, 0, 1, 1], [], []>} : vector<16x16xf32>, vector<16x64xf32>, vector<16x64xf32> -> vector<16x64xf32>
    %120 = arith.addf %95, %119 : vector<16x64xf32>
    %121 = arith.addf %0, %120 : vector<16x64xf32>
    %c0_45 = arith.constant 0 : index
    %c0_46 = arith.constant 0 : index
    %122 = vector.load %arg10[%c0_45, %c0_46] : memref<1x64xf32, #tpu.memory_space<vmem>>, vector<1x64xf32>
    %123 = vector.broadcast %122 : vector<1x64xf32> to vector<16x64xf32>
    %124 = arith.addf %121, %123 : vector<16x64xf32>
    %cst_47 = arith.constant dense<0.000000e+00> : vector<16xf32>
    %125 = vector.multi_reduction <add>, %124, %cst_47 [1] : vector<16x64xf32> to vector<16xf32>
    %126 = vector.shape_cast %125 : vector<16xf32> to vector<16x1xf32>
    %cst_48 = arith.constant 6.400000e+01 : f32
    %127 = vector.broadcast %cst_48 : f32 to vector<16x1xf32>
    %128 = arith.divf %126, %127 : vector<16x1xf32>
    %129 = vector.broadcast %128 : vector<16x1xf32> to vector<16x64xf32>
    %130 = arith.subf %124, %129 : vector<16x64xf32>
    %131 = arith.mulf %130, %130 : vector<16x64xf32>
    %cst_49 = arith.constant dense<0.000000e+00> : vector<16xf32>
    %132 = vector.multi_reduction <add>, %131, %cst_49 [1] : vector<16x64xf32> to vector<16xf32>
    %133 = vector.shape_cast %132 : vector<16xf32> to vector<16x1xf32>
    %cst_50 = arith.constant 6.400000e+01 : f32
    %134 = vector.broadcast %cst_50 : f32 to vector<16x1xf32>
    %135 = arith.divf %133, %134 : vector<16x1xf32>
    %136 = vector.broadcast %128 : vector<16x1xf32> to vector<16x64xf32>
    %137 = arith.subf %124, %136 : vector<16x64xf32>
    %cst_51 = arith.constant 9.99999974E-6 : f32
    %138 = vector.broadcast %cst_51 : f32 to vector<16x1xf32>
    %139 = arith.addf %135, %138 : vector<16x1xf32>
    %140 = math.rsqrt %139 : vector<16x1xf32>
    %141 = vector.broadcast %140 : vector<16x1xf32> to vector<16x64xf32>
    %142 = arith.mulf %137, %141 : vector<16x64xf32>
    %c0_52 = arith.constant 0 : index
    %c0_53 = arith.constant 0 : index
    %143 = vector.load %arg11[%c0_52, %c0_53] : memref<1x64xf32, #tpu.memory_space<vmem>>, vector<1x64xf32>
    %144 = vector.broadcast %143 : vector<1x64xf32> to vector<16x64xf32>
    %145 = arith.mulf %142, %144 : vector<16x64xf32>
    %c0_54 = arith.constant 0 : index
    %c0_55 = arith.constant 0 : index
    %146 = vector.load %arg12[%c0_54, %c0_55] : memref<1x64xf32, #tpu.memory_space<vmem>>, vector<1x64xf32>
    %147 = vector.broadcast %146 : vector<1x64xf32> to vector<16x64xf32>
    %148 = arith.addf %145, %147 : vector<16x64xf32>
    %c0_56 = arith.constant 0 : index
    %c0_57 = arith.constant 0 : index
    %149 = vector.load %arg13[%c0_56, %c0_57] : memref<16x64xf32, #tpu.memory_space<vmem>>, vector<16x64xf32>
    tpu.vector_store %arg13[%c0_56, %c0_57], %148 {strides = array<i32>} : memref<16x64xf32, #tpu.memory_space<vmem>>, vector<16x64xf32>,
    return
  }
}

module attributes {stable_mosaic.version = 11 : i64} {
  func.func @_ffn_block_kernel(%arg0: memref<16x64xf32, #tpu.memory_space<vmem>>, %arg1: memref<64x128xbf16, #tpu.memory_space<vmem>>, %arg2: memref<1x128xf32, #tpu.memory_space<vmem>>, %arg3: memref<128x64xbf16, #tpu.memory_space<vmem>>, %arg4: memref<1x64xf32, #tpu.memory_space<vmem>>, %arg5: memref<1x64xf32, #tpu.memory_space<vmem>>, %arg6: memref<1x64xf32, #tpu.memory_space<vmem>>, %arg7: memref<16x64xf32, #tpu.memory_space<vmem>>) attributes {dimension_semantics = [], scalar_prefetch = 0 : i64, scratch_operands = 0 : i64, tpu.core_type = #tpu.core_type<tc>} {
    %c0 = arith.constant 0 : index
    %c0_0 = arith.constant 0 : index
    %0 = vector.load %arg0[%c0, %c0_0] : memref<16x64xf32, #tpu.memory_space<vmem>>, vector<16x64xf32>
    %1 = arith.truncf %0 : vector<16x64xf32> to vector<16x64xbf16>
    %c0_1 = arith.constant 0 : index
    %c0_2 = arith.constant 0 : index
    %2 = vector.load %arg1[%c0_1, %c0_2] : memref<64x128xbf16, #tpu.memory_space<vmem>>, vector<64x128xbf16>
    %cst = arith.constant dense<0.000000e+00> : vector<16x128xf32>
    %3 = tpu.matmul %1, %2, %cst {dimension_numbers = #tpu.dot_dimension_numbers<[1], [0], [0], [1], [0, 0, 1, 1], [], []>} : vector<16x64xbf16>, vector<64x128xbf16>, vector<16x128xf32> -> vector<16x128xf32>
    %c0_3 = arith.constant 0 : index
    %c0_4 = arith.constant 0 : index
    %4 = vector.load %arg2[%c0_3, %c0_4] : memref<1x128xf32, #tpu.memory_space<vmem>>, vector<1x128xf32>
    %5 = vector.broadcast %4 : vector<1x128xf32> to vector<16x128xf32>
    %6 = arith.addf %3, %5 : vector<16x128xf32>
    %cst_5 = arith.constant 5.000000e-01 : f32
    %7 = vector.broadcast %cst_5 : f32 to vector<16x128xf32>
    %8 = arith.mulf %7, %6 : vector<16x128xf32>
    %cst_6 = arith.constant 4.471500e-02 : f32
    %9 = vector.broadcast %cst_6 : f32 to vector<16x128xf32>
    %10 = arith.mulf %9, %6 : vector<16x128xf32>
    %11 = arith.mulf %10, %6 : vector<16x128xf32>
    %12 = arith.mulf %11, %6 : vector<16x128xf32>
    %13 = arith.addf %6, %12 : vector<16x128xf32>
    %cst_7 = arith.constant 0.797884583 : f32
    %14 = vector.broadcast %cst_7 : f32 to vector<16x128xf32>
    %15 = arith.mulf %14, %13 : vector<16x128xf32>
    %16 = math.tanh %15 : vector<16x128xf32>
    %cst_8 = arith.constant 1.000000e+00 : f32
    %17 = vector.broadcast %cst_8 : f32 to vector<16x128xf32>
    %18 = arith.addf %17, %16 : vector<16x128xf32>
    %19 = arith.mulf %8, %18 : vector<16x128xf32>
    %20 = arith.truncf %19 : vector<16x128xf32> to vector<16x128xbf16>
    %c0_9 = arith.constant 0 : index
    %c0_10 = arith.constant 0 : index
    %21 = vector.load %arg3[%c0_9, %c0_10] : memref<128x64xbf16, #tpu.memory_space<vmem>>, vector<128x64xbf16>
    %cst_11 = arith.constant dense<0.000000e+00> : vector<16x64xf32>
    %22 = tpu.matmul %20, %21, %cst_11 {dimension_numbers = #tpu.dot_dimension_numbers<[1], [0], [0], [1], [0, 0, 1, 1], [], []>} : vector<16x128xbf16>, vector<128x64xbf16>, vector<16x64xf32> -> vector<16x64xf32>
    %c0_12 = arith.constant 0 : index
    %c0_13 = arith.constant 0 : index
    %23 = vector.load %arg4[%c0_12, %c0_13] : memref<1x64xf32, #tpu.memory_space<vmem>>, vector<1x64xf32>
    %24 = vector.broadcast %23 : vector<1x64xf32> to vector<16x64xf32>
    %25 = arith.addf %22, %24 : vector<16x64xf32>
    %26 = arith.addf %0, %25 : vector<16x64xf32>
    %cst_14 = arith.constant dense<0.000000e+00> : vector<16xf32>
    %27 = vector.multi_reduction <add>, %26, %cst_14 [1] : vector<16x64xf32> to vector<16xf32>
    %28 = vector.shape_cast %27 : vector<16xf32> to vector<16x1xf32>
    %cst_15 = arith.constant 6.400000e+01 : f32
    %29 = vector.broadcast %cst_15 : f32 to vector<16x1xf32>
    %30 = arith.divf %28, %29 : vector<16x1xf32>
    %31 = vector.broadcast %30 : vector<16x1xf32> to vector<16x64xf32>
    %32 = arith.subf %26, %31 : vector<16x64xf32>
    %33 = arith.mulf %32, %32 : vector<16x64xf32>
    %cst_16 = arith.constant dense<0.000000e+00> : vector<16xf32>
    %34 = vector.multi_reduction <add>, %33, %cst_16 [1] : vector<16x64xf32> to vector<16xf32>
    %35 = vector.shape_cast %34 : vector<16xf32> to vector<16x1xf32>
    %cst_17 = arith.constant 6.400000e+01 : f32
    %36 = vector.broadcast %cst_17 : f32 to vector<16x1xf32>
    %37 = arith.divf %35, %36 : vector<16x1xf32>
    %38 = vector.broadcast %30 : vector<16x1xf32> to vector<16x64xf32>
    %39 = arith.subf %26, %38 : vector<16x64xf32>
    %cst_18 = arith.constant 9.99999974E-6 : f32
    %40 = vector.broadcast %cst_18 : f32 to vector<16x1xf32>
    %41 = arith.addf %37, %40 : vector<16x1xf32>
    %42 = math.rsqrt %41 : vector<16x1xf32>
    %43 = vector.broadcast %42 : vector<16x1xf32> to vector<16x64xf32>
    %44 = arith.mulf %39, %43 : vector<16x64xf32>
    %c0_19 = arith.constant 0 : index
    %c0_20 = arith.constant 0 : index
    %45 = vector.load %arg5[%c0_19, %c0_20] : memref<1x64xf32, #tpu.memory_space<vmem>>, vector<1x64xf32>
    %46 = vector.broadcast %45 : vector<1x64xf32> to vector<16x64xf32>
    %47 = arith.mulf %44, %46 : vector<16x64xf32>
    %c0_21 = arith.constant 0 : index
    %c0_22 = arith.constant 0 : index
    %48 = vector.load %arg6[%c0_21, %c0_22] : memref<1x64xf32, #tpu.memory_space<vmem>>, vector<1x64xf32>
    %49 = vector.broadcast %48 : vector<1x64xf32> to vector<16x64xf32>
    %50 = arith.addf %47, %49 : vector<16x64xf32>
    %c0_23 = arith.constant 0 : index
    %c0_24 = arith.constant 0 : index
    %51 = vector.load %arg7[%c0_23, %c0_24] : memref<16x64xf32, #tpu.memory_space<vmem>>, vector<16x64xf32>
    tpu.vector_store %arg7[%c0_23, %c0_24], %50 {strides = array<i32>} : memref<16x64xf32, #tpu.memory_space<vmem>>, vector<16x64xf32>,
    return
  }
}

module attributes {stable_mosaic.version = 11 : i64} {
  func.func @_out_linear_kernel(%arg0: memref<16x64xf32, #tpu.memory_space<vmem>>, %arg1: memref<64x128xbf16, #tpu.memory_space<vmem>>, %arg2: memref<1x128xf32, #tpu.memory_space<vmem>>, %arg3: memref<16x128xf32, #tpu.memory_space<vmem>>) attributes {dimension_semantics = [], scalar_prefetch = 0 : i64, scratch_operands = 0 : i64, tpu.core_type = #tpu.core_type<tc>} {
    %c0 = arith.constant 0 : index
    %c0_0 = arith.constant 0 : index
    %0 = vector.load %arg0[%c0, %c0_0] : memref<16x64xf32, #tpu.memory_space<vmem>>, vector<16x64xf32>
    %1 = arith.truncf %0 : vector<16x64xf32> to vector<16x64xbf16>
    %c0_1 = arith.constant 0 : index
    %c0_2 = arith.constant 0 : index
    %2 = vector.load %arg1[%c0_1, %c0_2] : memref<64x128xbf16, #tpu.memory_space<vmem>>, vector<64x128xbf16>
    %cst = arith.constant dense<0.000000e+00> : vector<16x128xf32>
    %3 = tpu.matmul %1, %2, %cst {dimension_numbers = #tpu.dot_dimension_numbers<[1], [0], [0], [1], [0, 0, 1, 1], [], []>} : vector<16x64xbf16>, vector<64x128xbf16>, vector<16x128xf32> -> vector<16x128xf32>
    %c0_3 = arith.constant 0 : index
    %c0_4 = arith.constant 0 : index
    %4 = vector.load %arg2[%c0_3, %c0_4] : memref<1x128xf32, #tpu.memory_space<vmem>>, vector<1x128xf32>
    %5 = vector.broadcast %4 : vector<1x128xf32> to vector<16x128xf32>
    %6 = arith.addf %3, %5 : vector<16x128xf32>
    %c0_5 = arith.constant 0 : index
    %c0_6 = arith.constant 0 : index
    %7 = vector.load %arg3[%c0_5, %c0_6] : memref<16x128xf32, #tpu.memory_space<vmem>>, vector<16x128xf32>
    tpu.vector_store %arg3[%c0_5, %c0_6], %6 {strides = array<i32>} : memref<16x128xf32, #tpu.memory_space<vmem>>, vector<16x128xf32>,
    return
  }
}

</mosaic_0001>

<bundles_post_ra>
// kernel: parallel_endecoder_forward.27
= control target key start
LH: loop header
LB: loop body
LE: loop exit
PB: predicated region body
PF: predicated region fallthrough
CT: control target
= control target key end

     0   :  { %vm16_vm0 = vcmask 261120   ;;  %s118_s0 = inlined_call_operand.vmem [shape: f32[16,32], index: 0, kind: input, shape index: {}]   ;;  %s119_s1 = inlined_call_operand.vmem [shape: f32[1,32], index: 1, kind: input, shape index: {}]   ;;  %s120_s2 = inlined_call_operand.vmem [shape: f32[1,32], index: 2, kind: input, shape index: {}]   ;;  %s121_s3 = inlined_call_operand.vmem [shape: f32[16,32], index: 3, kind: output, shape index: {}]  }
   0x1   :  { %v14_v0 = vld [vmem:[%s118_s0] sm:$0xff]  ;;  %v15_v1 = vld [vmem:[%s118_s0 + $0x8] sm:$0xff] }
   0x2   :  { %v17_v2 = vsel %vm16_vm0, %v14_v0, 0.0  ;;  %v20_v3 = vsel %vm16_vm0, %v15_v1, 0.0  ;;  %v68_v21 = vld [vmem:[%s119_s1] ss:$0 sm:$0xff] }
   0x3   :  { %18 = vadd.xlane.f32.xlu0 %v17_v2  ;;  %v69_v23 = vld [vmem:[%s120_s2] ss:$0 sm:$0xff] }
   0x7   :  { %21 = vadd.xlane.f32.xlu0 %v20_v3 }
  0x8c   :  { %v19_v4 = vpop.xlane.xlu0 %18 }
  0x8d   :  { %v24_v5 = vmul.f32 0.03125, %v19_v4 }
  0x8f   :  { %v26_v6 = vsub.f32 %v14_v0, %v24_v5 }
  0x90   :  { %v22_v7 = vpop.xlane.xlu0 %21 }
  0x91   :  { %v25_v8 = vmul.f32 0.03125, %v22_v7  ;;  %v28_v9 = vmul.f32 %v26_v6, %v26_v6 }
  0x93   :  { %v27_v10 = vsub.f32 %v15_v1, %v25_v8  ;;  %v30_v11 = vsel %vm16_vm0, %v28_v9, 0.0 }
  0x94   :  { %31 = vadd.xlane.f32.xlu1 %v30_v11 }
  0x95   :  { %v29_v12 = vmul.f32 %v27_v10, %v27_v10 }
  0x97   :  { %v33_v13 = vsel %vm16_vm0, %v29_v12, 0.0 }
  0x98   :  { %34 = vadd.xlane.f32.xlu1 %v33_v13 }
 0x11d   :  { %v32_v14 = vpop.xlane.xlu1 %31 }
 0x11e   :  { %v36_v15 = vmul.f32 0.03125, %v32_v14 }
 0x120   :  { %v38_v16 = vadd.f32 1e-05, %v36_v15 }
 0x121   :  { %v35_v17 = vpop.xlane.xlu1 %34 }
 0x122   :  { %70 = vrsqrt.f32 %v38_v16  ;;  %v37_v18 = vmul.f32 0.03125, %v35_v17 }
 0x124   :  { %v39_v19 = vadd.f32 1e-05, %v37_v18 }
 0x126   :  { %72 = vrsqrt.f32 %v39_v19 }
 0x12f   :  { %v71_v20 = vpop.eup %70 }
 0x130   :  { %v42_v22 = vmul.f32 %v71_v20, %v26_v6 }
 0x132   :  { %v51_v24 = vmul.f32 %v68_v21, %v42_v22 }
 0x133   :  { %v73_v25 = vpop.eup %72 }
 0x134   :  { %v60_v26 = vadd.f32 %v69_v23, %v51_v24  ;;  %v43_v27 = vmul.f32 %v73_v25, %v27_v10 }
 0x136   :  { %62 = vst.msk [vmem:[%s121_s3] sm:$0xff] %vm16_vm0, %v60_v26  ;;  %v52_v28 = vmul.f32 %v68_v21, %v43_v27 }
 0x138   :  { %v61_v29 = vadd.f32 %v69_v23, %v52_v28 }
 0x13a   :  { %63 = vst.msk [vmem:[%s121_s3 + $0x8] sm:$0xff] %vm16_vm0, %v61_v29 }

// kernel: parallel_endecoder_forward.17
= control target key start
LH: loop header
LB: loop body
LE: loop exit
PB: predicated region body
PF: predicated region fallthrough
CT: control target
= control target key end

     0   :  { %vm16_vm0 = vcmask 261120   ;;  %s118_s0 = inlined_call_operand.vmem [shape: f32[16,32], index: 0, kind: input, shape index: {}]   ;;  %s119_s1 = inlined_call_operand.vmem [shape: f32[1,32], index: 1, kind: input, shape index: {}]   ;;  %s120_s2 = inlined_call_operand.vmem [shape: f32[1,32], index: 2, kind: input, shape index: {}]   ;;  %s121_s3 = inlined_call_operand.vmem [shape: f32[16,32], index: 3, kind: output, shape index: {}]  }
   0x1   :  { %v14_v0 = vld [vmem:[%s118_s0] sm:$0xff]  ;;  %v15_v1 = vld [vmem:[%s118_s0 + $0x8] sm:$0xff] }
   0x2   :  { %v17_v2 = vsel %vm16_vm0, %v14_v0, 0.0  ;;  %v20_v3 = vsel %vm16_vm0, %v15_v1, 0.0  ;;  %v68_v21 = vld [vmem:[%s119_s1] ss:$0 sm:$0xff] }
   0x3   :  { %18 = vadd.xlane.f32.xlu0 %v17_v2  ;;  %v69_v23 = vld [vmem:[%s120_s2] ss:$0 sm:$0xff] }
   0x7   :  { %21 = vadd.xlane.f32.xlu0 %v20_v3 }
  0x8c   :  { %v19_v4 = vpop.xlane.xlu0 %18 }
  0x8d   :  { %v24_v5 = vmul.f32 0.03125, %v19_v4 }
  0x8f   :  { %v26_v6 = vsub.f32 %v14_v0, %v24_v5 }
  0x90   :  { %v22_v7 = vpop.xlane.xlu0 %21 }
  0x91   :  { %v25_v8 = vmul.f32 0.03125, %v22_v7  ;;  %v28_v9 = vmul.f32 %v26_v6, %v26_v6 }
  0x93   :  { %v27_v10 = vsub.f32 %v15_v1, %v25_v8  ;;  %v30_v11 = vsel %vm16_vm0, %v28_v9, 0.0 }
  0x94   :  { %31 = vadd.xlane.f32.xlu1 %v30_v11 }
  0x95   :  { %v29_v12 = vmul.f32 %v27_v10, %v27_v10 }
  0x97   :  { %v33_v13 = vsel %vm16_vm0, %v29_v12, 0.0 }
  0x98   :  { %34 = vadd.xlane.f32.xlu1 %v33_v13 }
 0x11d   :  { %v32_v14 = vpop.xlane.xlu1 %31 }
 0x11e   :  { %v36_v15 = vmul.f32 0.03125, %v32_v14 }
 0x120   :  { %v38_v16 = vadd.f32 1e-12, %v36_v15 }
 0x121   :  { %v35_v17 = vpop.xlane.xlu1 %34 }
 0x122   :  { %70 = vrsqrt.f32 %v38_v16  ;;  %v37_v18 = vmul.f32 0.03125, %v35_v17 }
 0x124   :  { %v39_v19 = vadd.f32 1e-12, %v37_v18 }
 0x126   :  { %72 = vrsqrt.f32 %v39_v19 }
 0x12f   :  { %v71_v20 = vpop.eup %70 }
 0x130   :  { %v42_v22 = vmul.f32 %v71_v20, %v26_v6 }
 0x132   :  { %v51_v24 = vmul.f32 %v68_v21, %v42_v22 }
 0x133   :  { %v73_v25 = vpop.eup %72 }
 0x134   :  { %v60_v26 = vadd.f32 %v69_v23, %v51_v24  ;;  %v43_v27 = vmul.f32 %v73_v25, %v27_v10 }
 0x136   :  { %62 = vst.msk [vmem:[%s121_s3] sm:$0xff] %vm16_vm0, %v60_v26  ;;  %v52_v28 = vmul.f32 %v68_v21, %v43_v27 }
 0x138   :  { %v61_v29 = vadd.f32 %v69_v23, %v52_v28 }
 0x13a   :  { %63 = vst.msk [vmem:[%s121_s3 + $0x8] sm:$0xff] %vm16_vm0, %v61_v29 }

// kernel: parallel_endecoder_forward.24
= control target key start
LH: loop header
LB: loop body
LE: loop exit
PB: predicated region body
PF: predicated region fallthrough
CT: control target
= control target key end

     0   :  { %v357_v0 = vmov 0.0   ;;  %vm358_vm0 = vmmov 0   ;;  %vm53_vm1 = vcmask 261120   ;;  %s468_s1 = inlined_call_operand.vmem [shape: bf16[32,128], index: 1, kind: input, shape index: {}]   ;;  %s469_s0 = inlined_call_operand.vmem [shape: f32[16,32], index: 0, kind: input, shape index: {}]   ;;  %s470_s3 = inlined_call_operand.vmem [shape: bf16[128,32], index: 3, kind: input, shape index: {}]   ;;  %s471_s2 = inlined_call_operand.vmem [shape: f32[1,128], index: 2, kind: input, shape index: {}]   ;;  %s472_s4 = inlined_call_operand.vmem [shape: f32[1,32], index: 4, kind: input, shape index: {}]   ;;  %s473_s5 = inlined_call_operand.vmem [shape: f32[1,32], index: 5, kind: input, shape index: {}]   ;;  %s474_s6 = inlined_call_operand.vmem [shape: f32[1,32], index: 6, kind: input, shape index: {}]   ;;  %s475_s7 = inlined_call_operand.vmem [shape: f32[16,32], index: 7, kind: output, shape index: {}]  }
   0x1   :  { %309 = vmatprep.subr.bf16.mxu0 %v357_v0  ;;  %v339_v1 = vld [vmem:[%s468_s1 + $0x8] sm:$0xff]   ;;  %313 = vmatprep.mubr.msk.bf16.mxu0 %vm358_vm0, %v357_v0  ;;  %v340_v2 = vld [vmem:[%s468_s1] sm:$0xff]   ;;  %v341_v6 = vld [vmem:[%s470_s3 + $0x38] sm:$0xff]  }
   0x2   :  { %317 = vmatprep.subr.bf16.mxu1 %v357_v0  ;;  %333 = vmatprep.mubr.msk.bf16.mxu1 %vm358_vm0, %v357_v0  ;;  %v408_v3 = vld [vmem:[%s469_s0] sm:$0xff]  ;;  %v413_v4 = vld [vmem:[%s469_s0 + $0x8] sm:$0xff]  ;;  %v342_v7 = vld [vmem:[%s470_s3 + $0x30] sm:$0xff]  }
   0x3   :  { %310 = vmatpush3.bf16.msra.mxu0 %v339_v1  ;;  %v29_v5 = vpack.c.bf16 %v413_v4, %v408_v3  ;;  %318 = vmatpush3.bf16.msra.mxu1 %v341_v6  ;;  %v343_v8 = vld [vmem:[%s470_s3 + $0x28] sm:$0xff]   ;;  %v344_v9 = vld [vmem:[%s470_s3 + $0x20] sm:$0xff]   ;;  %v345_v10 = vld [vmem:[%s470_s3 + $0x18] sm:$0xff]  }
   0x4   :  { %311 = vmatprep.subr.bf16.mxu0 %v357_v0  ;;  %319 = vmatprep.subr.bf16.mxu1 %v357_v0  ;;  %v346_v11 = vld [vmem:[%s470_s3 + $0x10] sm:$0xff]   ;;  %v347_v12 = vld [vmem:[%s470_s3 + $0x8] sm:$0xff]   ;;  %v348_v13 = vld [vmem:[%s470_s3] sm:$0xff]  }
   0x5   :  { %v282_v14 = vld [vmem:[%s471_s2] ss:$0 sm:$0xff] }
   0x6   :  { %v286_v40 = vld [vmem:[%s472_s4] ss:$0 sm:$0xff] }
   0x7   :  { %312 = vmatpush3.bf16.msra.mxu0 %v340_v2  ;;  %320 = vmatpush3.bf16.msra.mxu1 %v342_v7  ;;  %v296_v6 = vld [vmem:[%s474_s6] ss:$0 sm:$0xff] }
   0x8   :  { %321 = vmatprep.subr.bf16.mxu1 %v357_v0 }
   0xa   :  { %314 = vmatmul.mubr.msk.bf16.vlgmr.msra.gmra.mxu0 %vm53_vm1, %v29_v5 }
   0xb   :  { %322 = vmatpush3.bf16.msra.mxu1 %v343_v8 }
   0xc   :  { %323 = vmatprep.subr.bf16.mxu1 %v357_v0 }
   0xf   :  { %324 = vmatpush3.bf16.msra.mxu1 %v344_v9 }
  0x10   :  { %325 = vmatprep.subr.bf16.mxu1 %v357_v0 }
  0x13   :  { %326 = vmatpush3.bf16.msra.mxu1 %v345_v10 }
  0x14   :  { %327 = vmatprep.subr.bf16.mxu1 %v357_v0 }
  0x17   :  { %328 = vmatpush3.bf16.msra.mxu1 %v346_v11 }
  0x18   :  { %329 = vmatprep.subr.bf16.mxu1 %v357_v0 }
  0x1b   :  { %330 = vmatpush3.bf16.msra.mxu1 %v347_v12 }
  0x1c   :  { %331 = vmatprep.subr.bf16.mxu1 %v357_v0 }
  0x1f   :  { %332 = vmatpush3.bf16.msra.mxu1 %v348_v13 }
  0xca   :  { %v91_v15 = vpop.f32.mrf.mxu0 }
  0xcb   :  { %v92_v16 = vadd.f32 %v282_v14, %v91_v15 }
  0xcc   :  { %v315_v17 = vpop.f32.mrf.mxu0 }
  0xcd   :  { %v100_v18 = vmul.f32 0.044715, %v92_v16  ;;  %v98_v34 = vmul.f32 0.5, %v92_v16 }
  0xce   :  { %v94_v19 = vpop.f32.mrf.mxu0 }
  0xcf   :  { %v102_v20 = vmul.f32 %v100_v18, %v92_v16  ;;  %v95_v21 = vadd.f32 %v282_v14, %v94_v19 }
  0xd0   :  { %v316_v22 = vpop.f32.mrf.mxu0 }
  0xd1   :  { %v104_v23 = vmul.f32 %v102_v20, %v92_v16  ;;  %v101_v24 = vmul.f32 0.044715, %v95_v21  ;;  %v99_v35 = vmul.f32 0.5, %v95_v21 }
  0xd3   :  { %v103_v25 = vmul.f32 %v101_v24, %v95_v21  ;;  %v106_v26 = vadd.f32 %v104_v23, %v92_v16 }
  0xd5   :  { %v105_v27 = vmul.f32 %v103_v25, %v95_v21  ;;  %v108_v28 = vmul.f32 0.7978846, %v106_v26 }
  0xd7   :  { %v107_v29 = vadd.f32 %v105_v27, %v95_v21  ;;  %349 = vtanh.f32 %v108_v28 }
  0xd9   :  { %v109_v30 = vmul.f32 0.7978846, %v107_v29 }
  0xdb   :  { %351 = vtanh.f32 %v109_v30 }
  0xe4   :  { %v350_v31 = vpop.eup %349 }
  0xe5   :  { %v112_v32 = vadd.f32 1.0, %v350_v31 }
  0xe7   :  { %v114_v37 = vmul.f32 %v112_v32, %v98_v34 }
  0xe8   :  { %v352_v33 = vpop.eup %351 }
  0xe9   :  { %v113_v36 = vadd.f32 1.0, %v352_v33 }
  0xeb   :  { %v115_v38 = vmul.f32 %v113_v36, %v99_v35 }
  0xed   :  { %v116_v39 = vpack.c.bf16 %v115_v38, %v114_v37 }
  0xef   :  { %334 = vmatmul.mubr.bf16.vlgmr.msra.gmra.mxu1 %v116_v39 }
 0x1af   :  { %v222_v41 = vpop.f32.mrf.mxu1 }
 0x1b0   :  { %v223_v42 = vadd.f32 %v286_v40, %v222_v41 }
 0x1b1   :  { %v335_v43 = vpop.f32.mrf.mxu1 }
 0x1b2   :  { %v229_v44 = vadd.f32 %v223_v42, %v408_v3 }
 0x1b3   :  { %v225_v45 = vpop.f32.mrf.mxu1 }
 0x1b4   :  { %v226_v46 = vadd.f32 %v286_v40, %v225_v45  ;;  %v231_v47 = vsel %vm53_vm1, %v229_v44, 0.0 }
 0x1b5   :  { %232 = vadd.xlane.f32.xlu0 %v231_v47  ;;  %v336_v48 = vpop.f32.mrf.mxu1 }
 0x1b6   :  { %v230_v49 = vadd.f32 %v226_v46, %v413_v4  ;;  %v295_v4 = vld [vmem:[%s473_s5] ss:$0 sm:$0xff] }
 0x1b8   :  { %v234_v50 = vsel %vm53_vm1, %v230_v49, 0.0 }
 0x1b9   :  { %235 = vadd.xlane.f32.xlu0 %v234_v50 }
 0x23e   :  { %v233_v51 = vpop.xlane.xlu0 %232 }
 0x23f   :  { %v238_v52 = vmul.f32 0.03125, %v233_v51 }
 0x241   :  { %v240_v53 = vsub.f32 %v229_v44, %v238_v52 }
 0x242   :  { %v236_v54 = vpop.xlane.xlu0 %235 }
 0x243   :  { %v239_v55 = vmul.f32 0.03125, %v236_v54  ;;  %v242_v56 = vmul.f32 %v240_v53, %v240_v53 }
 0x245   :  { %v241_v57 = vsub.f32 %v230_v49, %v239_v55  ;;  %v244_v58 = vsel %vm53_vm1, %v242_v56, 0.0 }
 0x246   :  { %245 = vadd.xlane.f32.xlu1 %v244_v58 }
 0x247   :  { %v243_v59 = vmul.f32 %v241_v57, %v241_v57 }
 0x249   :  { %v247_v60 = vsel %vm53_vm1, %v243_v59, 0.0 }
 0x24a   :  { %248 = vadd.xlane.f32.xlu1 %v247_v60 }
 0x2cf   :  { %v246_v61 = vpop.xlane.xlu1 %245 }
 0x2d0   :  { %v250_v62 = vmul.f32 0.03125, %v246_v61 }
 0x2d2   :  { %v252_v63 = vadd.f32 1e-05, %v250_v62 }
 0x2d3   :  { %v249_v0 = vpop.xlane.xlu1 %248 }
 0x2d4   :  { %353 = vrsqrt.f32 %v252_v63  ;;  %v251_v1 = vmul.f32 0.03125, %v249_v0 }
 0x2d6   :  { %v253_v2 = vadd.f32 1e-05, %v251_v1 }
 0x2d8   :  { %355 = vrsqrt.f32 %v253_v2 }
 0x2e1   :  { %v354_v3 = vpop.eup %353 }
 0x2e2   :  { %v256_v5 = vmul.f32 %v354_v3, %v240_v53 }
 0x2e4   :  { %v265_v7 = vmul.f32 %v295_v4, %v256_v5 }
 0x2e5   :  { %v356_v8 = vpop.eup %355 }
 0x2e6   :  { %v274_v9 = vadd.f32 %v296_v6, %v265_v7  ;;  %v257_v10 = vmul.f32 %v356_v8, %v241_v57 }
 0x2e8   :  { %276 = vst.msk [vmem:[%s475_s7] sm:$0xff] %vm53_vm1, %v274_v9  ;;  %v266_v11 = vmul.f32 %v295_v4, %v257_v10 }
 0x2ea   :  { %v275_v12 = vadd.f32 %v296_v6, %v266_v11 }
 0x2ec   :  { %277 = vst.msk [vmem:[%s475_s7 + $0x8] sm:$0xff] %vm53_vm1, %v275_v12 }

// kernel: parallel_endecoder_forward.28
= control target key start
LH: loop header
LB: loop body
LE: loop exit
PB: predicated region body
PF: predicated region fallthrough
CT: control target
= control target key end

     0   :  { %v1340_v0 = vmov 0.0   ;;  %vm1341_vm0 = vmmov 0   ;;  %vm73_vm1 = vcmask 261120   ;;  %vm261_vm2 = vcmask 64512   ;;  %s1344_s18 = smov 104   ;;  %s1618_s5 = inlined_call_operand.vmem [shape: bf16[32,32], index: 5, kind: input, shape index: {}]   ;;  %s1619_s3 = inlined_call_operand.vmem [shape: bf16[32,32], index: 3, kind: input, shape index: {}]   ;;  %s1620_s1 = inlined_call_operand.vmem [shape: f32[16,32], index: 1, kind: input, shape index: {}, may-alias: {0,1}]   ;;  %s1621_s0 = inlined_call_operand.vmem [shape: f32[16,32], index: 0, kind: input, shape index: {}, may-alias: {0,1}]   ;;  %s1622_s4 = inlined_call_operand.vmem [shape: f32[1,32], index: 4, kind: input, shape index: {}]   ;;  %s1623_s6 = inlined_call_operand.vmem [shape: f32[1,32], index: 6, kind: input, shape index: {}]   ;;  %s1624_s7 = inlined_call_operand.vmem [shape: bf16[32,32], index: 7, kind: input, shape index: {}]   ;;  %s1625_s2 = inlined_call_operand.vmem [shape: f32[16,16], index: 2, kind: input, shape index: {}]   ;;  %s1626_s8 = inlined_call_operand.vmem [shape: f32[1,32], index: 8, kind: input, shape index: {}]   ;;  %s1627_s9 = inlined_call_operand.vmem [shape: f32[32,32], index: 9, kind: input, shape index: {}]   ;;  %s1628_s10 = inlined_call_operand.vmem [shape: f32[1,32], index: 10, kind: input, shape index: {}]   ;;  %s1629_s11 = inlined_call_operand.vmem [shape: f32[1,32], index: 11, kind: input, shape index: {}]   ;;  %s1630_s12 = inlined_call_operand.vmem [shape: f32[1,32], index: 12, kind: input, shape index: {}]   ;;  %s1631_s13 = inlined_call_operand.vmem [shape: f32[16,32], index: 13, kind: output, shape index: {}]  }
   0x1   :  { %1209 = vmatprep.subr.bf16.mxu1 %v1340_v0  ;;  %1201 = vmatprep.subr.bf16.mxu0 %v1340_v0  ;;  %v1298_v1 = vld [vmem:[%s1618_s5 + $0x8] sm:$0xff]   ;;  %v1300_v3 = vld [vmem:[%s1618_s5] sm:$0xff]   ;;  %vm309_vm3 = vcmask 130048  }
   0x2   :  { %v1299_v2 = vld [vmem:[%s1619_s3 + $0x8] sm:$0xff]   ;;  %1213 = vmatprep.mubr.msk.bf16.mxu1 %vm1341_vm0, %v1340_v0  ;;  %1205 = vmatprep.mubr.msk.bf16.mxu0 %vm1341_vm0, %v1340_v0  ;;  %v1301_v4 = vld [vmem:[%s1619_s3] sm:$0xff]  }
   0x3   :  { %1210 = vmatpush3.bf16.msra.mxu1 %v1298_v1  ;;  %1202 = vmatpush3.bf16.msra.mxu0 %v1299_v2  ;;  %v47_v5 = vld [vmem:[%s1620_s1] sm:$0xff]  ;;  %v48_v6 = vld [vmem:[%s1620_s1 + $0x8] sm:$0xff] }
   0x4   :  { %1211 = vmatprep.subr.bf16.mxu1 %v1340_v0  ;;  %1203 = vmatprep.subr.bf16.mxu0 %v1340_v0  ;;  %v1444_v7 = vld [vmem:[%s1621_s0] sm:$0xff]  ;;  %v118_v8 = vpack.c.bf16 %v48_v6, %v47_v5  ;;  %v1449_v9 = vld [vmem:[%s1621_s0 + $0x8] sm:$0xff] }
   0x5   :  { %v49_v10 = vpack.c.bf16 %v1449_v9, %v1444_v7  ;;  %v1133_v11 = vld [vmem:[%s1622_s4] ss:$0 sm:$0xff]  ;;  %s1342_s4 = smov 120   ;;  %v1302_v30 = vld [vmem:[%s1624_s7 + $0x8] sm:$0xff]  }
   0x6   :  { %v1137_v14 = vld [vmem:[%s1623_s6] ss:$0 sm:$0xff]  ;;  %v1504_v39 = vld [vmem:[%s1625_s2 + $0x8] sm:$0xff] }
   0x7   :  { %1212 = vmatpush3.bf16.msra.mxu1 %v1300_v3  ;;  %1204 = vmatpush3.bf16.msra.mxu0 %v1301_v4  ;;  %v1303_v31 = vld [vmem:[%s1624_s7] sm:$0xff]  }
   0x8   :  { %1225 = vmatprep.subr.bf16.mxu1 %v1340_v0  ;;  %1217 = vmatprep.subr.bf16.mxu0 %v1340_v0  ;;  %v1498_v35 = vld [vmem:[%s1625_s2] sm:$0xff]  ;;  %s1343_s2 = smov 112  }
   0x9   :  { %v1141_v60 = vld [vmem:[%s1626_s8] ss:$0 sm:$0xff] }
   0xa   :  { %1214 = vmatmul.mubr.msk.bf16.vlgmr.msra.gmra.mxu1 %vm73_vm1, %v118_v8  ;;  %1206 = vmatmul.mubr.msk.bf16.vlgmr.msra.gmra.mxu0 %vm73_vm1, %v49_v10 }
   0xb   :  { %1227 = vmatprep.mubr.msk.bf16.mxu1 %vm1341_vm0, %v1340_v0  ;;  %1221 = vmatprep.mubr.msk.bf16.mxu0 %vm1341_vm0, %v1340_v0 }
   0xc   :  { %1218 = vmatpush3.bf16.msra.mxu0 %v1302_v30 }
   0xd   :  { %1219 = vmatprep.subr.bf16.mxu0 %v1340_v0 }
  0x10   :  { %1220 = vmatpush3.bf16.msra.mxu0 %v1303_v31 }
  0x11   :  { %1231 = vmatprep.subr.bf16.mxu0 %v1340_v0 }
  0x13   :  { %1222 = vmatmul.mubr.msk.bf16.vlgmr.msra.gmra.mxu0 %vm73_vm1, %v118_v8 }
  0x14   :  { %1233 = vmatprep.mubr.msk.bf16.mxu0 %vm1341_vm0, %v1340_v0 }
  0xca   :  { %v179_v12 = vpop.f32.mrf.mxu1  ;;  %v111_v13 = vpop.f32.mrf.mxu0 }
  0xcb   :  { %v112_v15 = vadd.f32 %v1133_v11, %v111_v13  ;;  %v180_v19 = vadd.f32 %v1137_v14, %v179_v12 }
  0xcc   :  { %v1215_v16 = vpop.f32.mrf.mxu1  ;;  %v1207_v17 = vpop.f32.mrf.mxu0 }
  0xcd   :  { %v256_v22 = vmul.f32 0.35355338, %v112_v15 }
  0xce   :  { %v182_v18 = vpop.f32.mrf.mxu1  ;;  %v114_v21 = vpop.f32.mrf.mxu0 }
  0xcf   :  { %v183_v20 = vadd.f32 %v1137_v14, %v182_v18  ;;  %v115_v23 = vadd.f32 %v1133_v11, %v114_v21 }
  0xd0   :  { %v1216_v24 = vpop.f32.mrf.mxu1  ;;  %v1208_v26 = vpop.f32.mrf.mxu0 }
  0xd1   :  { %v1467_v25 = vpack.c.bf16 %v183_v20, %v180_v19  ;;  %v257_v27 = vmul.f32 0.35355338, %v115_v23 }
  0xd3   :  { %381 = vrot.lane.b32.xlu0 %v1467_v25, %s1342_s4  ;;  %v266_v28 = vsel %vm261_vm2, %v1467_v25, 0  ;;  %v1473_v29 = vpack.c.bf16 %v257_v27, %v256_v22  ;;  %v243_v59 = vpop.f32.mrf.mxu0 }
  0xd4   :  { %1226 = vmatpush3.bf16.xpose.msra.mxu1 %v266_v28  ;;  %v244_v62 = vadd.f32 %v1141_v60, %v243_v59 }
  0xd5   :  { %1237 = vmatprep.subr.bf16.mxu1 %v1340_v0  ;;  %v1223_v61 = vpop.f32.mrf.mxu0 }
  0xd7   :  { %378 = vrot.lane.b32.xlu0 %v1473_v29, %s1342_s4  ;;  %v246_v63 = vpop.f32.mrf.mxu0 }
  0xd8   :  { %v247_v1 = vadd.f32 %v1141_v60, %v246_v63 }
  0xd9   :  { %v1224_v2 = vpop.f32.mrf.mxu0 }
  0xda   :  { %v1518_v4 = vpack.c.bf16 %v247_v1, %v244_v62 }
  0xdb   :  { %1228 = vmatmul.mubr.msk.bf16.vlgmr.msra.gmra.mxu1 %vm261_vm2, %v1473_v29 }
  0xdc   :  { %1239 = vmatprep.mubr.msk.bf16.mxu1 %vm1341_vm0, %v1340_v0  ;;  %1232 = vmatpush3.bf16.msra.mxu0 %v1518_v4 }
  0xdd   :  { %1243 = vmatprep.subr.bf16.mxu0 %v1340_v0 }
 0x145   :  { %v382_v32 = vpop.permute.xlu0 %381 }
 0x146   :  { %v387_v33 = vsel %vm261_vm2, %v382_v32, 0 }
 0x147   :  { %1238 = vmatpush3.bf16.xpose.msra.mxu1 %v387_v33 }
 0x149   :  { %v379_v34 = vpop.permute.xlu0 %378 }
 0x14e   :  { %1240 = vmatmul.mubr.msk.bf16.vlgmr.msra.gmra.mxu1 %vm261_vm2, %v379_v34 }
 0x19b   :  { %v302_v36 = vpop.f32.mrf.mxu1 }
 0x19c   :  { %v303_v37 = vadd.f32 %v302_v36, %v1498_v35 }
 0x19d   :  { %v1229_v38 = vpop.f32.mrf.mxu1 }
 0x19e   :  { %v310_v40 = vsel %vm309_vm3, %v303_v37, -inf }
 0x19f   :  { %311 = vmax.xlane.f32.xlu1 %v310_v40  ;;  %v305_v41 = vpop.f32.mrf.mxu1 }
 0x1a0   :  { %v306_v42 = vadd.f32 %v305_v41, %v1504_v39 }
 0x1a1   :  { %v1230_v43 = vpop.f32.mrf.mxu1 }
 0x1a2   :  { %v313_v44 = vsel %vm309_vm3, %v306_v42, -inf  ;;  %v252_v43 = vld [vmem:[%s1627_s9] sm:$0xff] }
 0x1a3   :  { %314 = vmax.xlane.f32.xlu1 %v313_v44 }
 0x20e   :  { %v423_v45 = vpop.f32.mrf.mxu1 }
 0x20f   :  { %v424_v46 = vadd.f32 %v423_v45, %v1498_v35 }
 0x210   :  { %v1241_v47 = vpop.f32.mrf.mxu1 }
 0x211   :  { %v430_v48 = vsel %vm309_vm3, %v424_v46, -inf }
 0x212   :  { %431 = vmax.xlane.f32.xlu0 %v430_v48  ;;  %v426_v49 = vpop.f32.mrf.mxu1 }
 0x213   :  { %v427_v50 = vadd.f32 %v426_v49, %v1504_v39 }
 0x214   :  { %v1242_v51 = vpop.f32.mrf.mxu1 }
 0x215   :  { %v433_v52 = vsel %vm309_vm3, %v427_v50, -inf }
 0x216   :  { %434 = vmax.xlane.f32.xlu1 %v433_v52 }
 0x228   :  { %v312_v53 = vpop.xlane.xlu1 %311  ;;  %665 = vrot.lane.b32.xlu0 %v1467_v25, %s1343_s2 }
 0x229   :  { %v316_v54 = vsub.f32 %v303_v37, %v312_v53 }
 0x22b   :  { %v318_v55 = vmul.f32 1.442695, %v316_v54 }
 0x22c   :  { %v315_v56 = vpop.xlane.xlu1 %314 }
 0x22d   :  { %1304 = vpow2.f32 %v318_v55  ;;  %v317_v57 = vsub.f32 %v306_v42, %v315_v56  ;;  %v253_v42 = vld [vmem:[%s1627_s9 + $0x8] sm:$0xff] }
 0x22e   :  { %1249 = vmatprep.subr.mxu1 %v253_v42 }
 0x22f   :  { %v320_v58 = vmul.f32 1.442695, %v317_v57  ;;  %1250 = vmatpush3.msra.mxu1 %v253_v42 }
 0x230   :  { %1254 = vmatprep.subr.mxu1 %v252_v43 }
 0x231   :  { %1306 = vpow2.f32 %v320_v58 }
 0x23a   :  { %v1305_v3 = vpop.eup %1304 }
 0x23b   :  { %v322_v5 = vsel %vm309_vm3, %v1305_v3, 0.0 }
 0x23c   :  { %323 = vadd.xlane.f32.xlu1 %v322_v5 }
 0x23e   :  { %v1307_v6 = vpop.eup %1306 }
 0x23f   :  { %v325_v8 = vsel %vm309_vm3, %v1307_v6, 0.0 }
 0x240   :  { %326 = vadd.xlane.f32.xlu1 %v325_v8 }
 0x29b   :  { %v432_v10 = vpop.xlane.xlu0 %431 }
 0x29c   :  { %v436_v11 = vsub.f32 %v424_v46, %v432_v10 }
 0x29e   :  { %v438_v12 = vmul.f32 1.442695, %v436_v11 }
 0x29f   :  { %v435_v13 = vpop.xlane.xlu1 %434  ;;  %v666_v37 = vpop.permute.xlu0 %665 }
 0x2a0   :  { %1308 = vpow2.f32 %v438_v12  ;;  %v437_v14 = vsub.f32 %v427_v50, %v435_v13  ;;  %v671_v40 = vsel %vm261_vm2, %v666_v37, 0 }
 0x2a2   :  { %v440_v15 = vmul.f32 1.442695, %v437_v14 }
 0x2a4   :  { %1310 = vpow2.f32 %v440_v15 }
 0x2ad   :  { %v1309_v16 = vpop.eup %1308 }
 0x2ae   :  { %v442_v17 = vsel %vm309_vm3, %v1309_v16, 0.0 }
 0x2af   :  { %443 = vadd.xlane.f32.xlu1 %v442_v17 }
 0x2b1   :  { %v1311_v18 = vpop.eup %1310 }
 0x2b2   :  { %v445_v19 = vsel %vm309_vm3, %v1311_v18, 0.0 }
 0x2b3   :  { %446 = vadd.xlane.f32.xlu1 %v445_v19 }
 0x2c4   :  { %454 = vrot.lane.b32.xlu1 %v1518_v4, %s1342_s4 }
 0x2c5   :  { %v324_v20 = vpop.xlane.xlu1 %323 }
 0x2c6   :  { %1312 = vrcp.f32 %v324_v20 }
 0x2c8   :  { %663 = vrot.lane.b32.xlu1 %v1473_v29, %s1343_s2 }
 0x2c9   :  { %v327_v21 = vpop.xlane.xlu1 %326 }
 0x2ca   :  { %1314 = vrcp.f32 %v327_v21 }
 0x2d3   :  { %v1313_v22 = vpop.eup %1312 }
 0x2d4   :  { %v330_v24 = vmul.f32 %v1313_v22, %v1305_v3 }
 0x2d7   :  { %v1315_v23 = vpop.eup %1314 }
 0x2d8   :  { %v331_v26 = vmul.f32 %v1315_v23, %v1307_v6  ;;  %v254_v23 = vld [vmem:[%s1627_s9 + $0x10] sm:$0xff] }
 0x2da   :  { %v332_v27 = vpack.c.bf16 %v331_v26, %v330_v24 }
 0x2dc   :  { %1234 = vmatmul.mubr.msk.bf16.vlgmr.msra.gmra.mxu0 %vm309_vm3, %v332_v27 }
 0x2dd   :  { %1245 = vmatprep.mubr.msk.bf16.mxu0 %vm1341_vm0, %v1340_v0 }
 0x338   :  { %v444_v28 = vpop.xlane.xlu1 %443 }
 0x339   :  { %1316 = vrcp.f32 %v444_v28 }
 0x33c   :  { %v447_v30 = vpop.xlane.xlu1 %446 }
 0x33d   :  { %1318 = vrcp.f32 %v447_v30 }
 0x340   :  { %v455_v31 = vpop.permute.xlu1 %454 }
 0x341   :  { %1244 = vmatpush3.bf16.msra.mxu0 %v455_v31 }
 0x342   :  { %1259 = vmatprep.subr.bf16.mxu0 %v1340_v0 }
 0x344   :  { %v664_v41 = vpop.permute.xlu1 %663 }
 0x346   :  { %v1317_v32 = vpop.eup %1316 }
 0x347   :  { %v450_v34 = vmul.f32 %v1317_v32, %v1309_v16 }
 0x34a   :  { %v1319_v33 = vpop.eup %1318 }
 0x34b   :  { %v451_v36 = vmul.f32 %v1319_v33, %v1311_v18 }
 0x34d   :  { %v452_v38 = vpack.c.bf16 %v451_v36, %v450_v34 }
 0x34f   :  { %1246 = vmatmul.mubr.msk.bf16.vlgmr.msra.gmra.mxu0 %vm309_vm3, %v452_v38 }
 0x350   :  { %1260 = vmatpush3.bf16.xpose.msra.mxu0 %v671_v40  ;;  %1261 = vmatprep.mubr.msk.bf16.mxu0 %vm1341_vm0, %v1340_v0 }
 0x351   :  { %1271 = vmatprep.subr.mxu0 %v254_v23 }
 0x357   :  { %1262 = vmatmul.mubr.msk.bf16.vlgmr.msra.gmra.mxu0 %vm261_vm2, %v664_v41 }
 0x358   :  { %1272 = vmatpush3.msra.mxu0 %v254_v23 }
 0x359   :  { %1282 = vmatprep.subr.bf16.mxu0 %v1340_v0 }
 0x39c   :  { %v370_v44 = vpop.f32.mrf.mxu0 }
 0x39e   :  { %v1235_v45 = vpop.f32.mrf.mxu0 }
 0x3a0   :  { %v373_v46 = vpop.f32.mrf.mxu0 }
 0x3a2   :  { %v1236_v47 = vpop.f32.mrf.mxu0 }
 0x40f   :  { %v494_v48 = vpop.f32.mrf.mxu0 }
 0x410   :  { %1251 = vmatprep.mubr.msk.f32.mxu1 %vm261_vm2, %v494_v48 }
 0x411   :  { %v1247_v49 = vpop.f32.mrf.mxu0 }
 0x413   :  { %v497_v50 = vpop.f32.mrf.mxu0 }
 0x414   :  { %1252 = vmatmul.mubr.msk.f32.vlgmr.msra.gmra.mxu1 %vm261_vm2, %v497_v50  ;;  %v255_v50 = vld [vmem:[%s1627_s9 + $0x18] sm:$0xff] }
 0x415   :  { %v1248_v51 = vpop.f32.mrf.mxu0  ;;  %1256 = vmatprep.mubr.msk.f32.mxu1 %vm261_vm2, %v370_v44  ;;  %1255 = vmatpush3.msra.mxu1 %v252_v43 }
 0x416   :  { %1265 = vmatprep.subr.bf16.mxu1 %v1340_v0 }
 0x417   :  { %v707_v52 = vpop.f32.mrf.mxu0 }
 0x418   :  { %v708_v53 = vadd.f32 %v707_v52, %v1498_v35  ;;  %1257 = vmatmul.mubr.msk.f32.vlgmr.msra.gmra.mxu1 %vm261_vm2, %v373_v46 }
 0x419   :  { %v1263_v54 = vpop.f32.mrf.mxu0  ;;  %1267 = vmatprep.mubr.msk.bf16.mxu1 %vm1341_vm0, %v1340_v0 }
 0x41a   :  { %v714_v55 = vsel %vm309_vm3, %v708_v53, -inf }
 0x41b   :  { %715 = vmax.xlane.f32.xlu1 %v714_v55  ;;  %v710_v56 = vpop.f32.mrf.mxu0 }
 0x41c   :  { %v711_v57 = vadd.f32 %v710_v56, %v1504_v39 }
 0x41d   :  { %v1264_v58 = vpop.f32.mrf.mxu0 }
 0x41e   :  { %v717_v59 = vsel %vm309_vm3, %v711_v57, -inf }
 0x41f   :  { %718 = vmax.xlane.f32.xlu0 %v717_v59 }
 0x435   :  { %737 = vrot.lane.b32.xlu0 %v1518_v4, %s1343_s2 }
 0x4a4   :  { %v716_v60 = vpop.xlane.xlu1 %715 }
 0x4a5   :  { %v720_v61 = vsub.f32 %v708_v53, %v716_v60 }
 0x4a7   :  { %v722_v62 = vmul.f32 1.442695, %v720_v61 }
 0x4a8   :  { %v719_v63 = vpop.xlane.xlu0 %718 }
 0x4a9   :  { %1320 = vpow2.f32 %v722_v62  ;;  %v721_v1 = vsub.f32 %v711_v57, %v719_v63 }
 0x4ab   :  { %v724_v2 = vmul.f32 1.442695, %v721_v1 }
 0x4ac   :  { %v738_v3 = vpop.permute.xlu0 %737 }
 0x4ad   :  { %1322 = vpow2.f32 %v724_v2  ;;  %1266 = vmatpush3.bf16.msra.mxu1 %v738_v3 }
 0x4ae   :  { %1276 = vmatprep.subr.bf16.mxu1 %v1340_v0 }
 0x4b6   :  { %v1321_v5 = vpop.eup %1320 }
 0x4b7   :  { %v726_v6 = vsel %vm309_vm3, %v1321_v5, 0.0 }
 0x4b8   :  { %727 = vadd.xlane.f32.xlu1 %v726_v6 }
 0x4ba   :  { %v1323_v8 = vpop.eup %1322 }
 0x4bb   :  { %v729_v10 = vsel %vm309_vm3, %v1323_v8, 0.0 }
 0x4bc   :  { %730 = vadd.xlane.f32.xlu1 %v729_v10 }
 0x4cd   :  { %869 = vrot.lane.b32.xlu1 %v1467_v25, %s1344_s18 }
 0x4d1   :  { %867 = vrot.lane.b32.xlu1 %v1473_v29, %s1344_s18 }
 0x4d4   :  { %v1253_v11 = vpop.f32.mrf.mxu1 }
 0x4d6   :  { %v1565_v12 = vpop.f32.mrf.mxu1 }
 0x4d8   :  { %v1258_v13 = vpop.f32.mrf.mxu1 }
 0x4d9   :  { %v660_v14 = vadd.f32 %v1258_v13, %v1253_v11  ;;  %v1161_v11 = vld [vmem:[%s1628_s10] ss:$0 sm:$0xff] }
 0x4da   :  { %v654_v24 = vpop.f32.mrf.mxu1 }
 0x4db   :  { %v655_v63 = vadd.f32 %v654_v24, %v1565_v12 }
 0x541   :  { %v728_v15 = vpop.xlane.xlu1 %727 }
 0x542   :  { %1324 = vrcp.f32 %v728_v15 }
 0x545   :  { %v731_v16 = vpop.xlane.xlu1 %730 }
 0x546   :  { %1326 = vrcp.f32 %v731_v16 }
 0x549   :  { %v870_v21 = vpop.permute.xlu1 %869 }
 0x54a   :  { %v875_v25 = vsel %vm261_vm2, %v870_v21, 0 }
 0x54d   :  { %v868_v29 = vpop.permute.xlu1 %867 }
 0x54f   :  { %v1325_v17 = vpop.eup %1324 }
 0x550   :  { %v734_v19 = vmul.f32 %v1325_v17, %v1321_v5 }
 0x553   :  { %v1327_v18 = vpop.eup %1326 }
 0x554   :  { %v735_v20 = vmul.f32 %v1327_v18, %v1323_v8 }
 0x556   :  { %v736_v22 = vpack.c.bf16 %v735_v20, %v734_v19 }
 0x558   :  { %1268 = vmatmul.mubr.msk.bf16.vlgmr.msra.gmra.mxu1 %vm309_vm3, %v736_v22 }
 0x559   :  { %1277 = vmatpush3.bf16.xpose.msra.mxu1 %v875_v25  ;;  %1278 = vmatprep.mubr.msk.bf16.mxu1 %vm1341_vm0, %v1340_v0 }
 0x55a   :  { %1288 = vmatprep.subr.mxu1 %v255_v50 }
 0x560   :  { %1279 = vmatmul.mubr.msk.bf16.vlgmr.msra.gmra.mxu1 %vm261_vm2, %v868_v29 }
 0x561   :  { %1289 = vmatpush3.msra.mxu1 %v255_v50 }
 0x618   :  { %v777_v26 = vpop.f32.mrf.mxu1 }
 0x619   :  { %1273 = vmatprep.mubr.msk.f32.mxu0 %vm261_vm2, %v777_v26 }
 0x61a   :  { %v1269_v27 = vpop.f32.mrf.mxu1 }
 0x61c   :  { %v780_v28 = vpop.f32.mrf.mxu1 }
 0x61d   :  { %1274 = vmatmul.mubr.msk.f32.vlgmr.msra.gmra.mxu0 %vm261_vm2, %v780_v28 }
 0x61e   :  { %v1270_v30 = vpop.f32.mrf.mxu1  ;;  %1284 = vmatprep.mubr.msk.bf16.mxu0 %vm1341_vm0, %v1340_v0 }
 0x620   :  { %v911_v31 = vpop.f32.mrf.mxu1 }
 0x621   :  { %v912_v32 = vadd.f32 %v911_v31, %v1498_v35  ;;  %v1162_v31 = vld [vmem:[%s1629_s11] ss:$0 sm:$0xff] }
 0x622   :  { %v1280_v33 = vpop.f32.mrf.mxu1 }
 0x623   :  { %v918_v34 = vsel %vm309_vm3, %v912_v32, -inf  ;;  %v1163_v33 = vld [vmem:[%s1630_s12] ss:$0 sm:$0xff] }
 0x624   :  { %919 = vmax.xlane.f32.xlu0 %v918_v34  ;;  %v914_v36 = vpop.f32.mrf.mxu1 }
 0x625   :  { %v915_v37 = vadd.f32 %v914_v36, %v1504_v39 }
 0x626   :  { %v1281_v38 = vpop.f32.mrf.mxu1 }
 0x627   :  { %v921_v40 = vsel %vm309_vm3, %v915_v37, -inf }
 0x628   :  { %922 = vmax.xlane.f32.xlu1 %v921_v40 }
 0x639   :  { %941 = vrot.lane.b32.xlu1 %v1518_v4, %s1344_s18 }
 0x6ad   :  { %v920_v41 = vpop.xlane.xlu0 %919 }
 0x6ae   :  { %v924_v42 = vsub.f32 %v912_v32, %v920_v41 }
 0x6b0   :  { %v926_v0 = vmul.f32 1.442695, %v924_v42 }
 0x6b1   :  { %v923_v43 = vpop.xlane.xlu1 %922 }
 0x6b2   :  { %1328 = vpow2.f32 %v926_v0  ;;  %v925_v35 = vsub.f32 %v915_v37, %v923_v43 }
 0x6b4   :  { %v928_v44 = vmul.f32 1.442695, %v925_v35 }
 0x6b5   :  { %v942_v45 = vpop.permute.xlu1 %941 }
 0x6b6   :  { %1330 = vpow2.f32 %v928_v44  ;;  %1283 = vmatpush3.bf16.msra.mxu0 %v942_v45 }
 0x6bf   :  { %v1329_v46 = vpop.eup %1328 }
 0x6c0   :  { %v930_v39 = vsel %vm309_vm3, %v1329_v46, 0.0 }
 0x6c1   :  { %931 = vadd.xlane.f32.xlu0 %v930_v39 }
 0x6c3   :  { %v1331_v47 = vpop.eup %1330 }
 0x6c4   :  { %v933_v48 = vsel %vm309_vm3, %v1331_v47, 0.0 }
 0x6c5   :  { %934 = vadd.xlane.f32.xlu0 %v933_v48 }
 0x6dd   :  { %v1275_v49 = vpop.f32.mrf.mxu0 }
 0x6de   :  { %v866_v4 = vadd.f32 %v1275_v49, %v660_v14 }
 0x6df   :  { %v856_v58 = vpop.f32.mrf.mxu0 }
 0x6e0   :  { %v865_v2 = vadd.f32 %v856_v58, %v655_v63 }
 0x74a   :  { %v932_v51 = vpop.xlane.xlu0 %931 }
 0x74b   :  { %1332 = vrcp.f32 %v932_v51 }
 0x74e   :  { %v935_v52 = vpop.xlane.xlu0 %934 }
 0x74f   :  { %1334 = vrcp.f32 %v935_v52 }
 0x758   :  { %v1333_v53 = vpop.eup %1332 }
 0x759   :  { %v938_v55 = vmul.f32 %v1333_v53, %v1329_v46 }
 0x75c   :  { %v1335_v54 = vpop.eup %1334 }
 0x75d   :  { %v939_v56 = vmul.f32 %v1335_v54, %v1331_v47 }
 0x75f   :  { %v940_v57 = vpack.c.bf16 %v939_v56, %v938_v55 }
 0x761   :  { %1285 = vmatmul.mubr.msk.bf16.vlgmr.msra.gmra.mxu0 %vm309_vm3, %v940_v57 }
 0x821   :  { %v981_v59 = vpop.f32.mrf.mxu0 }
 0x822   :  { %1290 = vmatprep.mubr.msk.f32.mxu1 %vm261_vm2, %v981_v59 }
 0x823   :  { %v1286_v60 = vpop.f32.mrf.mxu0 }
 0x825   :  { %v984_v61 = vpop.f32.mrf.mxu0 }
 0x826   :  { %1291 = vmatmul.mubr.msk.f32.vlgmr.msra.gmra.mxu1 %vm261_vm2, %v984_v61 }
 0x827   :  { %v1287_v62 = vpop.f32.mrf.mxu0 }
 0x8e6   :  { %v1292_v1 = vpop.f32.mrf.mxu1 }
 0x8e7   :  { %v1070_v3 = vadd.f32 %v1292_v1, %v866_v4 }
 0x8e8   :  { %v1060_v5 = vpop.f32.mrf.mxu1 }
 0x8e9   :  { %v1069_v6 = vadd.f32 %v1060_v5, %v865_v2  ;;  %v1072_v8 = vadd.f32 %v1070_v3, %v1449_v9 }
 0x8eb   :  { %v1071_v10 = vadd.f32 %v1069_v6, %v1444_v7  ;;  %v1081_v15 = vadd.f32 %v1161_v11, %v1072_v8 }
 0x8ed   :  { %v1080_v13 = vadd.f32 %v1161_v11, %v1071_v10  ;;  %v1085_v12 = vsel %vm73_vm1, %v1081_v15, 0.0 }
 0x8ef   :  { %v1082_v14 = vsel %vm73_vm1, %v1080_v13, 0.0 }
 0x8f0   :  { %1083 = vadd.xlane.f32.xlu0 %v1082_v14 }
 0x8f4   :  { %1086 = vadd.xlane.f32.xlu0 %v1085_v12 }
 0x979   :  { %v1084_v16 = vpop.xlane.xlu0 %1083 }
 0x97a   :  { %v1089_v17 = vmul.f32 0.03125, %v1084_v16 }
 0x97c   :  { %v1091_v18 = vsub.f32 %v1080_v13, %v1089_v17 }
 0x97d   :  { %v1087_v19 = vpop.xlane.xlu0 %1086 }
 0x97e   :  { %v1090_v20 = vmul.f32 0.03125, %v1087_v19  ;;  %v1093_v9 = vmul.f32 %v1091_v18, %v1091_v18 }
 0x980   :  { %v1092_v21 = vsub.f32 %v1081_v15, %v1090_v20  ;;  %v1095_v7 = vsel %vm73_vm1, %v1093_v9, 0.0 }
 0x981   :  { %1096 = vadd.xlane.f32.xlu0 %v1095_v7 }
 0x982   :  { %v1094_v22 = vmul.f32 %v1092_v21, %v1092_v21 }
 0x984   :  { %v1098_v25 = vsel %vm73_vm1, %v1094_v22, 0.0 }
 0x985   :  { %1099 = vadd.xlane.f32.xlu0 %v1098_v25 }
 0xa0a   :  { %v1097_v29 = vpop.xlane.xlu0 %1096 }
 0xa0b   :  { %v1101_v23 = vmul.f32 0.03125, %v1097_v29 }
 0xa0d   :  { %v1103_v24 = vadd.f32 1e-05, %v1101_v23 }
 0xa0e   :  { %v1100_v26 = vpop.xlane.xlu0 %1099 }
 0xa0f   :  { %1336 = vrsqrt.f32 %v1103_v24  ;;  %v1102_v27 = vmul.f32 0.03125, %v1100_v26 }
 0xa11   :  { %v1104_v28 = vadd.f32 1e-05, %v1102_v27 }
 0xa13   :  { %1338 = vrsqrt.f32 %v1104_v28 }
 0xa1c   :  { %v1337_v30 = vpop.eup %1336 }
 0xa1d   :  { %v1107_v32 = vmul.f32 %v1337_v30, %v1091_v18 }
 0xa1f   :  { %v1116_v34 = vmul.f32 %v1162_v31, %v1107_v32 }
 0xa20   :  { %v1339_v36 = vpop.eup %1338 }
 0xa21   :  { %v1125_v37 = vadd.f32 %v1163_v33, %v1116_v34  ;;  %v1108_v38 = vmul.f32 %v1339_v36, %v1092_v21 }
 0xa23   :  { %1127 = vst.msk [vmem:[%s1631_s13] sm:$0xff] %vm73_vm1, %v1125_v37  ;;  %v1117_v40 = vmul.f32 %v1162_v31, %v1108_v38 }
 0xa25   :  { %v1126_v41 = vadd.f32 %v1163_v33, %v1117_v40 }
 0xa27   :  { %1128 = vst.msk [vmem:[%s1631_s13 + $0x8] sm:$0xff] %vm73_vm1, %v1126_v41 }

// kernel: parallel_endecoder_forward.19
= control target key start
LH: loop header
LB: loop body
LE: loop exit
PB: predicated region body
PF: predicated region fallthrough
CT: control target
= control target key end

     0   :  { %v310_v0 = vmov 0.0   ;;  %vm311_vm0 = vmmov 0   ;;  %vm53_vm1 = vcmask 261120   ;;  %vm156_vm2 = vcmask 523264   ;;  %s401_s1 = inlined_call_operand.vmem [shape: bf16[32,64], index: 1, kind: input, shape index: {}]   ;;  %s402_s0 = inlined_call_operand.vmem [shape: f32[16,32], index: 0, kind: input, shape index: {}]   ;;  %s403_s3 = inlined_call_operand.vmem [shape: bf16[64,32], index: 3, kind: input, shape index: {}]   ;;  %s404_s2 = inlined_call_operand.vmem [shape: f32[1,64], index: 2, kind: input, shape index: {}]   ;;  %s405_s4 = inlined_call_operand.vmem [shape: f32[1,32], index: 4, kind: input, shape index: {}]   ;;  %s406_s5 = inlined_call_operand.vmem [shape: f32[1,32], index: 5, kind: input, shape index: {}]   ;;  %s407_s6 = inlined_call_operand.vmem [shape: f32[1,32], index: 6, kind: input, shape index: {}]   ;;  %s408_s7 = inlined_call_operand.vmem [shape: f32[16,32], index: 7, kind: output, shape index: {}]  }
   0x1   :  { %274 = vmatprep.subr.bf16.mxu0 %v310_v0  ;;  %v296_v1 = vld [vmem:[%s401_s1 + $0x8] sm:$0xff]   ;;  %278 = vmatprep.mubr.msk.bf16.mxu0 %vm311_vm0, %v310_v0  ;;  %v297_v2 = vld [vmem:[%s401_s1] sm:$0xff]   ;;  %v298_v6 = vld [vmem:[%s403_s3 + $0x18] sm:$0xff]  }
   0x2   :  { %282 = vmatprep.subr.bf16.mxu1 %v310_v0  ;;  %290 = vmatprep.mubr.msk.bf16.mxu1 %vm311_vm0, %v310_v0  ;;  %v27_v3 = vld [vmem:[%s402_s0] sm:$0xff]  ;;  %v28_v4 = vld [vmem:[%s402_s0 + $0x8] sm:$0xff]  ;;  %v299_v7 = vld [vmem:[%s403_s3 + $0x10] sm:$0xff]  }
   0x3   :  { %275 = vmatpush3.bf16.msra.mxu0 %v296_v1  ;;  %v29_v5 = vpack.c.bf16 %v28_v4, %v27_v3  ;;  %283 = vmatpush3.bf16.msra.mxu1 %v298_v6  ;;  %v300_v8 = vld [vmem:[%s403_s3 + $0x8] sm:$0xff]   ;;  %v301_v9 = vld [vmem:[%s403_s3] sm:$0xff]  }
   0x4   :  { %276 = vmatprep.subr.bf16.mxu0 %v310_v0  ;;  %284 = vmatprep.subr.bf16.mxu1 %v310_v0  ;;  %v254_v10 = vld [vmem:[%s404_s2] ss:$0 sm:$0xff] }
   0x5   :  { %v258_v36 = vld [vmem:[%s405_s4] ss:$0 sm:$0xff] }
   0x7   :  { %277 = vmatpush3.bf16.msra.mxu0 %v297_v2  ;;  %285 = vmatpush3.bf16.msra.mxu1 %v299_v7  ;;  %v265_v2 = vld [vmem:[%s407_s6] ss:$0 sm:$0xff] }
   0x8   :  { %286 = vmatprep.subr.bf16.mxu1 %v310_v0 }
   0xa   :  { %279 = vmatmul.mubr.msk.bf16.vlgmr.msra.gmra.mxu0 %vm53_vm1, %v29_v5 }
   0xb   :  { %287 = vmatpush3.bf16.msra.mxu1 %v300_v8 }
   0xc   :  { %288 = vmatprep.subr.bf16.mxu1 %v310_v0  ;;  %v264_v0 = vld [vmem:[%s406_s5] ss:$0 sm:$0xff] }
   0xf   :  { %289 = vmatpush3.bf16.msra.mxu1 %v301_v9 }
  0xca   :  { %v91_v11 = vpop.f32.mrf.mxu0 }
  0xcb   :  { %v92_v12 = vadd.f32 %v254_v10, %v91_v11 }
  0xcc   :  { %v280_v13 = vpop.f32.mrf.mxu0 }
  0xcd   :  { %v100_v14 = vmul.f32 0.044715, %v92_v12  ;;  %v98_v30 = vmul.f32 0.5, %v92_v12 }
  0xce   :  { %v94_v15 = vpop.f32.mrf.mxu0 }
  0xcf   :  { %v102_v16 = vmul.f32 %v100_v14, %v92_v12  ;;  %v95_v17 = vadd.f32 %v254_v10, %v94_v15 }
  0xd0   :  { %v281_v18 = vpop.f32.mrf.mxu0 }
  0xd1   :  { %v104_v19 = vmul.f32 %v102_v16, %v92_v12  ;;  %v101_v20 = vmul.f32 0.044715, %v95_v17  ;;  %v99_v31 = vmul.f32 0.5, %v95_v17 }
  0xd3   :  { %v106_v21 = vadd.f32 %v104_v19, %v92_v12  ;;  %v103_v22 = vmul.f32 %v101_v20, %v95_v17 }
  0xd5   :  { %v108_v23 = vmul.f32 0.7978846, %v106_v21  ;;  %v105_v24 = vmul.f32 %v103_v22, %v95_v17 }
  0xd7   :  { %302 = vtanh.f32 %v108_v23  ;;  %v107_v25 = vadd.f32 %v105_v24, %v95_v17 }
  0xd9   :  { %v109_v26 = vmul.f32 0.7978846, %v107_v25 }
  0xdb   :  { %304 = vtanh.f32 %v109_v26 }
  0xe4   :  { %v303_v27 = vpop.eup %302 }
  0xe5   :  { %v112_v28 = vadd.f32 1.0, %v303_v27 }
  0xe7   :  { %v114_v33 = vmul.f32 %v112_v28, %v98_v30 }
  0xe8   :  { %v305_v29 = vpop.eup %304 }
  0xe9   :  { %v113_v32 = vadd.f32 1.0, %v305_v29 }
  0xeb   :  { %v115_v34 = vmul.f32 %v113_v32, %v99_v31 }
  0xed   :  { %v116_v35 = vpack.c.bf16 %v115_v34, %v114_v33 }
  0xef   :  { %291 = vmatmul.mubr.msk.bf16.vlgmr.msra.gmra.mxu1 %vm156_vm2, %v116_v35 }
 0x1af   :  { %v194_v37 = vpop.f32.mrf.mxu1 }
 0x1b0   :  { %v195_v38 = vadd.f32 %v258_v36, %v194_v37 }
 0x1b1   :  { %v292_v39 = vpop.f32.mrf.mxu1 }
 0x1b2   :  { %v201_v40 = vadd.f32 %v195_v38, %v27_v3 }
 0x1b3   :  { %v197_v41 = vpop.f32.mrf.mxu1 }
 0x1b4   :  { %v198_v42 = vadd.f32 %v258_v36, %v197_v41  ;;  %v203_v43 = vsel %vm53_vm1, %v201_v40, 0.0 }
 0x1b5   :  { %204 = vadd.xlane.f32.xlu0 %v203_v43  ;;  %v293_v44 = vpop.f32.mrf.mxu1 }
 0x1b6   :  { %v202_v45 = vadd.f32 %v198_v42, %v28_v4 }
 0x1b8   :  { %v206_v46 = vsel %vm53_vm1, %v202_v45, 0.0 }
 0x1b9   :  { %207 = vadd.xlane.f32.xlu0 %v206_v46 }
 0x23e   :  { %v205_v47 = vpop.xlane.xlu0 %204 }
 0x23f   :  { %v210_v48 = vmul.f32 0.03125, %v205_v47 }
 0x241   :  { %v212_v49 = vsub.f32 %v201_v40, %v210_v48 }
 0x242   :  { %v208_v50 = vpop.xlane.xlu0 %207 }
 0x243   :  { %v211_v51 = vmul.f32 0.03125, %v208_v50  ;;  %v214_v52 = vmul.f32 %v212_v49, %v212_v49 }
 0x245   :  { %v213_v53 = vsub.f32 %v202_v45, %v211_v51  ;;  %v216_v54 = vsel %vm53_vm1, %v214_v52, 0.0 }
 0x246   :  { %217 = vadd.xlane.f32.xlu1 %v216_v54 }
 0x247   :  { %v215_v55 = vmul.f32 %v213_v53, %v213_v53 }
 0x249   :  { %v219_v56 = vsel %vm53_vm1, %v215_v55, 0.0 }
 0x24a   :  { %220 = vadd.xlane.f32.xlu1 %v219_v56 }
 0x2cf   :  { %v218_v57 = vpop.xlane.xlu1 %217 }
 0x2d0   :  { %v222_v58 = vmul.f32 0.03125, %v218_v57 }
 0x2d2   :  { %v224_v59 = vadd.f32 1e-12, %v222_v58 }
 0x2d3   :  { %v221_v60 = vpop.xlane.xlu1 %220 }
 0x2d4   :  { %306 = vrsqrt.f32 %v224_v59  ;;  %v223_v61 = vmul.f32 0.03125, %v221_v60 }
 0x2d6   :  { %v225_v62 = vadd.f32 1e-12, %v223_v61 }
 0x2d8   :  { %308 = vrsqrt.f32 %v225_v62 }
 0x2e1   :  { %v307_v63 = vpop.eup %306 }
 0x2e2   :  { %v228_v1 = vmul.f32 %v307_v63, %v212_v49 }
 0x2e4   :  { %v237_v3 = vmul.f32 %v264_v0, %v228_v1 }
 0x2e5   :  { %v309_v4 = vpop.eup %308 }
 0x2e6   :  { %v246_v5 = vadd.f32 %v265_v2, %v237_v3  ;;  %v229_v6 = vmul.f32 %v309_v4, %v213_v53 }
 0x2e8   :  { %248 = vst.msk [vmem:[%s408_s7] sm:$0xff] %vm53_vm1, %v246_v5  ;;  %v238_v7 = vmul.f32 %v264_v0, %v229_v6 }
 0x2ea   :  { %v247_v8 = vadd.f32 %v265_v2, %v238_v7 }
 0x2ec   :  { %249 = vst.msk [vmem:[%s408_s7 + $0x8] sm:$0xff] %vm53_vm1, %v247_v8 }

// kernel: parallel_endecoder_forward.18
= control target key start
LH: loop header
LB: loop body
LE: loop exit
PB: predicated region body
PF: predicated region fallthrough
CT: control target
= control target key end

     0   :  { %v1340_v0 = vmov 0.0   ;;  %vm1341_vm0 = vmmov 0   ;;  %vm73_vm1 = vcmask 261120   ;;  %vm261_vm2 = vcmask 64512   ;;  %s1344_s18 = smov 104   ;;  %s1618_s5 = inlined_call_operand.vmem [shape: bf16[32,32], index: 5, kind: input, shape index: {}]   ;;  %s1619_s3 = inlined_call_operand.vmem [shape: bf16[32,32], index: 3, kind: input, shape index: {}]   ;;  %s1620_s1 = inlined_call_operand.vmem [shape: f32[16,32], index: 1, kind: input, shape index: {}, may-alias: {0,1}]   ;;  %s1621_s0 = inlined_call_operand.vmem [shape: f32[16,32], index: 0, kind: input, shape index: {}, may-alias: {0,1}]   ;;  %s1622_s4 = inlined_call_operand.vmem [shape: f32[1,32], index: 4, kind: input, shape index: {}]   ;;  %s1623_s6 = inlined_call_operand.vmem [shape: f32[1,32], index: 6, kind: input, shape index: {}]   ;;  %s1624_s7 = inlined_call_operand.vmem [shape: bf16[32,32], index: 7, kind: input, shape index: {}]   ;;  %s1625_s2 = inlined_call_operand.vmem [shape: f32[16,16], index: 2, kind: input, shape index: {}]   ;;  %s1626_s8 = inlined_call_operand.vmem [shape: f32[1,32], index: 8, kind: input, shape index: {}]   ;;  %s1627_s9 = inlined_call_operand.vmem [shape: f32[32,32], index: 9, kind: input, shape index: {}]   ;;  %s1628_s10 = inlined_call_operand.vmem [shape: f32[1,32], index: 10, kind: input, shape index: {}]   ;;  %s1629_s11 = inlined_call_operand.vmem [shape: f32[1,32], index: 11, kind: input, shape index: {}]   ;;  %s1630_s12 = inlined_call_operand.vmem [shape: f32[1,32], index: 12, kind: input, shape index: {}]   ;;  %s1631_s13 = inlined_call_operand.vmem [shape: f32[16,32], index: 13, kind: output, shape index: {}]  }
   0x1   :  { %1209 = vmatprep.subr.bf16.mxu1 %v1340_v0  ;;  %1201 = vmatprep.subr.bf16.mxu0 %v1340_v0  ;;  %v1298_v1 = vld [vmem:[%s1618_s5 + $0x8] sm:$0xff]   ;;  %v1300_v3 = vld [vmem:[%s1618_s5] sm:$0xff]   ;;  %vm309_vm3 = vcmask 130048  }
   0x2   :  { %v1299_v2 = vld [vmem:[%s1619_s3 + $0x8] sm:$0xff]   ;;  %1213 = vmatprep.mubr.msk.bf16.mxu1 %vm1341_vm0, %v1340_v0  ;;  %1205 = vmatprep.mubr.msk.bf16.mxu0 %vm1341_vm0, %v1340_v0  ;;  %v1301_v4 = vld [vmem:[%s1619_s3] sm:$0xff]  }
   0x3   :  { %1210 = vmatpush3.bf16.msra.mxu1 %v1298_v1  ;;  %1202 = vmatpush3.bf16.msra.mxu0 %v1299_v2  ;;  %v47_v5 = vld [vmem:[%s1620_s1] sm:$0xff]  ;;  %v48_v6 = vld [vmem:[%s1620_s1 + $0x8] sm:$0xff] }
   0x4   :  { %1211 = vmatprep.subr.bf16.mxu1 %v1340_v0  ;;  %1203 = vmatprep.subr.bf16.mxu0 %v1340_v0  ;;  %v1444_v7 = vld [vmem:[%s1621_s0] sm:$0xff]  ;;  %v118_v8 = vpack.c.bf16 %v48_v6, %v47_v5  ;;  %v1449_v9 = vld [vmem:[%s1621_s0 + $0x8] sm:$0xff] }
   0x5   :  { %v49_v10 = vpack.c.bf16 %v1449_v9, %v1444_v7  ;;  %v1133_v11 = vld [vmem:[%s1622_s4] ss:$0 sm:$0xff]  ;;  %s1342_s4 = smov 120   ;;  %v1302_v30 = vld [vmem:[%s1624_s7 + $0x8] sm:$0xff]  }
   0x6   :  { %v1137_v14 = vld [vmem:[%s1623_s6] ss:$0 sm:$0xff]  ;;  %v1504_v39 = vld [vmem:[%s1625_s2 + $0x8] sm:$0xff] }
   0x7   :  { %1212 = vmatpush3.bf16.msra.mxu1 %v1300_v3  ;;  %1204 = vmatpush3.bf16.msra.mxu0 %v1301_v4  ;;  %v1303_v31 = vld [vmem:[%s1624_s7] sm:$0xff]  }
   0x8   :  { %1225 = vmatprep.subr.bf16.mxu1 %v1340_v0  ;;  %1217 = vmatprep.subr.bf16.mxu0 %v1340_v0  ;;  %v1498_v35 = vld [vmem:[%s1625_s2] sm:$0xff]  ;;  %s1343_s2 = smov 112  }
   0x9   :  { %v1141_v60 = vld [vmem:[%s1626_s8] ss:$0 sm:$0xff] }
   0xa   :  { %1214 = vmatmul.mubr.msk.bf16.vlgmr.msra.gmra.mxu1 %vm73_vm1, %v118_v8  ;;  %1206 = vmatmul.mubr.msk.bf16.vlgmr.msra.gmra.mxu0 %vm73_vm1, %v49_v10 }
   0xb   :  { %1227 = vmatprep.mubr.msk.bf16.mxu1 %vm1341_vm0, %v1340_v0  ;;  %1221 = vmatprep.mubr.msk.bf16.mxu0 %vm1341_vm0, %v1340_v0 }
   0xc   :  { %1218 = vmatpush3.bf16.msra.mxu0 %v1302_v30 }
   0xd   :  { %1219 = vmatprep.subr.bf16.mxu0 %v1340_v0 }
  0x10   :  { %1220 = vmatpush3.bf16.msra.mxu0 %v1303_v31 }
  0x11   :  { %1231 = vmatprep.subr.bf16.mxu0 %v1340_v0 }
  0x13   :  { %1222 = vmatmul.mubr.msk.bf16.vlgmr.msra.gmra.mxu0 %vm73_vm1, %v118_v8 }
  0x14   :  { %1233 = vmatprep.mubr.msk.bf16.mxu0 %vm1341_vm0, %v1340_v0 }
  0xca   :  { %v179_v12 = vpop.f32.mrf.mxu1  ;;  %v111_v13 = vpop.f32.mrf.mxu0 }
  0xcb   :  { %v112_v15 = vadd.f32 %v1133_v11, %v111_v13  ;;  %v180_v19 = vadd.f32 %v1137_v14, %v179_v12 }
  0xcc   :  { %v1215_v16 = vpop.f32.mrf.mxu1  ;;  %v1207_v17 = vpop.f32.mrf.mxu0 }
  0xcd   :  { %v256_v22 = vmul.f32 0.35355338, %v112_v15 }
  0xce   :  { %v182_v18 = vpop.f32.mrf.mxu1  ;;  %v114_v21 = vpop.f32.mrf.mxu0 }
  0xcf   :  { %v183_v20 = vadd.f32 %v1137_v14, %v182_v18  ;;  %v115_v23 = vadd.f32 %v1133_v11, %v114_v21 }
  0xd0   :  { %v1216_v24 = vpop.f32.mrf.mxu1  ;;  %v1208_v26 = vpop.f32.mrf.mxu0 }
  0xd1   :  { %v1467_v25 = vpack.c.bf16 %v183_v20, %v180_v19  ;;  %v257_v27 = vmul.f32 0.35355338, %v115_v23 }
  0xd3   :  { %381 = vrot.lane.b32.xlu0 %v1467_v25, %s1342_s4  ;;  %v266_v28 = vsel %vm261_vm2, %v1467_v25, 0  ;;  %v1473_v29 = vpack.c.bf16 %v257_v27, %v256_v22  ;;  %v243_v59 = vpop.f32.mrf.mxu0 }
  0xd4   :  { %1226 = vmatpush3.bf16.xpose.msra.mxu1 %v266_v28  ;;  %v244_v62 = vadd.f32 %v1141_v60, %v243_v59 }
  0xd5   :  { %1237 = vmatprep.subr.bf16.mxu1 %v1340_v0  ;;  %v1223_v61 = vpop.f32.mrf.mxu0 }
  0xd7   :  { %378 = vrot.lane.b32.xlu0 %v1473_v29, %s1342_s4  ;;  %v246_v63 = vpop.f32.mrf.mxu0 }
  0xd8   :  { %v247_v1 = vadd.f32 %v1141_v60, %v246_v63 }
  0xd9   :  { %v1224_v2 = vpop.f32.mrf.mxu0 }
  0xda   :  { %v1518_v4 = vpack.c.bf16 %v247_v1, %v244_v62 }
  0xdb   :  { %1228 = vmatmul.mubr.msk.bf16.vlgmr.msra.gmra.mxu1 %vm261_vm2, %v1473_v29 }
  0xdc   :  { %1239 = vmatprep.mubr.msk.bf16.mxu1 %vm1341_vm0, %v1340_v0  ;;  %1232 = vmatpush3.bf16.msra.mxu0 %v1518_v4 }
  0xdd   :  { %1243 = vmatprep.subr.bf16.mxu0 %v1340_v0 }
 0x145   :  { %v382_v32 = vpop.permute.xlu0 %381 }
 0x146   :  { %v387_v33 = vsel %vm261_vm2, %v382_v32, 0 }
 0x147   :  { %1238 = vmatpush3.bf16.xpose.msra.mxu1 %v387_v33 }
 0x149   :  { %v379_v34 = vpop.permute.xlu0 %378 }
 0x14e   :  { %1240 = vmatmul.mubr.msk.bf16.vlgmr.msra.gmra.mxu1 %vm261_vm2, %v379_v34 }
 0x19b   :  { %v302_v36 = vpop.f32.mrf.mxu1 }
 0x19c   :  { %v303_v37 = vadd.f32 %v302_v36, %v1498_v35 }
 0x19d   :  { %v1229_v38 = vpop.f32.mrf.mxu1 }
 0x19e   :  { %v310_v40 = vsel %vm309_vm3, %v303_v37, -inf }
 0x19f   :  { %311 = vmax.xlane.f32.xlu1 %v310_v40  ;;  %v305_v41 = vpop.f32.mrf.mxu1 }
 0x1a0   :  { %v306_v42 = vadd.f32 %v305_v41, %v1504_v39 }
 0x1a1   :  { %v1230_v43 = vpop.f32.mrf.mxu1 }
 0x1a2   :  { %v313_v44 = vsel %vm309_vm3, %v306_v42, -inf  ;;  %v252_v43 = vld [vmem:[%s1627_s9] sm:$0xff] }
 0x1a3   :  { %314 = vmax.xlane.f32.xlu1 %v313_v44 }
 0x20e   :  { %v423_v45 = vpop.f32.mrf.mxu1 }
 0x20f   :  { %v424_v46 = vadd.f32 %v423_v45, %v1498_v35 }
 0x210   :  { %v1241_v47 = vpop.f32.mrf.mxu1 }
 0x211   :  { %v430_v48 = vsel %vm309_vm3, %v424_v46, -inf }
 0x212   :  { %431 = vmax.xlane.f32.xlu0 %v430_v48  ;;  %v426_v49 = vpop.f32.mrf.mxu1 }
 0x213   :  { %v427_v50 = vadd.f32 %v426_v49, %v1504_v39 }
 0x214   :  { %v1242_v51 = vpop.f32.mrf.mxu1 }
 0x215   :  { %v433_v52 = vsel %vm309_vm3, %v427_v50, -inf }
 0x216   :  { %434 = vmax.xlane.f32.xlu1 %v433_v52 }
 0x228   :  { %v312_v53 = vpop.xlane.xlu1 %311  ;;  %665 = vrot.lane.b32.xlu0 %v1467_v25, %s1343_s2 }
 0x229   :  { %v316_v54 = vsub.f32 %v303_v37, %v312_v53 }
 0x22b   :  { %v318_v55 = vmul.f32 1.442695, %v316_v54 }
 0x22c   :  { %v315_v56 = vpop.xlane.xlu1 %314 }
 0x22d   :  { %1304 = vpow2.f32 %v318_v55  ;;  %v317_v57 = vsub.f32 %v306_v42, %v315_v56  ;;  %v253_v42 = vld [vmem:[%s1627_s9 + $0x8] sm:$0xff] }
 0x22e   :  { %1249 = vmatprep.subr.mxu1 %v253_v42 }
 0x22f   :  { %v320_v58 = vmul.f32 1.442695, %v317_v57  ;;  %1250 = vmatpush3.msra.mxu1 %v253_v42 }
 0x230   :  { %1254 = vmatprep.subr.mxu1 %v252_v43 }
 0x231   :  { %1306 = vpow2.f32 %v320_v58 }
 0x23a   :  { %v1305_v3 = vpop.eup %1304 }
 0x23b   :  { %v322_v5 = vsel %vm309_vm3, %v1305_v3, 0.0 }
 0x23c   :  { %323 = vadd.xlane.f32.xlu1 %v322_v5 }
 0x23e   :  { %v1307_v6 = vpop.eup %1306 }
 0x23f   :  { %v325_v8 = vsel %vm309_vm3, %v1307_v6, 0.0 }
 0x240   :  { %326 = vadd.xlane.f32.xlu1 %v325_v8 }
 0x29b   :  { %v432_v10 = vpop.xlane.xlu0 %431 }
 0x29c   :  { %v436_v11 = vsub.f32 %v424_v46, %v432_v10 }
 0x29e   :  { %v438_v12 = vmul.f32 1.442695, %v436_v11 }
 0x29f   :  { %v435_v13 = vpop.xlane.xlu1 %434  ;;  %v666_v37 = vpop.permute.xlu0 %665 }
 0x2a0   :  { %1308 = vpow2.f32 %v438_v12  ;;  %v437_v14 = vsub.f32 %v427_v50, %v435_v13  ;;  %v671_v40 = vsel %vm261_vm2, %v666_v37, 0 }
 0x2a2   :  { %v440_v15 = vmul.f32 1.442695, %v437_v14 }
 0x2a4   :  { %1310 = vpow2.f32 %v440_v15 }
 0x2ad   :  { %v1309_v16 = vpop.eup %1308 }
 0x2ae   :  { %v442_v17 = vsel %vm309_vm3, %v1309_v16, 0.0 }
 0x2af   :  { %443 = vadd.xlane.f32.xlu1 %v442_v17 }
 0x2b1   :  { %v1311_v18 = vpop.eup %1310 }
 0x2b2   :  { %v445_v19 = vsel %vm309_vm3, %v1311_v18, 0.0 }
 0x2b3   :  { %446 = vadd.xlane.f32.xlu1 %v445_v19 }
 0x2c4   :  { %454 = vrot.lane.b32.xlu1 %v1518_v4, %s1342_s4 }
 0x2c5   :  { %v324_v20 = vpop.xlane.xlu1 %323 }
 0x2c6   :  { %1312 = vrcp.f32 %v324_v20 }
 0x2c8   :  { %663 = vrot.lane.b32.xlu1 %v1473_v29, %s1343_s2 }
 0x2c9   :  { %v327_v21 = vpop.xlane.xlu1 %326 }
 0x2ca   :  { %1314 = vrcp.f32 %v327_v21 }
 0x2d3   :  { %v1313_v22 = vpop.eup %1312 }
 0x2d4   :  { %v330_v24 = vmul.f32 %v1313_v22, %v1305_v3 }
 0x2d7   :  { %v1315_v23 = vpop.eup %1314 }
 0x2d8   :  { %v331_v26 = vmul.f32 %v1315_v23, %v1307_v6  ;;  %v254_v23 = vld [vmem:[%s1627_s9 + $0x10] sm:$0xff] }
 0x2da   :  { %v332_v27 = vpack.c.bf16 %v331_v26, %v330_v24 }
 0x2dc   :  { %1234 = vmatmul.mubr.msk.bf16.vlgmr.msra.gmra.mxu0 %vm309_vm3, %v332_v27 }
 0x2dd   :  { %1245 = vmatprep.mubr.msk.bf16.mxu0 %vm1341_vm0, %v1340_v0 }
 0x338   :  { %v444_v28 = vpop.xlane.xlu1 %443 }
 0x339   :  { %1316 = vrcp.f32 %v444_v28 }
 0x33c   :  { %v447_v30 = vpop.xlane.xlu1 %446 }
 0x33d   :  { %1318 = vrcp.f32 %v447_v30 }
 0x340   :  { %v455_v31 = vpop.permute.xlu1 %454 }
 0x341   :  { %1244 = vmatpush3.bf16.msra.mxu0 %v455_v31 }
 0x342   :  { %1259 = vmatprep.subr.bf16.mxu0 %v1340_v0 }
 0x344   :  { %v664_v41 = vpop.permute.xlu1 %663 }
 0x346   :  { %v1317_v32 = vpop.eup %1316 }
 0x347   :  { %v450_v34 = vmul.f32 %v1317_v32, %v1309_v16 }
 0x34a   :  { %v1319_v33 = vpop.eup %1318 }
 0x34b   :  { %v451_v36 = vmul.f32 %v1319_v33, %v1311_v18 }
 0x34d   :  { %v452_v38 = vpack.c.bf16 %v451_v36, %v450_v34 }
 0x34f   :  { %1246 = vmatmul.mubr.msk.bf16.vlgmr.msra.gmra.mxu0 %vm309_vm3, %v452_v38 }
 0x350   :  { %1260 = vmatpush3.bf16.xpose.msra.mxu0 %v671_v40  ;;  %1261 = vmatprep.mubr.msk.bf16.mxu0 %vm1341_vm0, %v1340_v0 }
 0x351   :  { %1271 = vmatprep.subr.mxu0 %v254_v23 }
 0x357   :  { %1262 = vmatmul.mubr.msk.bf16.vlgmr.msra.gmra.mxu0 %vm261_vm2, %v664_v41 }
 0x358   :  { %1272 = vmatpush3.msra.mxu0 %v254_v23 }
 0x359   :  { %1282 = vmatprep.subr.bf16.mxu0 %v1340_v0 }
 0x39c   :  { %v370_v44 = vpop.f32.mrf.mxu0 }
 0x39e   :  { %v1235_v45 = vpop.f32.mrf.mxu0 }
 0x3a0   :  { %v373_v46 = vpop.f32.mrf.mxu0 }
 0x3a2   :  { %v1236_v47 = vpop.f32.mrf.mxu0 }
 0x40f   :  { %v494_v48 = vpop.f32.mrf.mxu0 }
 0x410   :  { %1251 = vmatprep.mubr.msk.f32.mxu1 %vm261_vm2, %v494_v48 }
 0x411   :  { %v1247_v49 = vpop.f32.mrf.mxu0 }
 0x413   :  { %v497_v50 = vpop.f32.mrf.mxu0 }
 0x414   :  { %1252 = vmatmul.mubr.msk.f32.vlgmr.msra.gmra.mxu1 %vm261_vm2, %v497_v50  ;;  %v255_v50 = vld [vmem:[%s1627_s9 + $0x18] sm:$0xff] }
 0x415   :  { %v1248_v51 = vpop.f32.mrf.mxu0  ;;  %1256 = vmatprep.mubr.msk.f32.mxu1 %vm261_vm2, %v370_v44  ;;  %1255 = vmatpush3.msra.mxu1 %v252_v43 }
 0x416   :  { %1265 = vmatprep.subr.bf16.mxu1 %v1340_v0 }
 0x417   :  { %v707_v52 = vpop.f32.mrf.mxu0 }
 0x418   :  { %v708_v53 = vadd.f32 %v707_v52, %v1498_v35  ;;  %1257 = vmatmul.mubr.msk.f32.vlgmr.msra.gmra.mxu1 %vm261_vm2, %v373_v46 }
 0x419   :  { %v1263_v54 = vpop.f32.mrf.mxu0  ;;  %1267 = vmatprep.mubr.msk.bf16.mxu1 %vm1341_vm0, %v1340_v0 }
 0x41a   :  { %v714_v55 = vsel %vm309_vm3, %v708_v53, -inf }
 0x41b   :  { %715 = vmax.xlane.f32.xlu1 %v714_v55  ;;  %v710_v56 = vpop.f32.mrf.mxu0 }
 0x41c   :  { %v711_v57 = vadd.f32 %v710_v56, %v1504_v39 }
 0x41d   :  { %v1264_v58 = vpop.f32.mrf.mxu0 }
 0x41e   :  { %v717_v59 = vsel %vm309_vm3, %v711_v57, -inf }
 0x41f   :  { %718 = vmax.xlane.f32.xlu0 %v717_v59 }
 0x435   :  { %737 = vrot.lane.b32.xlu0 %v1518_v4, %s1343_s2 }
 0x4a4   :  { %v716_v60 = vpop.xlane.xlu1 %715 }
 0x4a5   :  { %v720_v61 = vsub.f32 %v708_v53, %v716_v60 }
 0x4a7   :  { %v722_v62 = vmul.f32 1.442695, %v720_v61 }
 0x4a8   :  { %v719_v63 = vpop.xlane.xlu0 %718 }
 0x4a9   :  { %1320 = vpow2.f32 %v722_v62  ;;  %v721_v1 = vsub.f32 %v711_v57, %v719_v63 }
 0x4ab   :  { %v724_v2 = vmul.f32 1.442695, %v721_v1 }
 0x4ac   :  { %v738_v3 = vpop.permute.xlu0 %737 }
 0x4ad   :  { %1322 = vpow2.f32 %v724_v2  ;;  %1266 = vmatpush3.bf16.msra.mxu1 %v738_v3 }
 0x4ae   :  { %1276 = vmatprep.subr.bf16.mxu1 %v1340_v0 }
 0x4b6   :  { %v1321_v5 = vpop.eup %1320 }
 0x4b7   :  { %v726_v6 = vsel %vm309_vm3, %v1321_v5, 0.0 }
 0x4b8   :  { %727 = vadd.xlane.f32.xlu1 %v726_v6 }
 0x4ba   :  { %v1323_v8 = vpop.eup %1322 }
 0x4bb   :  { %v729_v10 = vsel %vm309_vm3, %v1323_v8, 0.0 }
 0x4bc   :  { %730 = vadd.xlane.f32.xlu1 %v729_v10 }
 0x4cd   :  { %869 = vrot.lane.b32.xlu1 %v1467_v25, %s1344_s18 }
 0x4d1   :  { %867 = vrot.lane.b32.xlu1 %v1473_v29, %s1344_s18 }
 0x4d4   :  { %v1253_v11 = vpop.f32.mrf.mxu1 }
 0x4d6   :  { %v1565_v12 = vpop.f32.mrf.mxu1 }
 0x4d8   :  { %v1258_v13 = vpop.f32.mrf.mxu1 }
 0x4d9   :  { %v660_v14 = vadd.f32 %v1258_v13, %v1253_v11  ;;  %v1161_v11 = vld [vmem:[%s1628_s10] ss:$0 sm:$0xff] }
 0x4da   :  { %v654_v24 = vpop.f32.mrf.mxu1 }
 0x4db   :  { %v655_v63 = vadd.f32 %v654_v24, %v1565_v12 }
 0x541   :  { %v728_v15 = vpop.xlane.xlu1 %727 }
 0x542   :  { %1324 = vrcp.f32 %v728_v15 }
 0x545   :  { %v731_v16 = vpop.xlane.xlu1 %730 }
 0x546   :  { %1326 = vrcp.f32 %v731_v16 }
 0x549   :  { %v870_v21 = vpop.permute.xlu1 %869 }
 0x54a   :  { %v875_v25 = vsel %vm261_vm2, %v870_v21, 0 }
 0x54d   :  { %v868_v29 = vpop.permute.xlu1 %867 }
 0x54f   :  { %v1325_v17 = vpop.eup %1324 }
 0x550   :  { %v734_v19 = vmul.f32 %v1325_v17, %v1321_v5 }
 0x553   :  { %v1327_v18 = vpop.eup %1326 }
 0x554   :  { %v735_v20 = vmul.f32 %v1327_v18, %v1323_v8 }
 0x556   :  { %v736_v22 = vpack.c.bf16 %v735_v20, %v734_v19 }
 0x558   :  { %1268 = vmatmul.mubr.msk.bf16.vlgmr.msra.gmra.mxu1 %vm309_vm3, %v736_v22 }
 0x559   :  { %1277 = vmatpush3.bf16.xpose.msra.mxu1 %v875_v25  ;;  %1278 = vmatprep.mubr.msk.bf16.mxu1 %vm1341_vm0, %v1340_v0 }
 0x55a   :  { %1288 = vmatprep.subr.mxu1 %v255_v50 }
 0x560   :  { %1279 = vmatmul.mubr.msk.bf16.vlgmr.msra.gmra.mxu1 %vm261_vm2, %v868_v29 }
 0x561   :  { %1289 = vmatpush3.msra.mxu1 %v255_v50 }
 0x618   :  { %v777_v26 = vpop.f32.mrf.mxu1 }
 0x619   :  { %1273 = vmatprep.mubr.msk.f32.mxu0 %vm261_vm2, %v777_v26 }
 0x61a   :  { %v1269_v27 = vpop.f32.mrf.mxu1 }
 0x61c   :  { %v780_v28 = vpop.f32.mrf.mxu1 }
 0x61d   :  { %1274 = vmatmul.mubr.msk.f32.vlgmr.msra.gmra.mxu0 %vm261_vm2, %v780_v28 }
 0x61e   :  { %v1270_v30 = vpop.f32.mrf.mxu1  ;;  %1284 = vmatprep.mubr.msk.bf16.mxu0 %vm1341_vm0, %v1340_v0 }
 0x620   :  { %v911_v31 = vpop.f32.mrf.mxu1 }
 0x621   :  { %v912_v32 = vadd.f32 %v911_v31, %v1498_v35  ;;  %v1162_v31 = vld [vmem:[%s1629_s11] ss:$0 sm:$0xff] }
 0x622   :  { %v1280_v33 = vpop.f32.mrf.mxu1 }
 0x623   :  { %v918_v34 = vsel %vm309_vm3, %v912_v32, -inf  ;;  %v1163_v33 = vld [vmem:[%s1630_s12] ss:$0 sm:$0xff] }
 0x624   :  { %919 = vmax.xlane.f32.xlu0 %v918_v34  ;;  %v914_v36 = vpop.f32.mrf.mxu1 }
 0x625   :  { %v915_v37 = vadd.f32 %v914_v36, %v1504_v39 }
 0x626   :  { %v1281_v38 = vpop.f32.mrf.mxu1 }
 0x627   :  { %v921_v40 = vsel %vm309_vm3, %v915_v37, -inf }
 0x628   :  { %922 = vmax.xlane.f32.xlu1 %v921_v40 }
 0x639   :  { %941 = vrot.lane.b32.xlu1 %v1518_v4, %s1344_s18 }
 0x6ad   :  { %v920_v41 = vpop.xlane.xlu0 %919 }
 0x6ae   :  { %v924_v42 = vsub.f32 %v912_v32, %v920_v41 }
 0x6b0   :  { %v926_v0 = vmul.f32 1.442695, %v924_v42 }
 0x6b1   :  { %v923_v43 = vpop.xlane.xlu1 %922 }
 0x6b2   :  { %1328 = vpow2.f32 %v926_v0  ;;  %v925_v35 = vsub.f32 %v915_v37, %v923_v43 }
 0x6b4   :  { %v928_v44 = vmul.f32 1.442695, %v925_v35 }
 0x6b5   :  { %v942_v45 = vpop.permute.xlu1 %941 }
 0x6b6   :  { %1330 = vpow2.f32 %v928_v44  ;;  %1283 = vmatpush3.bf16.msra.mxu0 %v942_v45 }
 0x6bf   :  { %v1329_v46 = vpop.eup %1328 }
 0x6c0   :  { %v930_v39 = vsel %vm309_vm3, %v1329_v46, 0.0 }
 0x6c1   :  { %931 = vadd.xlane.f32.xlu0 %v930_v39 }
 0x6c3   :  { %v1331_v47 = vpop.eup %1330 }
 0x6c4   :  { %v933_v48 = vsel %vm309_vm3, %v1331_v47, 0.0 }
 0x6c5   :  { %934 = vadd.xlane.f32.xlu0 %v933_v48 }
 0x6dd   :  { %v1275_v49 = vpop.f32.mrf.mxu0 }
 0x6de   :  { %v866_v4 = vadd.f32 %v1275_v49, %v660_v14 }
 0x6df   :  { %v856_v58 = vpop.f32.mrf.mxu0 }
 0x6e0   :  { %v865_v2 = vadd.f32 %v856_v58, %v655_v63 }
 0x74a   :  { %v932_v51 = vpop.xlane.xlu0 %931 }
 0x74b   :  { %1332 = vrcp.f32 %v932_v51 }
 0x74e   :  { %v935_v52 = vpop.xlane.xlu0 %934 }
 0x74f   :  { %1334 = vrcp.f32 %v935_v52 }
 0x758   :  { %v1333_v53 = vpop.eup %1332 }
 0x759   :  { %v938_v55 = vmul.f32 %v1333_v53, %v1329_v46 }
 0x75c   :  { %v1335_v54 = vpop.eup %1334 }
 0x75d   :  { %v939_v56 = vmul.f32 %v1335_v54, %v1331_v47 }
 0x75f   :  { %v940_v57 = vpack.c.bf16 %v939_v56, %v938_v55 }
 0x761   :  { %1285 = vmatmul.mubr.msk.bf16.vlgmr.msra.gmra.mxu0 %vm309_vm3, %v940_v57 }
 0x821   :  { %v981_v59 = vpop.f32.mrf.mxu0 }
 0x822   :  { %1290 = vmatprep.mubr.msk.f32.mxu1 %vm261_vm2, %v981_v59 }
 0x823   :  { %v1286_v60 = vpop.f32.mrf.mxu0 }
 0x825   :  { %v984_v61 = vpop.f32.mrf.mxu0 }
 0x826   :  { %1291 = vmatmul.mubr.msk.f32.vlgmr.msra.gmra.mxu1 %vm261_vm2, %v984_v61 }
 0x827   :  { %v1287_v62 = vpop.f32.mrf.mxu0 }
 0x8e6   :  { %v1292_v1 = vpop.f32.mrf.mxu1 }
 0x8e7   :  { %v1070_v3 = vadd.f32 %v1292_v1, %v866_v4 }
 0x8e8   :  { %v1060_v5 = vpop.f32.mrf.mxu1 }
 0x8e9   :  { %v1069_v6 = vadd.f32 %v1060_v5, %v865_v2  ;;  %v1072_v8 = vadd.f32 %v1070_v3, %v1449_v9 }
 0x8eb   :  { %v1071_v10 = vadd.f32 %v1069_v6, %v1444_v7  ;;  %v1081_v15 = vadd.f32 %v1161_v11, %v1072_v8 }
 0x8ed   :  { %v1080_v13 = vadd.f32 %v1161_v11, %v1071_v10  ;;  %v1085_v12 = vsel %vm73_vm1, %v1081_v15, 0.0 }
 0x8ef   :  { %v1082_v14 = vsel %vm73_vm1, %v1080_v13, 0.0 }
 0x8f0   :  { %1083 = vadd.xlane.f32.xlu0 %v1082_v14 }
 0x8f4   :  { %1086 = vadd.xlane.f32.xlu0 %v1085_v12 }
 0x979   :  { %v1084_v16 = vpop.xlane.xlu0 %1083 }
 0x97a   :  { %v1089_v17 = vmul.f32 0.03125, %v1084_v16 }
 0x97c   :  { %v1091_v18 = vsub.f32 %v1080_v13, %v1089_v17 }
 0x97d   :  { %v1087_v19 = vpop.xlane.xlu0 %1086 }
 0x97e   :  { %v1090_v20 = vmul.f32 0.03125, %v1087_v19  ;;  %v1093_v9 = vmul.f32 %v1091_v18, %v1091_v18 }
 0x980   :  { %v1092_v21 = vsub.f32 %v1081_v15, %v1090_v20  ;;  %v1095_v7 = vsel %vm73_vm1, %v1093_v9, 0.0 }
 0x981   :  { %1096 = vadd.xlane.f32.xlu0 %v1095_v7 }
 0x982   :  { %v1094_v22 = vmul.f32 %v1092_v21, %v1092_v21 }
 0x984   :  { %v1098_v25 = vsel %vm73_vm1, %v1094_v22, 0.0 }
 0x985   :  { %1099 = vadd.xlane.f32.xlu0 %v1098_v25 }
 0xa0a   :  { %v1097_v29 = vpop.xlane.xlu0 %1096 }
 0xa0b   :  { %v1101_v23 = vmul.f32 0.03125, %v1097_v29 }
 0xa0d   :  { %v1103_v24 = vadd.f32 1e-12, %v1101_v23 }
 0xa0e   :  { %v1100_v26 = vpop.xlane.xlu0 %1099 }
 0xa0f   :  { %1336 = vrsqrt.f32 %v1103_v24  ;;  %v1102_v27 = vmul.f32 0.03125, %v1100_v26 }
 0xa11   :  { %v1104_v28 = vadd.f32 1e-12, %v1102_v27 }
 0xa13   :  { %1338 = vrsqrt.f32 %v1104_v28 }
 0xa1c   :  { %v1337_v30 = vpop.eup %1336 }
 0xa1d   :  { %v1107_v32 = vmul.f32 %v1337_v30, %v1091_v18 }
 0xa1f   :  { %v1116_v34 = vmul.f32 %v1162_v31, %v1107_v32 }
 0xa20   :  { %v1339_v36 = vpop.eup %1338 }
 0xa21   :  { %v1125_v37 = vadd.f32 %v1163_v33, %v1116_v34  ;;  %v1108_v38 = vmul.f32 %v1339_v36, %v1092_v21 }
 0xa23   :  { %1127 = vst.msk [vmem:[%s1631_s13] sm:$0xff] %vm73_vm1, %v1125_v37  ;;  %v1117_v40 = vmul.f32 %v1162_v31, %v1108_v38 }
 0xa25   :  { %v1126_v41 = vadd.f32 %v1163_v33, %v1117_v40 }
 0xa27   :  { %1128 = vst.msk [vmem:[%s1631_s13 + $0x8] sm:$0xff] %vm73_vm1, %v1126_v41 }

// kernel: parallel_endecoder_forward.31
= control target key start
LH: loop header
LB: loop body
LE: loop exit
PB: predicated region body
PF: predicated region fallthrough
CT: control target
= control target key end

     0   :  { %v1433_v0 = vmov 0.0   ;;  %vm1434_vm0 = vmmov 0   ;;  %vm89_vm1 = vcmask 523264   ;;  %vm313_vm2 = vcmask 130048   ;;  %s1437_s26 = smov 80   ;;  %s1750_s5 = inlined_call_operand.vmem [shape: bf16[64,64], index: 5, kind: input, shape index: {}]   ;;  %s1751_s3 = inlined_call_operand.vmem [shape: bf16[64,64], index: 3, kind: input, shape index: {}]   ;;  %s1752_s1 = inlined_call_operand.vmem [shape: f32[16,64], index: 1, kind: input, shape index: {}, may-alias: {0,1}]   ;;  %s1753_s0 = inlined_call_operand.vmem [shape: f32[16,64], index: 0, kind: input, shape index: {}, may-alias: {0,1}]   ;;  %s1754_s7 = inlined_call_operand.vmem [shape: bf16[64,64], index: 7, kind: input, shape index: {}]   ;;  %s1755_s4 = inlined_call_operand.vmem [shape: f32[1,64], index: 4, kind: input, shape index: {}]   ;;  %s1756_s6 = inlined_call_operand.vmem [shape: f32[1,64], index: 6, kind: input, shape index: {}]   ;;  %s1757_s8 = inlined_call_operand.vmem [shape: f32[1,64], index: 8, kind: input, shape index: {}]   ;;  %s1758_s2 = inlined_call_operand.vmem [shape: f32[16,16], index: 2, kind: input, shape index: {}]   ;;  %s1759_s9 = inlined_call_operand.vmem [shape: f32[64,64], index: 9, kind: input, shape index: {}]   ;;  %s1760_s10 = inlined_call_operand.vmem [shape: f32[1,64], index: 10, kind: input, shape index: {}]   ;;  %s1761_s11 = inlined_call_operand.vmem [shape: f32[1,64], index: 11, kind: input, shape index: {}]   ;;  %s1762_s12 = inlined_call_operand.vmem [shape: f32[1,64], index: 12, kind: input, shape index: {}]   ;;  %s1763_s13 = inlined_call_operand.vmem [shape: f32[16,64], index: 13, kind: output, shape index: {}]  }
   0x1   :  { %1280 = vmatprep.subr.bf16.mxu1 %v1433_v0  ;;  %1268 = vmatprep.subr.bf16.mxu0 %v1433_v0  ;;  %v1385_v1 = vld [vmem:[%s1750_s5 + $0x18] sm:$0xff]   ;;  %v1387_v3 = vld [vmem:[%s1750_s5 + $0x10] sm:$0xff]   ;;  %v1389_v5 = vld [vmem:[%s1750_s5 + $0x8] sm:$0xff]  }
   0x2   :  { %v1386_v2 = vld [vmem:[%s1751_s3 + $0x18] sm:$0xff]   ;;  %1288 = vmatprep.mubr.msk.bf16.mxu1 %vm1434_vm0, %v1433_v0  ;;  %1276 = vmatprep.mubr.msk.bf16.mxu0 %vm1434_vm0, %v1433_v0  ;;  %v1388_v4 = vld [vmem:[%s1751_s3 + $0x10] sm:$0xff]   ;;  %v1390_v6 = vld [vmem:[%s1751_s3 + $0x8] sm:$0xff]  }
   0x3   :  { %1281 = vmatpush3.bf16.msra.mxu1 %v1385_v1  ;;  %1269 = vmatpush3.bf16.msra.mxu0 %v1386_v2  ;;  %v1391_v7 = vld [vmem:[%s1750_s5] sm:$0xff]   ;;  %v48_v9 = vld [vmem:[%s1752_s1 + $0x8] sm:$0xff]  ;;  %v1393_v15 = vld [vmem:[%s1754_s7 + $0x18] sm:$0xff]  }
   0x4   :  { %1282 = vmatprep.subr.bf16.mxu1 %v1433_v0  ;;  %1270 = vmatprep.subr.bf16.mxu0 %v1433_v0  ;;  %v47_v8 = vld [vmem:[%s1752_s1] sm:$0xff]  ;;  %v1557_v12 = vld [vmem:[%s1753_s0 + $0x8] sm:$0xff]  ;;  %v1394_v16 = vld [vmem:[%s1754_s7 + $0x10] sm:$0xff]  }
   0x5   :  { %v1392_v10 = vld [vmem:[%s1751_s3] sm:$0xff]   ;;  %v134_v13 = vpack.c.bf16 %v48_v9, %v47_v8  ;;  %v1395_v17 = vld [vmem:[%s1754_s7 + $0x8] sm:$0xff]  }
   0x6   :  { %v1552_v11 = vld [vmem:[%s1753_s0] sm:$0xff]  ;;  %v1628_v53 = vld [vmem:[%s1758_s2 + $0x8] sm:$0xff] }
   0x7   :  { %1283 = vmatpush3.bf16.msra.mxu1 %v1387_v3  ;;  %1271 = vmatpush3.bf16.msra.mxu0 %v1388_v4  ;;  %v49_v14 = vpack.c.bf16 %v1557_v12, %v1552_v11  ;;  %v1396_v18 = vld [vmem:[%s1754_s7] sm:$0xff]  }
   0x8   :  { %1284 = vmatprep.subr.bf16.mxu1 %v1433_v0  ;;  %1272 = vmatprep.subr.bf16.mxu0 %v1433_v0  ;;  %v1184_v19 = vld [vmem:[%s1755_s4] ss:$0 sm:$0xff]  ;;  %s1435_s4 = smov 112  }
   0x9   :  { %v1190_v22 = vld [vmem:[%s1756_s6] ss:$0 sm:$0xff] }
   0xa   :  { %v1196_v38 = vld [vmem:[%s1757_s8] ss:$0 sm:$0xff] }
   0xb   :  { %1285 = vmatpush3.bf16.msra.mxu1 %v1389_v5  ;;  %1273 = vmatpush3.bf16.msra.mxu0 %v1390_v6  ;;  %v1622_v49 = vld [vmem:[%s1758_s2] sm:$0xff]  ;;  %s1436_s2 = smov 96  }
   0xc   :  { %1286 = vmatprep.subr.bf16.mxu1 %v1433_v0  ;;  %1274 = vmatprep.subr.bf16.mxu0 %v1433_v0 }
   0xf   :  { %1287 = vmatpush3.bf16.msra.mxu1 %v1391_v7  ;;  %1275 = vmatpush3.bf16.msra.mxu0 %v1392_v10 }
  0x10   :  { %1304 = vmatprep.subr.bf16.mxu1 %v1433_v0  ;;  %1292 = vmatprep.subr.bf16.mxu0 %v1433_v0 }
  0x12   :  { %1289 = vmatmul.mubr.msk.bf16.vlgmr.msra.gmra.mxu1 %vm89_vm1, %v134_v13  ;;  %1277 = vmatmul.mubr.msk.bf16.vlgmr.msra.gmra.mxu0 %vm89_vm1, %v49_v14 }
  0x13   :  { %1306 = vmatprep.mubr.msk.bf16.mxu1 %vm1434_vm0, %v1433_v0  ;;  %1300 = vmatprep.mubr.msk.bf16.mxu0 %vm1434_vm0, %v1433_v0 }
  0x14   :  { %1293 = vmatpush3.bf16.msra.mxu0 %v1393_v15 }
  0x15   :  { %1294 = vmatprep.subr.bf16.mxu0 %v1433_v0 }
  0x18   :  { %1295 = vmatpush3.bf16.msra.mxu0 %v1394_v16 }
  0x19   :  { %1296 = vmatprep.subr.bf16.mxu0 %v1433_v0 }
  0x1c   :  { %1297 = vmatpush3.bf16.msra.mxu0 %v1395_v17 }
  0x1d   :  { %1298 = vmatprep.subr.bf16.mxu0 %v1433_v0 }
  0x20   :  { %1299 = vmatpush3.bf16.msra.mxu0 %v1396_v18 }
  0x21   :  { %1316 = vmatprep.subr.bf16.mxu0 %v1433_v0 }
  0x23   :  { %1301 = vmatmul.mubr.msk.bf16.vlgmr.msra.gmra.mxu0 %vm89_vm1, %v134_v13 }
  0x24   :  { %1318 = vmatprep.mubr.msk.bf16.mxu0 %vm1434_vm0, %v1433_v0 }
  0xd2   :  { %v211_v20 = vpop.f32.mrf.mxu1  ;;  %v127_v21 = vpop.f32.mrf.mxu0 }
  0xd3   :  { %v128_v23 = vadd.f32 %v1184_v19, %v127_v21  ;;  %v212_v27 = vadd.f32 %v1190_v22, %v211_v20 }
  0xd4   :  { %v1290_v24 = vpop.f32.mrf.mxu1  ;;  %v1278_v25 = vpop.f32.mrf.mxu0 }
  0xd5   :  { %v308_v30 = vmul.f32 0.25, %v128_v23 }
  0xd6   :  { %v214_v26 = vpop.f32.mrf.mxu1  ;;  %v130_v29 = vpop.f32.mrf.mxu0 }
  0xd7   :  { %v215_v28 = vadd.f32 %v1190_v22, %v214_v26  ;;  %v131_v31 = vadd.f32 %v1184_v19, %v130_v29 }
  0xd8   :  { %v1291_v32 = vpop.f32.mrf.mxu1  ;;  %v1279_v34 = vpop.f32.mrf.mxu0 }
  0xd9   :  { %v1595_v33 = vpack.c.bf16 %v215_v28, %v212_v27  ;;  %v309_v35 = vmul.f32 0.25, %v131_v31  ;;  %v303_v34 = vld [vmem:[%s1759_s9 + $0x18] sm:$0xff] }
  0xdb   :  { %432 = vrot.lane.b32.xlu0 %v1595_v33, %s1435_s4  ;;  %v318_v36 = vsel %vm313_vm2, %v1595_v33, 0  ;;  %v1601_v37 = vpack.c.bf16 %v309_v35, %v308_v30 }
  0xdc   :  { %1305 = vmatpush3.bf16.xpose.msra.mxu1 %v318_v36  ;;  %v301_v36 = vld [vmem:[%s1759_s9 + $0x8] sm:$0xff] }
  0xdd   :  { %1310 = vmatprep.subr.bf16.mxu1 %v1433_v0 }
  0xdf   :  { %429 = vrot.lane.b32.xlu0 %v1601_v37, %s1435_s4 }
  0xe3   :  { %1307 = vmatmul.mubr.msk.bf16.vlgmr.msra.gmra.mxu1 %vm313_vm2, %v1601_v37  ;;  %v291_v39 = vpop.f32.mrf.mxu0 }
  0xe4   :  { %1312 = vmatprep.mubr.msk.bf16.mxu1 %vm1434_vm0, %v1433_v0  ;;  %v292_v41 = vadd.f32 %v1196_v38, %v291_v39 }
  0xe5   :  { %v1302_v40 = vpop.f32.mrf.mxu0 }
  0xe7   :  { %v294_v42 = vpop.f32.mrf.mxu0 }
  0xe8   :  { %v295_v43 = vadd.f32 %v1196_v38, %v294_v42 }
  0xe9   :  { %v1303_v44 = vpop.f32.mrf.mxu0 }
  0xea   :  { %v1613_v45 = vpack.c.bf16 %v295_v43, %v292_v41  ;;  %v300_v43 = vld [vmem:[%s1759_s9] sm:$0xff]  ;;  %v302_v44 = vld [vmem:[%s1759_s9 + $0x10] sm:$0xff] }
  0xec   :  { %1311 = vmatpush3.bf16.msra.mxu1 %v1613_v45 }
  0xed   :  { %1322 = vmatprep.subr.bf16.mxu1 %v1433_v0 }
 0x14d   :  { %v433_v46 = vpop.permute.xlu0 %432 }
 0x14e   :  { %v438_v47 = vsel %vm313_vm2, %v433_v46, 0 }
 0x14f   :  { %1317 = vmatpush3.bf16.xpose.msra.mxu0 %v438_v47 }
 0x150   :  { %1328 = vmatprep.subr.mxu0 %v303_v34 }
 0x151   :  { %v430_v48 = vpop.permute.xlu0 %429 }
 0x156   :  { %1319 = vmatmul.mubr.msk.bf16.vlgmr.msra.gmra.mxu0 %vm313_vm2, %v430_v48 }
 0x157   :  { %1329 = vmatpush3.msra.mxu0 %v303_v34 }
 0x158   :  { %1330 = vmatprep.subr.mxu0 %v302_v44 }
 0x159   :  { %1331 = vmatpush3.msra.mxu0 %v302_v44 }
 0x15a   :  { %1342 = vmatprep.subr.bf16.mxu0 %v1433_v0 }
 0x1a3   :  { %v354_v50 = vpop.f32.mrf.mxu1 }
 0x1a4   :  { %v355_v51 = vadd.f32 %v354_v50, %v1622_v49 }
 0x1a5   :  { %v1308_v52 = vpop.f32.mrf.mxu1 }
 0x1a6   :  { %v361_v54 = vsel %vm313_vm2, %v355_v51, -inf }
 0x1a7   :  { %362 = vmax.xlane.f32.xlu1 %v361_v54  ;;  %v357_v55 = vpop.f32.mrf.mxu1 }
 0x1a8   :  { %v358_v56 = vadd.f32 %v357_v55, %v1628_v53 }
 0x1a9   :  { %v1309_v57 = vpop.f32.mrf.mxu1 }
 0x1aa   :  { %v364_v58 = vsel %vm313_vm2, %v358_v56, -inf }
 0x1ab   :  { %365 = vmax.xlane.f32.xlu1 %v364_v58 }
 0x216   :  { %v474_v59 = vpop.f32.mrf.mxu0 }
 0x217   :  { %v475_v60 = vadd.f32 %v474_v59, %v1622_v49 }
 0x218   :  { %v1320_v61 = vpop.f32.mrf.mxu0 }
 0x219   :  { %v481_v62 = vsel %vm313_vm2, %v475_v60, -inf }
 0x21a   :  { %482 = vmax.xlane.f32.xlu0 %v481_v62  ;;  %v477_v63 = vpop.f32.mrf.mxu0 }
 0x21b   :  { %v478_v1 = vadd.f32 %v477_v63, %v1628_v53 }
 0x21c   :  { %v1321_v2 = vpop.f32.mrf.mxu0 }
 0x21d   :  { %v484_v3 = vsel %vm313_vm2, %v478_v1, -inf }
 0x21e   :  { %485 = vmax.xlane.f32.xlu1 %v484_v3 }
 0x230   :  { %v363_v4 = vpop.xlane.xlu1 %362  ;;  %716 = vrot.lane.b32.xlu0 %v1595_v33, %s1436_s2 }
 0x231   :  { %v367_v5 = vsub.f32 %v355_v51, %v363_v4 }
 0x233   :  { %v369_v6 = vmul.f32 1.442695, %v367_v5 }
 0x234   :  { %v366_v7 = vpop.xlane.xlu1 %365 }
 0x235   :  { %1397 = vpow2.f32 %v369_v6  ;;  %v368_v8 = vsub.f32 %v358_v56, %v366_v7 }
 0x237   :  { %v371_v9 = vmul.f32 1.442695, %v368_v8 }
 0x239   :  { %1399 = vpow2.f32 %v371_v9 }
 0x242   :  { %v1398_v10 = vpop.eup %1397 }
 0x243   :  { %v373_v13 = vsel %vm313_vm2, %v1398_v10, 0.0 }
 0x244   :  { %374 = vadd.xlane.f32.xlu1 %v373_v13 }
 0x246   :  { %v1400_v14 = vpop.eup %1399 }
 0x247   :  { %v376_v15 = vsel %vm313_vm2, %v1400_v14, 0.0 }
 0x248   :  { %377 = vadd.xlane.f32.xlu1 %v376_v15 }
 0x2a3   :  { %v483_v16 = vpop.xlane.xlu0 %482 }
 0x2a4   :  { %v487_v17 = vsub.f32 %v475_v60, %v483_v16 }
 0x2a6   :  { %v489_v18 = vmul.f32 1.442695, %v487_v17 }
 0x2a7   :  { %v486_v19 = vpop.xlane.xlu1 %485  ;;  %v717_v52 = vpop.permute.xlu0 %716 }
 0x2a8   :  { %1401 = vpow2.f32 %v489_v18  ;;  %v488_v20 = vsub.f32 %v478_v1, %v486_v19  ;;  %v722_v57 = vsel %vm313_vm2, %v717_v52, 0 }
 0x2aa   :  { %v491_v21 = vmul.f32 1.442695, %v488_v20 }
 0x2ac   :  { %1403 = vpow2.f32 %v491_v21 }
 0x2b5   :  { %v1402_v22 = vpop.eup %1401 }
 0x2b6   :  { %v493_v23 = vsel %vm313_vm2, %v1402_v22, 0.0 }
 0x2b7   :  { %494 = vadd.xlane.f32.xlu1 %v493_v23 }
 0x2b9   :  { %v1404_v24 = vpop.eup %1403 }
 0x2ba   :  { %v496_v25 = vsel %vm313_vm2, %v1404_v24, 0.0 }
 0x2bb   :  { %497 = vadd.xlane.f32.xlu1 %v496_v25 }
 0x2cc   :  { %505 = vrot.lane.b32.xlu1 %v1613_v45, %s1435_s4 }
 0x2cd   :  { %v375_v26 = vpop.xlane.xlu1 %374 }
 0x2ce   :  { %1405 = vrcp.f32 %v375_v26 }
 0x2d0   :  { %714 = vrot.lane.b32.xlu1 %v1601_v37, %s1436_s2 }
 0x2d1   :  { %v378_v27 = vpop.xlane.xlu1 %377 }
 0x2d2   :  { %1407 = vrcp.f32 %v378_v27 }
 0x2d4   :  { %920 = vrot.lane.b32.xlu1 %v1595_v33, %s1437_s26 }
 0x2d8   :  { %918 = vrot.lane.b32.xlu1 %v1601_v37, %s1437_s26 }
 0x2db   :  { %v1406_v28 = vpop.eup %1405 }
 0x2dc   :  { %v381_v30 = vmul.f32 %v1406_v28, %v1398_v10 }
 0x2df   :  { %v1408_v29 = vpop.eup %1407 }
 0x2e0   :  { %v382_v31 = vmul.f32 %v1408_v29, %v1400_v14 }
 0x2e2   :  { %v383_v32 = vpack.c.bf16 %v382_v31, %v381_v30 }
 0x2e4   :  { %1313 = vmatmul.mubr.msk.bf16.vlgmr.msra.gmra.mxu1 %vm313_vm2, %v383_v32 }
 0x2e5   :  { %1324 = vmatprep.mubr.msk.bf16.mxu1 %vm1434_vm0, %v1433_v0 }
 0x340   :  { %v495_v33 = vpop.xlane.xlu1 %494 }
 0x341   :  { %1409 = vrcp.f32 %v495_v33 }
 0x344   :  { %v498_v35 = vpop.xlane.xlu1 %497 }
 0x345   :  { %1411 = vrcp.f32 %v498_v35 }
 0x348   :  { %v506_v37 = vpop.permute.xlu1 %505 }
 0x349   :  { %1323 = vmatpush3.bf16.msra.mxu1 %v506_v37 }
 0x34a   :  { %1335 = vmatprep.subr.mxu1 %v301_v36 }
 0x34c   :  { %v715_v55 = vpop.permute.xlu1 %714 }
 0x34e   :  { %v1410_v38 = vpop.eup %1409 }
 0x34f   :  { %v501_v40 = vmul.f32 %v1410_v38, %v1402_v22 }
 0x350   :  { %v921_v59 = vpop.permute.xlu1 %920 }
 0x351   :  { %v926_v60 = vsel %vm313_vm2, %v921_v59, 0 }
 0x352   :  { %v1412_v39 = vpop.eup %1411 }
 0x353   :  { %v502_v41 = vmul.f32 %v1412_v39, %v1404_v24 }
 0x354   :  { %v919_v61 = vpop.permute.xlu1 %918 }
 0x355   :  { %v503_v42 = vpack.c.bf16 %v502_v41, %v501_v40 }
 0x357   :  { %1325 = vmatmul.mubr.msk.bf16.vlgmr.msra.gmra.mxu1 %vm313_vm2, %v503_v42 }
 0x358   :  { %1336 = vmatpush3.msra.mxu1 %v301_v36 }
 0x359   :  { %1337 = vmatprep.subr.mxu1 %v300_v43 }
 0x35a   :  { %1338 = vmatpush3.msra.mxu1 %v300_v43 }
 0x35b   :  { %1348 = vmatprep.subr.bf16.mxu1 %v1433_v0 }
 0x3a4   :  { %v421_v46 = vpop.f32.mrf.mxu1 }
 0x3a5   :  { %1339 = vmatprep.mubr.msk.f32.mxu1 %vm313_vm2, %v421_v46  ;;  %v305_v46 = vld [vmem:[%s1759_s9 + $0x28] sm:$0xff] }
 0x3a6   :  { %v1314_v47 = vpop.f32.mrf.mxu1 }
 0x3a7   :  { %v304_v47 = vld [vmem:[%s1759_s9 + $0x20] sm:$0xff] }
 0x3a8   :  { %v424_v48 = vpop.f32.mrf.mxu1 }
 0x3a9   :  { %1340 = vmatmul.mubr.msk.f32.vlgmr.msra.gmra.mxu1 %vm313_vm2, %v424_v48 }
 0x3aa   :  { %v1315_v50 = vpop.f32.mrf.mxu1  ;;  %1350 = vmatprep.mubr.msk.bf16.mxu1 %vm1434_vm0, %v1433_v0 }
 0x417   :  { %v545_v51 = vpop.f32.mrf.mxu1 }
 0x418   :  { %1332 = vmatprep.mubr.msk.f32.mxu0 %vm313_vm2, %v545_v51 }
 0x419   :  { %v1326_v54 = vpop.f32.mrf.mxu1 }
 0x41b   :  { %v548_v56 = vpop.f32.mrf.mxu1 }
 0x41c   :  { %1333 = vmatmul.mubr.msk.f32.vlgmr.msra.gmra.mxu0 %vm313_vm2, %v548_v56 }
 0x41d   :  { %1343 = vmatpush3.bf16.xpose.msra.mxu0 %v722_v57  ;;  %v1327_v58 = vpop.f32.mrf.mxu1  ;;  %1344 = vmatprep.mubr.msk.bf16.mxu0 %vm1434_vm0, %v1433_v0 }
 0x41e   :  { %1361 = vmatprep.subr.bf16.mxu0 %v1433_v0 }
 0x424   :  { %1345 = vmatmul.mubr.msk.bf16.vlgmr.msra.gmra.mxu0 %vm313_vm2, %v715_v55 }
 0x425   :  { %1362 = vmatpush3.bf16.xpose.msra.mxu0 %v926_v60  ;;  %1363 = vmatprep.mubr.msk.bf16.mxu0 %vm1434_vm0, %v1433_v0 }
 0x42c   :  { %1364 = vmatmul.mubr.msk.bf16.vlgmr.msra.gmra.mxu0 %vm313_vm2, %v919_v61 }
 0x469   :  { %v1341_v51 = vpop.f32.mrf.mxu1 }
 0x46b   :  { %v705_v52 = vpop.f32.mrf.mxu1 }
 0x4dc   :  { %v1684_v62 = vpop.f32.mrf.mxu0 }
 0x4de   :  { %v1686_v63 = vpop.f32.mrf.mxu0 }
 0x4e4   :  { %v758_v1 = vpop.f32.mrf.mxu0 }
 0x4e5   :  { %v759_v2 = vadd.f32 %v758_v1, %v1622_v49 }
 0x4e6   :  { %v1346_v3 = vpop.f32.mrf.mxu0 }
 0x4e7   :  { %v765_v4 = vsel %vm313_vm2, %v759_v2, -inf  ;;  %v306_v3 = vld [vmem:[%s1759_s9 + $0x30] sm:$0xff] }
 0x4e8   :  { %766 = vmax.xlane.f32.xlu1 %v765_v4  ;;  %v761_v5 = vpop.f32.mrf.mxu0  ;;  %v711_v4 = vadd.f32 %v1341_v51, %v1684_v62  ;;  %v1218_v62 = vld [vmem:[%s1760_s10] ss:$0 sm:$0xff] }
 0x4e9   :  { %v762_v6 = vadd.f32 %v761_v5, %v1628_v53 }
 0x4ea   :  { %v1347_v7 = vpop.f32.mrf.mxu0 }
 0x4eb   :  { %v768_v8 = vsel %vm313_vm2, %v762_v6, -inf }
 0x4ec   :  { %769 = vmax.xlane.f32.xlu0 %v768_v8  ;;  %v962_v9 = vpop.f32.mrf.mxu0 }
 0x4ed   :  { %v963_v24 = vadd.f32 %v962_v9, %v1622_v49 }
 0x4ee   :  { %v1365_v10 = vpop.f32.mrf.mxu0 }
 0x4ef   :  { %v969_v27 = vsel %vm313_vm2, %v963_v24, -inf }
 0x4f0   :  { %v965_v13 = vpop.f32.mrf.mxu0 }
 0x4f1   :  { %v966_v26 = vadd.f32 %v965_v13, %v1628_v53 }
 0x4f2   :  { %v1366_v14 = vpop.f32.mrf.mxu0 }
 0x4f3   :  { %v972_v28 = vsel %vm313_vm2, %v966_v26, -inf }
 0x571   :  { %v767_v15 = vpop.xlane.xlu1 %766 }
 0x572   :  { %v771_v16 = vsub.f32 %v759_v2, %v767_v15  ;;  %v307_v2 = vld [vmem:[%s1759_s9 + $0x38] sm:$0xff] }
 0x573   :  { %1373 = vmatprep.subr.mxu0 %v307_v2 }
 0x574   :  { %v773_v17 = vmul.f32 1.442695, %v771_v16  ;;  %1374 = vmatpush3.msra.mxu0 %v307_v2 }
 0x575   :  { %v770_v18 = vpop.xlane.xlu0 %769  ;;  %1375 = vmatprep.subr.mxu0 %v306_v3 }
 0x576   :  { %1413 = vpow2.f32 %v773_v17  ;;  %v772_v19 = vsub.f32 %v762_v6, %v770_v18  ;;  %1376 = vmatpush3.msra.mxu0 %v306_v3 }
 0x578   :  { %v775_v20 = vmul.f32 1.442695, %v772_v19 }
 0x57a   :  { %1415 = vpow2.f32 %v775_v20 }
 0x583   :  { %v1414_v21 = vpop.eup %1413 }
 0x584   :  { %v777_v22 = vsel %vm313_vm2, %v1414_v21, 0.0 }
 0x585   :  { %778 = vadd.xlane.f32.xlu0 %v777_v22 }
 0x587   :  { %v1416_v23 = vpop.eup %1415 }
 0x588   :  { %v780_v25 = vsel %vm313_vm2, %v1416_v23, 0.0 }
 0x589   :  { %781 = vadd.xlane.f32.xlu1 %v780_v25 }
 0x58d   :  { %970 = vmax.xlane.f32.xlu1 %v969_v27 }
 0x591   :  { %973 = vmax.xlane.f32.xlu1 %v972_v28 }
 0x59b   :  { %788 = vrot.lane.b32.xlu0 %v1613_v45, %s1436_s2 }
 0x60e   :  { %v779_v29 = vpop.xlane.xlu0 %778 }
 0x60f   :  { %1417 = vrcp.f32 %v779_v29 }
 0x612   :  { %v782_v30 = vpop.xlane.xlu1 %781  ;;  %v789_v31 = vpop.permute.xlu0 %788 }
 0x613   :  { %1419 = vrcp.f32 %v782_v30  ;;  %1349 = vmatpush3.bf16.msra.mxu1 %v789_v31 }
 0x614   :  { %1354 = vmatprep.subr.mxu1 %v305_v46 }
 0x616   :  { %v971_v49 = vpop.xlane.xlu1 %970 }
 0x617   :  { %v975_v32 = vsub.f32 %v963_v24, %v971_v49 }
 0x619   :  { %v977_v34 = vmul.f32 1.442695, %v975_v32 }
 0x61a   :  { %v974_v33 = vpop.xlane.xlu1 %973 }
 0x61b   :  { %1421 = vpow2.f32 %v977_v34  ;;  %v976_v53 = vsub.f32 %v966_v26, %v974_v33 }
 0x61c   :  { %v1418_v36 = vpop.eup %1417 }
 0x61d   :  { %v979_v35 = vmul.f32 1.442695, %v976_v53  ;;  %v785_v38 = vmul.f32 %v1418_v36, %v1414_v21 }
 0x61f   :  { %1423 = vpow2.f32 %v979_v35 }
 0x620   :  { %v1420_v37 = vpop.eup %1419 }
 0x621   :  { %v786_v39 = vmul.f32 %v1420_v37, %v1416_v23  ;;  %v1219_v37 = vld [vmem:[%s1761_s11] ss:$0 sm:$0xff] }
 0x623   :  { %v787_v40 = vpack.c.bf16 %v786_v39, %v785_v38  ;;  %v1220_v39 = vld [vmem:[%s1762_s12] ss:$0 sm:$0xff] }
 0x625   :  { %1351 = vmatmul.mubr.msk.bf16.vlgmr.msra.gmra.mxu1 %vm313_vm2, %v787_v40 }
 0x626   :  { %1355 = vmatpush3.msra.mxu1 %v305_v46 }
 0x627   :  { %1356 = vmatprep.subr.mxu1 %v304_v47 }
 0x628   :  { %v1422_v41 = vpop.eup %1421  ;;  %1357 = vmatpush3.msra.mxu1 %v304_v47 }
 0x629   :  { %v981_v42 = vsel %vm313_vm2, %v1422_v41, 0.0  ;;  %1367 = vmatprep.subr.bf16.mxu1 %v1433_v0 }
 0x62a   :  { %982 = vadd.xlane.f32.xlu1 %v981_v42 }
 0x62c   :  { %v1424_v43 = vpop.eup %1423 }
 0x62d   :  { %v984_v44 = vsel %vm313_vm2, %v1424_v43, 0.0 }
 0x62e   :  { %985 = vadd.xlane.f32.xlu1 %v984_v44 }
 0x63f   :  { %992 = vrot.lane.b32.xlu1 %v1613_v45, %s1437_s26 }
 0x6b3   :  { %v983_v48 = vpop.xlane.xlu1 %982 }
 0x6b7   :  { %v986_v50 = vpop.xlane.xlu1 %985 }
 0x6b8   :  { %1425 = vrcp.f32 %v986_v50 }
 0x6b9   :  { %1427 = vrcp.f32 %v983_v48 }
 0x6bb   :  { %v993_v59 = vpop.permute.xlu1 %992 }
 0x6c5   :  { %v1426_v54 = vpop.eup %1425 }
 0x6c6   :  { %v1428_v56 = vpop.eup %1427  ;;  %v990_v57 = vmul.f32 %v1426_v54, %v1424_v43 }
 0x6c7   :  { %v989_v60 = vmul.f32 %v1428_v56, %v1422_v41 }
 0x6c9   :  { %v991_v1 = vpack.c.bf16 %v990_v57, %v989_v60 }
 0x6e5   :  { %v828_v55 = vpop.f32.mrf.mxu1 }
 0x6e6   :  { %1358 = vmatprep.mubr.msk.f32.mxu1 %vm313_vm2, %v828_v55 }
 0x6e7   :  { %v1352_v45 = vpop.f32.mrf.mxu1 }
 0x6e9   :  { %v831_v58 = vpop.f32.mrf.mxu1 }
 0x6ea   :  { %1359 = vmatmul.mubr.msk.f32.vlgmr.msra.gmra.mxu1 %vm313_vm2, %v831_v58 }
 0x6eb   :  { %1368 = vmatpush3.bf16.msra.mxu1 %v993_v59  ;;  %v1353_v61 = vpop.f32.mrf.mxu1  ;;  %1369 = vmatprep.mubr.msk.bf16.mxu1 %vm1434_vm0, %v1433_v0  ;;  %v706_v0 = vadd.f32 %v705_v52, %v1686_v63 }
 0x6ee   :  { %1370 = vmatmul.mubr.msk.bf16.vlgmr.msra.gmra.mxu1 %vm313_vm2, %v991_v1 }
 0x7aa   :  { %v1360_v5 = vpop.f32.mrf.mxu1 }
 0x7ab   :  { %v917_v6 = vadd.f32 %v1360_v5, %v711_v4 }
 0x7ac   :  { %v907_v7 = vpop.f32.mrf.mxu1 }
 0x7ad   :  { %v916_v8 = vadd.f32 %v907_v7, %v706_v0 }
 0x7ae   :  { %v1032_v9 = vpop.f32.mrf.mxu1 }
 0x7af   :  { %1377 = vmatprep.mubr.msk.f32.mxu0 %vm313_vm2, %v1032_v9 }
 0x7b0   :  { %v1371_v10 = vpop.f32.mrf.mxu1 }
 0x7b2   :  { %v1035_v13 = vpop.f32.mrf.mxu1 }
 0x7b3   :  { %1378 = vmatmul.mubr.msk.f32.vlgmr.msra.gmra.mxu0 %vm313_vm2, %v1035_v13 }
 0x7b4   :  { %v1372_v14 = vpop.f32.mrf.mxu1 }
 0x873   :  { %v1379_v15 = vpop.f32.mrf.mxu0 }
 0x874   :  { %v1121_v16 = vadd.f32 %v1379_v15, %v917_v6 }
 0x875   :  { %v1111_v17 = vpop.f32.mrf.mxu0 }
 0x876   :  { %v1123_v63 = vadd.f32 %v1121_v16, %v1557_v12  ;;  %v1120_v18 = vadd.f32 %v1111_v17, %v916_v8 }
 0x878   :  { %v1122_v19 = vadd.f32 %v1120_v18, %v1552_v11  ;;  %v1132_v20 = vadd.f32 %v1218_v62, %v1123_v63 }
 0x87a   :  { %v1136_v21 = vsel %vm89_vm1, %v1132_v20, 0.0  ;;  %v1131_v22 = vadd.f32 %v1218_v62, %v1122_v19 }
 0x87b   :  { %1137 = vadd.xlane.f32.xlu1 %v1136_v21 }
 0x87c   :  { %v1133_v23 = vsel %vm89_vm1, %v1131_v22, 0.0 }
 0x87d   :  { %1134 = vadd.xlane.f32.xlu0 %v1133_v23 }
 0x904   :  { %v1138_v24 = vpop.xlane.xlu1 %1137 }
 0x905   :  { %v1141_v25 = vmul.f32 0.015625, %v1138_v24 }
 0x906   :  { %v1135_v26 = vpop.xlane.xlu0 %1134 }
 0x907   :  { %v1140_v27 = vmul.f32 0.015625, %v1135_v26  ;;  %v1143_v28 = vsub.f32 %v1132_v20, %v1141_v25 }
 0x909   :  { %v1142_v29 = vsub.f32 %v1131_v22, %v1140_v27  ;;  %v1145_v31 = vmul.f32 %v1143_v28, %v1143_v28 }
 0x90b   :  { %v1144_v30 = vmul.f32 %v1142_v29, %v1142_v29  ;;  %v1149_v11 = vsel %vm89_vm1, %v1145_v31, 0.0 }
 0x90d   :  { %v1146_v12 = vsel %vm89_vm1, %v1144_v30, 0.0 }
 0x90e   :  { %1147 = vadd.xlane.f32.xlu0 %v1146_v12 }
 0x912   :  { %1150 = vadd.xlane.f32.xlu0 %v1149_v11 }
 0x997   :  { %v1148_v49 = vpop.xlane.xlu0 %1147 }
 0x998   :  { %v1152_v32 = vmul.f32 0.015625, %v1148_v49 }
 0x99a   :  { %v1154_v34 = vadd.f32 1e-05, %v1152_v32 }
 0x99b   :  { %v1151_v33 = vpop.xlane.xlu0 %1150 }
 0x99c   :  { %1429 = vrsqrt.f32 %v1154_v34  ;;  %v1153_v53 = vmul.f32 0.015625, %v1151_v33 }
 0x99e   :  { %v1155_v35 = vadd.f32 1e-05, %v1153_v53 }
 0x9a0   :  { %1431 = vrsqrt.f32 %v1155_v35 }
 0x9a9   :  { %v1430_v36 = vpop.eup %1429 }
 0x9aa   :  { %v1158_v38 = vmul.f32 %v1430_v36, %v1142_v29 }
 0x9ac   :  { %v1167_v40 = vmul.f32 %v1219_v37, %v1158_v38 }
 0x9ad   :  { %v1432_v41 = vpop.eup %1431 }
 0x9ae   :  { %v1176_v42 = vadd.f32 %v1220_v39, %v1167_v40  ;;  %v1159_v43 = vmul.f32 %v1432_v41, %v1143_v28 }
 0x9b0   :  { %1178 = vst.msk [vmem:[%s1763_s13] sm:$0xff] %vm89_vm1, %v1176_v42  ;;  %v1168_v44 = vmul.f32 %v1219_v37, %v1159_v43 }
 0x9b2   :  { %v1177_v46 = vadd.f32 %v1220_v39, %v1168_v44 }
 0x9b4   :  { %1179 = vst.msk [vmem:[%s1763_s13 + $0x8] sm:$0xff] %vm89_vm1, %v1177_v46 }

// kernel: parallel_endecoder_forward.33
= control target key start
LH: loop header
LB: loop body
LE: loop exit
PB: predicated region body
PF: predicated region fallthrough
CT: control target
= control target key end

     0   :  { %v137_v0 = vmov 0.0   ;;  %vm138_vm0 = vmmov 0   ;;  %vm57_vm1 = vcmask 523264   ;;  %s186_s1 = inlined_call_operand.vmem [shape: bf16[64,128], index: 1, kind: input, shape index: {}]   ;;  %s187_s0 = inlined_call_operand.vmem [shape: f32[16,64], index: 0, kind: input, shape index: {}]   ;;  %s188_s2 = inlined_call_operand.vmem [shape: f32[1,128], index: 2, kind: input, shape index: {}]   ;;  %s189_s3 = inlined_call_operand.vmem [shape: f32[16,128], index: 3, kind: output, shape index: {}]  }
   0x1   :  { %119 = vmatprep.subr.bf16.mxu0 %v137_v0  ;;  %v133_v1 = vld [vmem:[%s186_s1 + $0x18] sm:$0xff]   ;;  %127 = vmatprep.mubr.msk.bf16.mxu0 %vm138_vm0, %v137_v0  ;;  %v134_v2 = vld [vmem:[%s186_s1 + $0x10] sm:$0xff]   ;;  %v135_v3 = vld [vmem:[%s186_s1 + $0x8] sm:$0xff]  }
   0x2   :  { %120 = vmatpush3.bf16.msra.mxu0 %v133_v1  ;;  %v136_v4 = vld [vmem:[%s186_s1] sm:$0xff]   ;;  %v16_v6 = vld [vmem:[%s187_s0 + $0x8] sm:$0xff] }
   0x3   :  { %121 = vmatprep.subr.bf16.mxu0 %v137_v0  ;;  %v15_v5 = vld [vmem:[%s187_s0] sm:$0xff] }
   0x4   :  { %v17_v7 = vpack.c.bf16 %v16_v6, %v15_v5  ;;  %v108_v8 = vld [vmem:[%s188_s2] ss:$0 sm:$0xff] }
   0x6   :  { %122 = vmatpush3.bf16.msra.mxu0 %v134_v2 }
   0x7   :  { %123 = vmatprep.subr.bf16.mxu0 %v137_v0 }
   0xa   :  { %124 = vmatpush3.bf16.msra.mxu0 %v135_v3 }
   0xb   :  { %125 = vmatprep.subr.bf16.mxu0 %v137_v0 }
   0xe   :  { %126 = vmatpush3.bf16.msra.mxu0 %v136_v4 }
  0x11   :  { %128 = vmatmul.mubr.msk.bf16.vlgmr.msra.gmra.mxu0 %vm57_vm1, %v17_v7 }
  0xd1   :  { %v95_v9 = vpop.f32.mrf.mxu0 }
  0xd2   :  { %v96_v10 = vadd.f32 %v108_v8, %v95_v9 }
  0xd3   :  { %v129_v11 = vpop.f32.mrf.mxu0 }
  0xd4   :  { %102 = vst [vmem:[%s189_s3] sm:$0xff] %v96_v10 }
  0xd5   :  { %v98_v12 = vpop.f32.mrf.mxu0 }
  0xd6   :  { %v99_v13 = vadd.f32 %v108_v8, %v98_v12 }
  0xd7   :  { %v130_v14 = vpop.f32.mrf.mxu0 }
  0xd8   :  { %103 = vst [vmem:[%s189_s3 + $0x8] sm:$0xff] %v99_v13 }

// kernel: parallel_endecoder_forward.32
= control target key start
LH: loop header
LB: loop body
LE: loop exit
PB: predicated region body
PF: predicated region fallthrough
CT: control target
= control target key end

     0   :  { %v383_v0 = vmov 0.0   ;;  %vm384_vm0 = vmmov 0   ;;  %vm69_vm1 = vcmask 523264   ;;  %s500_s1 = inlined_call_operand.vmem [shape: bf16[64,128], index: 1, kind: input, shape index: {}]   ;;  %s501_s0 = inlined_call_operand.vmem [shape: f32[16,64], index: 0, kind: input, shape index: {}]   ;;  %s502_s3 = inlined_call_operand.vmem [shape: bf16[128,64], index: 3, kind: input, shape index: {}]   ;;  %s503_s2 = inlined_call_operand.vmem [shape: f32[1,128], index: 2, kind: input, shape index: {}]   ;;  %s504_s4 = inlined_call_operand.vmem [shape: f32[1,64], index: 4, kind: input, shape index: {}]   ;;  %s505_s5 = inlined_call_operand.vmem [shape: f32[1,64], index: 5, kind: input, shape index: {}]   ;;  %s506_s6 = inlined_call_operand.vmem [shape: f32[1,64], index: 6, kind: input, shape index: {}]   ;;  %s507_s7 = inlined_call_operand.vmem [shape: f32[16,64], index: 7, kind: output, shape index: {}]  }
   0x1   :  { %329 = vmatprep.subr.bf16.mxu0 %v383_v0  ;;  %v363_v1 = vld [vmem:[%s500_s1 + $0x18] sm:$0xff]   ;;  %337 = vmatprep.mubr.msk.bf16.mxu0 %vm384_vm0, %v383_v0  ;;  %v364_v2 = vld [vmem:[%s500_s1 + $0x10] sm:$0xff]   ;;  %v365_v3 = vld [vmem:[%s500_s1 + $0x8] sm:$0xff]  }
   0x2   :  { %341 = vmatprep.subr.bf16.mxu1 %v383_v0  ;;  %357 = vmatprep.mubr.msk.bf16.mxu1 %vm384_vm0, %v383_v0  ;;  %v366_v4 = vld [vmem:[%s500_s1] sm:$0xff]   ;;  %v445_v6 = vld [vmem:[%s501_s0 + $0x8] sm:$0xff]  ;;  %v367_v8 = vld [vmem:[%s502_s3 + $0x38] sm:$0xff]  }
   0x3   :  { %330 = vmatpush3.bf16.msra.mxu0 %v363_v1  ;;  %v440_v5 = vld [vmem:[%s501_s0] sm:$0xff]  ;;  %342 = vmatpush3.bf16.msra.mxu1 %v367_v8  ;;  %v368_v9 = vld [vmem:[%s502_s3 + $0x30] sm:$0xff]   ;;  %v369_v10 = vld [vmem:[%s502_s3 + $0x28] sm:$0xff]  }
   0x4   :  { %331 = vmatprep.subr.bf16.mxu0 %v383_v0  ;;  %v29_v7 = vpack.c.bf16 %v445_v6, %v440_v5  ;;  %343 = vmatprep.subr.bf16.mxu1 %v383_v0  ;;  %v370_v11 = vld [vmem:[%s502_s3 + $0x20] sm:$0xff]   ;;  %v371_v12 = vld [vmem:[%s502_s3 + $0x18] sm:$0xff]   ;;  %v372_v13 = vld [vmem:[%s502_s3 + $0x10] sm:$0xff]  }
   0x5   :  { %v373_v14 = vld [vmem:[%s502_s3 + $0x8] sm:$0xff]   ;;  %v374_v15 = vld [vmem:[%s502_s3] sm:$0xff]  }
   0x6   :  { %v298_v16 = vld [vmem:[%s503_s2] ss:$0 sm:$0xff] }
   0x7   :  { %332 = vmatpush3.bf16.msra.mxu0 %v364_v2  ;;  %344 = vmatpush3.bf16.msra.mxu1 %v368_v9  ;;  %v304_v42 = vld [vmem:[%s504_s4] ss:$0 sm:$0xff] }
   0x8   :  { %333 = vmatprep.subr.bf16.mxu0 %v383_v0  ;;  %345 = vmatprep.subr.bf16.mxu1 %v383_v0  ;;  %v314_v8 = vld [vmem:[%s506_s6] ss:$0 sm:$0xff] }
   0xb   :  { %334 = vmatpush3.bf16.msra.mxu0 %v365_v3  ;;  %346 = vmatpush3.bf16.msra.mxu1 %v369_v10 }
   0xc   :  { %335 = vmatprep.subr.bf16.mxu0 %v383_v0  ;;  %347 = vmatprep.subr.bf16.mxu1 %v383_v0 }
   0xf   :  { %336 = vmatpush3.bf16.msra.mxu0 %v366_v4  ;;  %348 = vmatpush3.bf16.msra.mxu1 %v370_v11 }
  0x10   :  { %349 = vmatprep.subr.bf16.mxu1 %v383_v0 }
  0x12   :  { %338 = vmatmul.mubr.msk.bf16.vlgmr.msra.gmra.mxu0 %vm69_vm1, %v29_v7 }
  0x13   :  { %350 = vmatpush3.bf16.msra.mxu1 %v371_v12 }
  0x14   :  { %351 = vmatprep.subr.bf16.mxu1 %v383_v0 }
  0x17   :  { %352 = vmatpush3.bf16.msra.mxu1 %v372_v13 }
  0x18   :  { %353 = vmatprep.subr.bf16.mxu1 %v383_v0 }
  0x1b   :  { %354 = vmatpush3.bf16.msra.mxu1 %v373_v14 }
  0x1c   :  { %355 = vmatprep.subr.bf16.mxu1 %v383_v0 }
  0x1f   :  { %356 = vmatpush3.bf16.msra.mxu1 %v374_v15 }
  0xd2   :  { %v107_v17 = vpop.f32.mrf.mxu0 }
  0xd3   :  { %v108_v18 = vadd.f32 %v298_v16, %v107_v17 }
  0xd4   :  { %v339_v19 = vpop.f32.mrf.mxu0 }
  0xd5   :  { %v116_v20 = vmul.f32 0.044715, %v108_v18  ;;  %v114_v36 = vmul.f32 0.5, %v108_v18 }
  0xd6   :  { %v110_v21 = vpop.f32.mrf.mxu0 }
  0xd7   :  { %v118_v22 = vmul.f32 %v116_v20, %v108_v18  ;;  %v111_v23 = vadd.f32 %v298_v16, %v110_v21 }
  0xd8   :  { %v340_v24 = vpop.f32.mrf.mxu0 }
  0xd9   :  { %v120_v25 = vmul.f32 %v118_v22, %v108_v18  ;;  %v117_v26 = vmul.f32 0.044715, %v111_v23  ;;  %v115_v37 = vmul.f32 0.5, %v111_v23 }
  0xdb   :  { %v119_v27 = vmul.f32 %v117_v26, %v111_v23  ;;  %v122_v28 = vadd.f32 %v120_v25, %v108_v18 }
  0xdd   :  { %v121_v29 = vmul.f32 %v119_v27, %v111_v23  ;;  %v124_v30 = vmul.f32 0.7978846, %v122_v28 }
  0xdf   :  { %v123_v31 = vadd.f32 %v121_v29, %v111_v23  ;;  %375 = vtanh.f32 %v124_v30 }
  0xe1   :  { %v125_v32 = vmul.f32 0.7978846, %v123_v31 }
  0xe3   :  { %377 = vtanh.f32 %v125_v32 }
  0xec   :  { %v376_v33 = vpop.eup %375 }
  0xed   :  { %v128_v34 = vadd.f32 1.0, %v376_v33 }
  0xef   :  { %v130_v39 = vmul.f32 %v128_v34, %v114_v36 }
  0xf0   :  { %v378_v35 = vpop.eup %377 }
  0xf1   :  { %v129_v38 = vadd.f32 1.0, %v378_v35 }
  0xf3   :  { %v131_v40 = vmul.f32 %v129_v38, %v115_v37 }
  0xf5   :  { %v132_v41 = vpack.c.bf16 %v131_v40, %v130_v39 }
  0xf7   :  { %358 = vmatmul.mubr.bf16.vlgmr.msra.gmra.mxu1 %v132_v41 }
 0x1b7   :  { %v238_v43 = vpop.f32.mrf.mxu1 }
 0x1b8   :  { %v239_v44 = vadd.f32 %v304_v42, %v238_v43 }
 0x1b9   :  { %v359_v45 = vpop.f32.mrf.mxu1 }
 0x1ba   :  { %v245_v46 = vadd.f32 %v239_v44, %v440_v5 }
 0x1bb   :  { %v241_v47 = vpop.f32.mrf.mxu1 }
 0x1bc   :  { %v242_v48 = vadd.f32 %v304_v42, %v241_v47  ;;  %v247_v49 = vsel %vm69_vm1, %v245_v46, 0.0 }
 0x1bd   :  { %248 = vadd.xlane.f32.xlu0 %v247_v49  ;;  %v360_v50 = vpop.f32.mrf.mxu1 }
 0x1be   :  { %v246_v51 = vadd.f32 %v242_v48, %v445_v6  ;;  %v313_v6 = vld [vmem:[%s505_s5] ss:$0 sm:$0xff] }
 0x1c0   :  { %v250_v52 = vsel %vm69_vm1, %v246_v51, 0.0 }
 0x1c1   :  { %251 = vadd.xlane.f32.xlu0 %v250_v52 }
 0x246   :  { %v249_v53 = vpop.xlane.xlu0 %248 }
 0x247   :  { %v254_v54 = vmul.f32 0.015625, %v249_v53 }
 0x249   :  { %v256_v55 = vsub.f32 %v245_v46, %v254_v54 }
 0x24a   :  { %v252_v56 = vpop.xlane.xlu0 %251 }
 0x24b   :  { %v255_v57 = vmul.f32 0.015625, %v252_v56  ;;  %v258_v58 = vmul.f32 %v256_v55, %v256_v55 }
 0x24d   :  { %v257_v59 = vsub.f32 %v246_v51, %v255_v57  ;;  %v260_v60 = vsel %vm69_vm1, %v258_v58, 0.0 }
 0x24e   :  { %261 = vadd.xlane.f32.xlu1 %v260_v60 }
 0x24f   :  { %v259_v61 = vmul.f32 %v257_v59, %v257_v59 }
 0x251   :  { %v263_v62 = vsel %vm69_vm1, %v259_v61, 0.0 }
 0x252   :  { %264 = vadd.xlane.f32.xlu1 %v263_v62 }
 0x2d7   :  { %v262_v63 = vpop.xlane.xlu1 %261 }
 0x2d8   :  { %v266_v0 = vmul.f32 0.015625, %v262_v63 }
 0x2da   :  { %v268_v1 = vadd.f32 1e-05, %v266_v0 }
 0x2db   :  { %v265_v2 = vpop.xlane.xlu1 %264 }
 0x2dc   :  { %379 = vrsqrt.f32 %v268_v1  ;;  %v267_v3 = vmul.f32 0.015625, %v265_v2 }
 0x2de   :  { %v269_v4 = vadd.f32 1e-05, %v267_v3 }
 0x2e0   :  { %381 = vrsqrt.f32 %v269_v4 }
 0x2e9   :  { %v380_v5 = vpop.eup %379 }
 0x2ea   :  { %v272_v7 = vmul.f32 %v380_v5, %v256_v55 }
 0x2ec   :  { %v281_v9 = vmul.f32 %v313_v6, %v272_v7 }
 0x2ed   :  { %v382_v10 = vpop.eup %381 }
 0x2ee   :  { %v290_v11 = vadd.f32 %v314_v8, %v281_v9  ;;  %v273_v12 = vmul.f32 %v382_v10, %v257_v59 }
 0x2f0   :  { %292 = vst.msk [vmem:[%s507_s7] sm:$0xff] %vm69_vm1, %v290_v11  ;;  %v282_v13 = vmul.f32 %v313_v6, %v273_v12 }
 0x2f2   :  { %v291_v14 = vadd.f32 %v314_v8, %v282_v13 }
 0x2f4   :  { %293 = vst.msk [vmem:[%s507_s7 + $0x8] sm:$0xff] %vm69_vm1, %v291_v14 }

</bundles_post_ra>
